<compile_context>
chip_gen: v6e
topology: v6e:2x2x1
jax: 0.10.0
libtpu: 0.0.40
codegen_flags: <defaults>
</compile_context>

<pallas_src>
import functools

import jax
import jax.numpy as jnp
from jax.experimental import pallas as pl
from jax.experimental.pallas import tpu as pltpu

IN_FEATURES = 1280   # EfficientNet feature dim (from the module's __init__)
OUTPUT_DIM = 1024    # projection output_dim default
_LANE = 128


def _fwd_kernel(x_ref, ws_ref, bs_ref, wp_ref, bp_ref, o_ref, acc_ref, feats_ref,
                *, batch, channels, hw, tile, chunk, n_chunks, needs_mask, inv_hw):
    # x_ref:    [B*C, tile]        spatial tile of the flattened NCHW image
    # ws_ref:   [C, 1280]    f32   synthetic backbone 1x1-conv weight
    # bs_ref:   [1, 1280]    f32   synthetic backbone bias
    # wp_ref:   [1280, 1024] bf16  projection weight (transposed vs PyTorch)
    # bp_ref:   [1, 1024]    f32   projection bias
    # o_ref:    [B, 1024]    f32
    # acc_ref:  [B*C, chunk] f32   lane-resident running spatial sum (scratch)
    # feats_ref:[B, 1280]    bf16  backbone features (scratch)
    t = pl.program_id(0)

    @pl.when(t == 0)
    def _init():
        acc_ref[...] = jnp.zeros_like(acc_ref)

    if needs_mask:
        lane = jax.lax.broadcasted_iota(jnp.int32, (1, chunk), 1)
        remaining = hw - t * tile          # valid spatial elements in this tile

    # Per-step accumulation: pure VPU adds into a lane-resident partial that
    # lives in vregs; acc_ref is touched once per grid step.
    if n_chunks == 1:
        piece = x_ref[...]
        if needs_mask:
            piece = jnp.where(lane < remaining, piece, 0.0)
        partial = piece.astype(jnp.float32)
    else:
        def chunk_body(k, partial):
            off = pl.multiple_of(k * chunk, chunk)
            piece = x_ref[:, pl.ds(off, chunk)]
            if needs_mask:
                piece = jnp.where(lane < (remaining - k * chunk), piece, 0.0)
            return partial + piece.astype(jnp.float32)

        partial = jax.lax.fori_loop(
            0, n_chunks, chunk_body,
            jnp.zeros((batch * channels, chunk), jnp.float32))

    acc_ref[...] += partial

    @pl.when(t == pl.num_programs(0) - 1)
    def _finalize():
        # Single cross-lane reduce: spatial sum -> global average pool, [B*C, 1].
        pooled = jnp.sum(acc_ref[...], axis=1, keepdims=True) * inv_hw
        ws = ws_ref[...]                                   # [C, 1280] f32
        bs = bs_ref[...]                                   # [1, 1280] f32
        # Synthetic backbone: relu(pool(x) @ Ws + bs) as C broadcast-FMAs (VPU).
        for b in range(batch):
            fb = bs
            for c in range(channels):
                r = b * channels + c
                fb = fb + pooled[r:r + 1, :] * ws[c:c + 1, :]
            feats_ref[pl.ds(b, 1), :] = jnp.maximum(fb, 0.0).astype(feats_ref.dtype)
        # Projection: bf16 x bf16 MXU matmul, f32 accumulation.
        proj = jnp.dot(feats_ref[...], wp_ref[...],
                       preferred_element_type=jnp.float32) + bp_ref[...]
        o_ref[...] = proj.astype(o_ref.dtype)


def _vmem_limit_bytes():
    cap = 128 * 1024 * 1024
    try:
        info = pltpu.get_tpu_info()
        cap = int(getattr(info, "vmem_capacity_bytes", cap))
    except Exception:
        pass
    # ~100 MiB on 128-MiB parts (v5e/v6e), ~48 MiB on v7x's 64-MiB VMEM.
    return int(min(cap * 3 // 4, 100 * 1024 * 1024))


def _auto_spatial_tile(bc, hw, block_bytes):
    """Largest multiple-of-128 spatial tile whose [B*C, tile] f32 block fits block_bytes."""
    if hw <= _LANE:
        return hw
    t = block_bytes // (bc * 4)
    t = (min(t, hw) // _LANE) * _LANE
    return max(_LANE, int(t))


def efficientnet_with_projection(x, w_stem, b_stem, w_proj, b_proj, spatial_tile=None):
    """x: [B, C, H, W] (NCHW, like PyTorch).  Returns [B, OUTPUT_DIM] f32.

    w_stem: [C, 1280] f32, b_stem: [1, 1280] f32 (synthetic backbone),
    w_proj: [1280, 1024] bf16 (pre-cast, PyTorch weight transposed),
    b_proj: [1, 1024] f32.
    """
    B, C, H, W = x.shape
    HW = H * W
    BC = B * C
    assert w_stem.shape == (C, IN_FEATURES), w_stem.shape
    assert w_proj.shape == (IN_FEATURES, OUTPUT_DIM), w_proj.shape

    x2 = x.reshape(BC, HW)                       # contiguous reshape, no transpose

    # Hot path expects pre-cast / pre-reshaped params (hoisted out of the call
    # path by the caller); these branches only fire if the caller didn't.
    if w_proj.dtype != jnp.bfloat16:
        w_proj = w_proj.astype(jnp.bfloat16)
    if b_stem.ndim == 1:
        b_stem = b_stem.reshape(1, -1)
    if b_proj.ndim == 1:
        b_proj = b_proj.reshape(1, -1)

    vmem_limit = _vmem_limit_bytes()
    resident = (sum(int(a.size) * a.dtype.itemsize
                    for a in (w_stem, b_stem, w_proj, b_proj))
                + BC * _LANE * 4 + B * IN_FEATURES * 2 + B * OUTPUT_DIM * 4)
    # Double-buffered x blocks get what's left (2 MiB compiler slack), 1-8 MiB each.
    block_budget = int(max(1 << 20,
                           min(8 << 20, (vmem_limit - resident - (2 << 20)) // 2)))

    if spatial_tile is None:
        spatial_tile = _auto_spatial_tile(BC, HW, block_budget)
    assert spatial_tile % _LANE == 0 or spatial_tile == HW, (spatial_tile, HW)
    chunk = _LANE if spatial_tile >= _LANE else spatial_tile
    assert spatial_tile % chunk == 0, (spatial_tile, chunk)
    n_chunks = spatial_tile // chunk
    needs_mask = (HW % spatial_tile) != 0
    grid = (pl.cdiv(HW, spatial_tile),)

    kernel = functools.partial(
        _fwd_kernel, batch=B, channels=C, hw=HW, tile=spatial_tile, chunk=chunk,
        n_chunks=n_chunks, needs_mask=needs_mask, inv_hw=1.0 / float(HW))

    const = dict(pipeline_mode=pl.Buffered(1))   # resident blocks, never re-fetched

    cost = pl.CostEstimate(
        flops=2 * B * IN_FEATURES * OUTPUT_DIM + 2 * B * C * IN_FEATURES + BC * HW,
        transcendentals=0,
        bytes_accessed=(BC * HW * x.dtype.itemsize
                        + IN_FEATURES * OUTPUT_DIM * 2
                        + C * IN_FEATURES * 4
                        + B * OUTPUT_DIM * 4),
    )

    out = pl.pallas_call(
        kernel,
        out_shape=jax.ShapeDtypeStruct((B, OUTPUT_DIM), jnp.float32),
        grid=grid,
        in_specs=[
            pl.BlockSpec((BC, spatial_tile), lambda t: (0, t)),                   # x stream
            pl.BlockSpec((C, IN_FEATURES), lambda t: (0, 0), **const),            # w_stem
            pl.BlockSpec((1, IN_FEATURES), lambda t: (0, 0), **const),            # b_stem
            pl.BlockSpec((IN_FEATURES, OUTPUT_DIM), lambda t: (0, 0), **const),   # w_proj
            pl.BlockSpec((1, OUTPUT_DIM), lambda t: (0, 0), **const),             # b_proj
        ],
        out_specs=pl.BlockSpec((B, OUTPUT_DIM), lambda t: (0, 0)),
        scratch_shapes=[
            pltpu.VMEM((BC, chunk), jnp.float32),         # lane-resident spatial sum
            pltpu.VMEM((B, IN_FEATURES), jnp.bfloat16),   # backbone features
        ],
        compiler_params=pltpu.CompilerParams(
            dimension_semantics=("arbitrary",),            # spatial axis is a reduction
            vmem_limit_bytes=vmem_limit),
        cost_estimate=cost,
    )(x2, w_stem, b_stem, w_proj, b_proj)
    return out


def _reference(x, w_stem, b_stem, w_proj, b_proj):
    # Same math in f32: pool-then-conv == conv-then-pool for a 1x1 conv.
    B, C, H, W = x.shape
    pooled = x.reshape(B, C, H * W).mean(axis=2)                 # [B, C]
    feats = jnp.maximum(pooled @ w_stem + b_stem, 0.0)           # [B, 1280]
    return feats @ w_proj + b_proj                               # [B, 1024]


if __name__ == "__main__":
    key = jax.random.PRNGKey(0)
    kx1, kx2, k1, k2, k3, k4 = jax.random.split(key, 6)

    B, C = 2, 4
    # Deterministic parameter init (uniform +-1/sqrt(fan_in), PyTorch-style).
    stem_bound = 1.0 / float(C) ** 0.5
    w_stem = jax.random.uniform(k1, (C, IN_FEATURES), jnp.float32,
                                -stem_bound, stem_bound)
    b_stem = jax.random.uniform(k2, (IN_FEATURES,), jnp.float32,
                                -stem_bound, stem_bound)
    proj_bound = 1.0 / float(IN_FEATURES) ** 0.5
    # stored as [in, out] (PyTorch weight transposed) so the kernel does feats @ W
    w_proj = jax.random.uniform(k3, (IN_FEATURES, OUTPUT_DIM), jnp.float32,
                                -proj_bound, proj_bound)
    b_proj = jax.random.uniform(k4, (OUTPUT_DIM,), jnp.float32,
                                -proj_bound, proj_bound)

    # Hoisted, one-time parameter prep (kept off the per-call hot path).
    wp_bf16 = w_proj.astype(jnp.bfloat16)
    bs2 = b_stem.reshape(1, -1)
    bp2 = b_proj.reshape(1, -1)

    def check(x_img, spatial_tile=None):
        out = jax.block_until_ready(
            efficientnet_with_projection(x_img, w_stem, bs2, wp_bf16, bp2,
                                          spatial_tile=spatial_tile))
        ref = _reference(x_img, w_stem, b_stem, w_proj, b_proj)
        assert out.shape == (x_img.shape[0], OUTPUT_DIM), out.shape
        # Loose tolerance: projection runs with bf16 inputs (f32 accumulation).
        assert jnp.allclose(out, ref, rtol=2e-2, atol=2e-2), \
            float(jnp.max(jnp.abs(out - ref)))

    x16 = jax.random.normal(kx1, (B, C, 16, 16), jnp.float32)
    x15 = jax.random.normal(kx2, (B, C, 15, 15), jnp.float32)

    # 16x16 image, forced 128-wide tiles: 2 grid steps (init/accumulate/finalize).
    check(x16, spatial_tile=128)
    # Same image, auto tile (256): single grid step, 2 lane-chunks per step.
    check(x16)
    # 15x15 image (H*W = 225, not a multiple of 128): masked ragged last tile.
    check(x15, spatial_tile=128)

    print("KERNEL_OK")
</pallas_src>

<mosaic_0001>
module attributes {stable_mosaic.version = 11 : i64} {
  func.func @_fwd_kernel(%arg0: i32, %arg1: memref<8x128xf32, #tpu.memory_space<vmem>>, %arg2: memref<4x1280xf32, #tpu.memory_space<vmem>>, %arg3: memref<1x1280xf32, #tpu.memory_space<vmem>>, %arg4: memref<1280x1024xbf16, #tpu.memory_space<vmem>>, %arg5: memref<1x1024xf32, #tpu.memory_space<vmem>>, %arg6: memref<2x1024xf32, #tpu.memory_space<vmem>>, %arg7: memref<8x128xf32, #tpu.memory_space<vmem>>, %arg8: memref<2x1280xbf16, #tpu.memory_space<vmem>>) attributes {dimension_semantics = [#tpu.dimension_semantics<arbitrary>], iteration_bounds = array<i64: 2>, scalar_prefetch = 0 : i64, scratch_operands = 2 : i64, tpu.core_type = #tpu.core_type<tc>, window_params = [{transform_indices = @transform_0, window_bounds = array<i64: 8, 128>}, {pipeline_mode = #tpu.pipeline_mode<synchronous>, transform_indices = @transform_1, window_bounds = array<i64: 4, 1280>}, {pipeline_mode = #tpu.pipeline_mode<synchronous>, transform_indices = @transform_2, window_bounds = array<i64: 1, 1280>}, {pipeline_mode = #tpu.pipeline_mode<synchronous>, transform_indices = @transform_3, window_bounds = array<i64: 1280, 1024>}, {pipeline_mode = #tpu.pipeline_mode<synchronous>, transform_indices = @transform_4, window_bounds = array<i64: 1, 1024>}, {pipeline_mode = #tpu.pipeline_mode<synchronous>, transform_indices = @transform_5, window_bounds = array<i64: 2, 1024>}]} {
    %c0_i32 = arith.constant 0 : i32
    %0 = arith.cmpi eq, %arg0, %c0_i32 : i32
    %1 = arith.extui %0 : i1 to i32
    %c0_i32_0 = arith.constant 0 : i32
    %2 = arith.cmpi ne, %1, %c0_i32_0 : i32
    scf.if %2 {
      %cst = arith.constant 0.000000e+00 : f32
      %10 = vector.broadcast %cst : f32 to vector<8x128xf32>
      %c0_7 = arith.constant 0 : index
      %c0_8 = arith.constant 0 : index
      %11 = vector.load %arg7[%c0_7, %c0_8] : memref<8x128xf32, #tpu.memory_space<vmem>>, vector<8x128xf32>
      tpu.vector_store %arg7[%c0_7, %c0_8], %10 {strides = array<i32>} : memref<8x128xf32, #tpu.memory_space<vmem>>, vector<8x128xf32>,
    } else {
    }
    %c0 = arith.constant 0 : index
    %c0_1 = arith.constant 0 : index
    %3 = vector.load %arg1[%c0, %c0_1] : memref<8x128xf32, #tpu.memory_space<vmem>>, vector<8x128xf32>
    %c0_2 = arith.constant 0 : index
    %c0_3 = arith.constant 0 : index
    %4 = vector.load %arg7[%c0_2, %c0_3] : memref<8x128xf32, #tpu.memory_space<vmem>>, vector<8x128xf32>
    %5 = arith.addf %4, %3 : vector<8x128xf32>
    %c0_4 = arith.constant 0 : index
    %c0_5 = arith.constant 0 : index
    %6 = vector.load %arg7[%c0_4, %c0_5] : memref<8x128xf32, #tpu.memory_space<vmem>>, vector<8x128xf32>
    tpu.vector_store %arg7[%c0_4, %c0_5], %5 {strides = array<i32>} : memref<8x128xf32, #tpu.memory_space<vmem>>, vector<8x128xf32>,
    %c1_i32 = arith.constant 1 : i32
    %7 = arith.cmpi eq, %arg0, %c1_i32 : i32
    %8 = arith.extui %7 : i1 to i32
    %c0_i32_6 = arith.constant 0 : i32
    %9 = arith.cmpi ne, %8, %c0_i32_6 : i32
    scf.if %9 {
      %c0_7 = arith.constant 0 : index
      %c0_8 = arith.constant 0 : index
      %10 = vector.load %arg7[%c0_7, %c0_8] : memref<8x128xf32, #tpu.memory_space<vmem>>, vector<8x128xf32>
      %cst = arith.constant dense<0.000000e+00> : vector<8xf32>
      %11 = vector.multi_reduction <add>, %10, %cst [1] : vector<8x128xf32> to vector<8xf32>
      %12 = vector.shape_cast %11 : vector<8xf32> to vector<8x1xf32>
      %cst_9 = arith.constant 3.906250e-03 : f32
      %13 = vector.broadcast %cst_9 : f32 to vector<8x1xf32>
      %14 = arith.mulf %12, %13 : vector<8x1xf32>
      %c0_10 = arith.constant 0 : index
      %c0_11 = arith.constant 0 : index
      %15 = vector.load %arg2[%c0_10, %c0_11] : memref<4x1280xf32, #tpu.memory_space<vmem>>, vector<4x1280xf32>
      %c0_12 = arith.constant 0 : index
      %c0_13 = arith.constant 0 : index
      %16 = vector.load %arg3[%c0_12, %c0_13] : memref<1x1280xf32, #tpu.memory_space<vmem>>, vector<1x1280xf32>
      %17 = vector.extract_strided_slice %14 {offsets = [0, 0], sizes = [1, 1], strides = [1, 1]} : vector<8x1xf32> to vector<1x1xf32>
      %18 = vector.extract_strided_slice %15 {offsets = [0, 0], sizes = [1, 1280], strides = [1, 1]} : vector<4x1280xf32> to vector<1x1280xf32>
      %19 = vector.broadcast %17 : vector<1x1xf32> to vector<1x1280xf32>
      %20 = arith.mulf %19, %18 : vector<1x1280xf32>
      %21 = arith.addf %16, %20 : vector<1x1280xf32>
      %22 = vector.extract_strided_slice %14 {offsets = [1, 0], sizes = [1, 1], strides = [1, 1]} : vector<8x1xf32> to vector<1x1xf32>
      %23 = vector.extract_strided_slice %15 {offsets = [1, 0], sizes = [1, 1280], strides = [1, 1]} : vector<4x1280xf32> to vector<1x1280xf32>
      %24 = vector.broadcast %22 : vector<1x1xf32> to vector<1x1280xf32>
      %25 = arith.mulf %24, %23 : vector<1x1280xf32>
      %26 = arith.addf %21, %25 : vector<1x1280xf32>
      %27 = vector.extract_strided_slice %14 {offsets = [2, 0], sizes = [1, 1], strides = [1, 1]} : vector<8x1xf32> to vector<1x1xf32>
      %28 = vector.extract_strided_slice %15 {offsets = [2, 0], sizes = [1, 1280], strides = [1, 1]} : vector<4x1280xf32> to vector<1x1280xf32>
      %29 = vector.broadcast %27 : vector<1x1xf32> to vector<1x1280xf32>
      %30 = arith.mulf %29, %28 : vector<1x1280xf32>
      %31 = arith.addf %26, %30 : vector<1x1280xf32>
      %32 = vector.extract_strided_slice %14 {offsets = [3, 0], sizes = [1, 1], strides = [1, 1]} : vector<8x1xf32> to vector<1x1xf32>
      %33 = vector.extract_strided_slice %15 {offsets = [3, 0], sizes = [1, 1280], strides = [1, 1]} : vector<4x1280xf32> to vector<1x1280xf32>
      %34 = vector.broadcast %32 : vector<1x1xf32> to vector<1x1280xf32>
      %35 = arith.mulf %34, %33 : vector<1x1280xf32>
      %36 = arith.addf %31, %35 : vector<1x1280xf32>
      %cst_14 = arith.constant 0.000000e+00 : f32
      %37 = vector.broadcast %cst_14 : f32 to vector<1x1280xf32>
      %38 = arith.maximumf %36, %37 : vector<1x1280xf32>
      %39 = arith.truncf %38 : vector<1x1280xf32> to vector<1x1280xbf16>
      %c0_15 = arith.constant 0 : index
      %c0_16 = arith.constant 0 : index
      %40 = vector.load %arg8[%c0_15, %c0_16] : memref<2x1280xbf16, #tpu.memory_space<vmem>>, vector<1x1280xbf16>
      tpu.vector_store %arg8[%c0_15, %c0_16], %39 {strides = array<i32>} : memref<2x1280xbf16, #tpu.memory_space<vmem>>, vector<1x1280xbf16>,
      %41 = vector.extract_strided_slice %14 {offsets = [4, 0], sizes = [1, 1], strides = [1, 1]} : vector<8x1xf32> to vector<1x1xf32>
      %42 = vector.extract_strided_slice %15 {offsets = [0, 0], sizes = [1, 1280], strides = [1, 1]} : vector<4x1280xf32> to vector<1x1280xf32>
      %43 = vector.broadcast %41 : vector<1x1xf32> to vector<1x1280xf32>
      %44 = arith.mulf %43, %42 : vector<1x1280xf32>
      %45 = arith.addf %16, %44 : vector<1x1280xf32>
      %46 = vector.extract_strided_slice %14 {offsets = [5, 0], sizes = [1, 1], strides = [1, 1]} : vector<8x1xf32> to vector<1x1xf32>
      %47 = vector.extract_strided_slice %15 {offsets = [1, 0], sizes = [1, 1280], strides = [1, 1]} : vector<4x1280xf32> to vector<1x1280xf32>
      %48 = vector.broadcast %46 : vector<1x1xf32> to vector<1x1280xf32>
      %49 = arith.mulf %48, %47 : vector<1x1280xf32>
      %50 = arith.addf %45, %49 : vector<1x1280xf32>
      %51 = vector.extract_strided_slice %14 {offsets = [6, 0], sizes = [1, 1], strides = [1, 1]} : vector<8x1xf32> to vector<1x1xf32>
      %52 = vector.extract_strided_slice %15 {offsets = [2, 0], sizes = [1, 1280], strides = [1, 1]} : vector<4x1280xf32> to vector<1x1280xf32>
      %53 = vector.broadcast %51 : vector<1x1xf32> to vector<1x1280xf32>
      %54 = arith.mulf %53, %52 : vector<1x1280xf32>
      %55 = arith.addf %50, %54 : vector<1x1280xf32>
      %56 = vector.extract_strided_slice %14 {offsets = [7, 0], sizes = [1, 1], strides = [1, 1]} : vector<8x1xf32> to vector<1x1xf32>
      %57 = vector.extract_strided_slice %15 {offsets = [3, 0], sizes = [1, 1280], strides = [1, 1]} : vector<4x1280xf32> to vector<1x1280xf32>
      %58 = vector.broadcast %56 : vector<1x1xf32> to vector<1x1280xf32>
      %59 = arith.mulf %58, %57 : vector<1x1280xf32>
      %60 = arith.addf %55, %59 : vector<1x1280xf32>
      %cst_17 = arith.constant 0.000000e+00 : f32
      %61 = vector.broadcast %cst_17 : f32 to vector<1x1280xf32>
      %62 = arith.maximumf %60, %61 : vector<1x1280xf32>
      %63 = arith.truncf %62 : vector<1x1280xf32> to vector<1x1280xbf16>
      %c1 = arith.constant 1 : index
      %c0_18 = arith.constant 0 : index
      %64 = vector.load %arg8[%c1, %c0_18] : memref<2x1280xbf16, #tpu.memory_space<vmem>>, vector<1x1280xbf16>
      tpu.vector_store %arg8[%c1, %c0_18], %63 {strides = array<i32>} : memref<2x1280xbf16, #tpu.memory_space<vmem>>, vector<1x1280xbf16>,
      %c0_19 = arith.constant 0 : index
      %c0_20 = arith.constant 0 : index
      %65 = vector.load %arg8[%c0_19, %c0_20] : memref<2x1280xbf16, #tpu.memory_space<vmem>>, vector<2x1280xbf16>
      %c0_21 = arith.constant 0 : index
      %c0_22 = arith.constant 0 : index
      %66 = vector.load %arg4[%c0_21, %c0_22] : memref<1280x1024xbf16, #tpu.memory_space<vmem>>, vector<1280x1024xbf16>
      %cst_23 = arith.constant dense<0.000000e+00> : vector<2x1024xf32>
      %67 = tpu.matmul %65, %66, %cst_23 {dimension_numbers = #tpu.dot_dimension_numbers<[1], [0], [0], [1], [0, 0, 1, 1], [], []>} : vector<2x1280xbf16>, vector<1280x1024xbf16>, vector<2x1024xf32> -> vector<2x1024xf32>
      %c0_24 = arith.constant 0 : index
      %c0_25 = arith.constant 0 : index
      %68 = vector.load %arg5[%c0_24, %c0_25] : memref<1x1024xf32, #tpu.memory_space<vmem>>, vector<1x1024xf32>
      %69 = vector.broadcast %68 : vector<1x1024xf32> to vector<2x1024xf32>
      %70 = arith.addf %67, %69 : vector<2x1024xf32>
      %c0_26 = arith.constant 0 : index
      %c0_27 = arith.constant 0 : index
      %71 = vector.load %arg6[%c0_26, %c0_27] : memref<2x1024xf32, #tpu.memory_space<vmem>>, vector<2x1024xf32>
      tpu.vector_store %arg6[%c0_26, %c0_27], %70 {strides = array<i32>} : memref<2x1024xf32, #tpu.memory_space<vmem>>, vector<2x1024xf32>,
    } else {
    }
    return
  }
  func.func @transform_0(%arg0: i32) -> (i32, i32) {
    %c0_i32 = arith.constant 0 : i32
    %c0_i32_0 = arith.constant 0 : i32
    return %c0_i32, %arg0 : i32, i32
  }
  func.func @transform_1(%arg0: i32) -> (i32, i32) {
    %c0_i32 = arith.constant 0 : i32
    %c0_i32_0 = arith.constant 0 : i32
    %c0_i32_1 = arith.constant 0 : i32
    return %c0_i32, %c0_i32_0 : i32, i32
  }
  func.func @transform_2(%arg0: i32) -> (i32, i32) {
    %c0_i32 = arith.constant 0 : i32
    %c0_i32_0 = arith.constant 0 : i32
    %c0_i32_1 = arith.constant 0 : i32
    return %c0_i32, %c0_i32_0 : i32, i32
  }
  func.func @transform_3(%arg0: i32) -> (i32, i32) {
    %c0_i32 = arith.constant 0 : i32
    %c0_i32_0 = arith.constant 0 : i32
    %c0_i32_1 = arith.constant 0 : i32
    return %c0_i32, %c0_i32_0 : i32, i32
  }
  func.func @transform_4(%arg0: i32) -> (i32, i32) {
    %c0_i32 = arith.constant 0 : i32
    %c0_i32_0 = arith.constant 0 : i32
    %c0_i32_1 = arith.constant 0 : i32
    return %c0_i32, %c0_i32_0 : i32, i32
  }
  func.func @transform_5(%arg0: i32) -> (i32, i32) {
    %c0_i32 = arith.constant 0 : i32
    %c0_i32_0 = arith.constant 0 : i32
    %c0_i32_1 = arith.constant 0 : i32
    return %c0_i32, %c0_i32_0 : i32, i32
  }
}

</mosaic_0001>

<bundles_post_ra>
// kernel: tpu_custom_call.1
= control target key start
LH: loop header
LB: loop body
LE: loop exit
PB: predicated region body
PF: predicated region fallthrough
CT: control target
= control target key end

     0   :  { %10 = vsyncpa [#allocation5], 0  ;;  %s8426_s0 = inlined_call_operand.hbm [shape: f32[8,256], index: 0, kind: input, shape index: {}]   ;;  %s8427_s1 = inlined_call_operand.hbm [shape: f32[4,1280], index: 1, kind: input, shape index: {}]   ;;  %s8428_s2 = inlined_call_operand.hbm [shape: f32[1,1280], index: 2, kind: input, shape index: {}]   ;;  %s8429_s3 = inlined_call_operand.hbm [shape: bf16[1280,1024], index: 3, kind: input, shape index: {}]   ;;  %s8430_s4 = inlined_call_operand.hbm [shape: f32[1,1024], index: 4, kind: input, shape index: {}]   ;;  %s8431_s5 = inlined_call_operand.hbm [shape: f32[2,1024], index: 5, kind: output, shape index: {}]  }
   0x1   :  { %12 = vsyncpa [#allocation5 + $0x1], 0 }
   0x2   :  { %13 = vsyncpa [#allocation8], 0 }
   0x3   :  { %14 = vsyncpa [#allocation11], 0 }
   0x4   :  { %15 = vsyncpa [#allocation6], 0  ;;  %s7431_s18 = smov 0   ;;  %s7433_s19 = smov 0  }
   0x5   :  { %s7435_s20 = smov 0   ;;  %s7437_s21 = smov 0  }
   0x6 LB: > { %s7390_s22 = smov [#allocation7]   ;;  %s7452_s24 = sadd.s32 4294967295, %s7388_s21   ;;  %s7388_s21 = sphi %s7437_s21, %s8518_s21   ;;  %s7384_s20 = sphi %s7435_s20, %s8517_s20   ;;  %s7380_s19 = sphi %s7433_s19, %s8516_s19   ;;  %s7376_s18 = sphi %s7431_s18, %s8515_s18  }
   0x7   : > { %s170_s23 = sshll.u32 %s7390_s22, 4  ;;  %p6422_p0 = scmp.ge.s32.totalorder %s7388_s21, 1  ;;  %s171_s23 = int_to_ptr.vmem [resolvable:$true] %s170_s23 }
   0x8   : > { %p8432_p1 = scmp.eq.s32.totalorder %s7452_s24, 0  ;;  %p157_p2 = scmp.lt.s32.totalorder %s7388_s21, 3 }
   0x9   : > { %s7391_s26 = smov [#allocation10]   ;;  %s7392_s29 = smov [#allocation9]  }
   0xa   : > { %p7458_p4 = pnand %p6422_p0, %p157_p2  ;;  %s191_s27 = sshll.u32 %s7391_s26, 4  ;;  %s7464_s27 = int_to_ptr.vmem [resolvable:$true] %s191_s27 }
   0xb   : > { %s181_s30 = sshll.u32 %s7392_s29, 4  ;;  %s7197_s6 = scalar_lea.vmem %s171_s23, 640  ;;  %s7472_s30 = int_to_ptr.vmem [resolvable:$true] %s181_s30 }
   0xc   : > { %s8440_s25 = scalar_select %p7458_p4, 1, 0 }
   0xd   : > { %p7115_p5 = pneg %p7458_p4  ;;  %p7198_p8 = scmp.ne.s32.totalorder %s171_s23, %s7197_s6 }
   0xe   : > { %p7205_p11 = scmp.lt.s32.totalorder %s171_s23, %s171_s23  ;;  %p7206_p12 = scmp.lt.s32.totalorder %s7197_s6, %s7197_s6 }
   0xf   : > { %p7468_p6 = pnand %p7115_p5, %p8432_p1 }
  0x10   : > { %p7207_p13 = por %p7206_p12, %p7205_p11 }
  0x11   : > { %p7188_p7 = pneg %p7468_p6 }
  0x13   : > { %p7200_p9 = pnand %p7198_p8, %p7188_p7 }
  0x15   : > { %p7201_p10 = pneg %p7200_p9 }
  0x17   : > { %p7208_p0 = pnand %p7207_p13, %p7201_p10 }
  0x19   : > { %7211 = shalt.err (!%p7208_p0)
}
  0x1a   : > { %7118 = dma.hbm_to_vmem [thread:$0]  (!%p7468_p6), %s8427_s1, 640, %s171_s23, [#allocation8]  }
  0x1b   : > { %s7223_s9 = scalar_lea.vmem %s7464_s27, 81920  ;;  %p7231_p9 = scmp.lt.s32.totalorder %s7464_s27, %s7464_s27 }
  0x1c   : > { %p7224_p2 = scmp.ne.s32.totalorder %s7464_s27, %s7223_s9  ;;  %p7232_p10 = scmp.lt.s32.totalorder %s7223_s9, %s7223_s9 }
  0x1e   : > { %p7226_p5 = pnand %p7224_p2, %p7188_p7  ;;  %p7233_p11 = por %p7232_p10, %p7231_p9 }
  0x20   : > { %p7227_p8 = pneg %p7226_p5 }
  0x22   : > { %p7234_p12 = pnand %p7233_p11, %p7227_p8 }
  0x24   : > { %7237 = shalt.err (!%p7234_p12)
}
  0x25   : > { %s7393_s10 = smov 512   ;;  %s7394_s11 = smov 32  }
  0x26   : > { %7124 = dma.hbm_to_vmem [thread:$0]  (!%p7468_p6), %s8429_s3, 81920, %s7464_s27, [#allocation11], %s7393_s10, %s7393_s10, %s7394_s11  }
  0x27   : > { %s7249_s14 = scalar_lea.vmem %s7472_s30, 160  ;;  %p7257_p5 = scmp.lt.s32.totalorder %s7472_s30, %s7472_s30 }
  0x28   : > { %p7250_p13 = scmp.ne.s32.totalorder %s7472_s30, %s7249_s14  ;;  %p7258_p8 = scmp.lt.s32.totalorder %s7249_s14, %s7249_s14 }
  0x2a   : > { %p7252_p0 = pnand %p7250_p13, %p7188_p7  ;;  %p7259_p9 = por %p7258_p8, %p7257_p5 }
  0x2c   : > { %p7253_p2 = pneg %p7252_p0 }
  0x2e   : > { %p7260_p10 = pnand %p7259_p9, %p7253_p2 }
  0x30   : > { %7263 = shalt.err (!%p7260_p10)
}
  0x31   : > { %7121 = dma.hbm_to_vmem [thread:$0]  (!%p7468_p6), %s8428_s2, 160, %s7472_s30, [#allocation8]  }
  0x32   : > { %s7395_s17 = smov [#allocation12]  }
  0x33   : > { %s205_s22 = sshll.u32 %s7395_s17, 4  ;;  %s206_s22 = int_to_ptr.vmem [resolvable:$true] %s205_s22 }
  0x34   : > { %s7275_s23 = scalar_lea.vmem %s206_s22, 128  ;;  %p7283_p0 = scmp.lt.s32.totalorder %s206_s22, %s206_s22 }
  0x35   : > { %p7276_p11 = scmp.ne.s32.totalorder %s206_s22, %s7275_s23  ;;  %p7284_p2 = scmp.lt.s32.totalorder %s7275_s23, %s7275_s23 }
  0x37   : > { %p7278_p12 = pnand %p7276_p11, %p7188_p7  ;;  %p7285_p5 = por %p7284_p2, %p7283_p0 }
  0x39   : > { %p7279_p13 = pneg %p7278_p12 }
  0x3b   : > { %p7286_p8 = pnand %p7285_p5, %p7279_p13 }
  0x3d   : > { %7289 = shalt.err (!%p7286_p8)
}
  0x3e   : > { %7127 = dma.hbm_to_vmem [thread:$0]  (!%p7468_p6), %s8430_s4, 128, %s206_s22, [#allocation11]  }
  0x3f   : > { %s7519_s29 = sadd.s32 1, %s7388_s21   ;;  %s28_s28 = sadd.s32 1, %s7384_s20 }
  0x40   : > { %s25_s30 = ssub.s32 %s7388_s21, %s7519_s29  ;;  %p35_p7 = scmp.ne.s32.totalorder %s7384_s20, %s7380_s19 }
  0x41   : > { %p26_p9 = scmp.eq.s32.totalorder %s25_s30, 0  ;;  %p36_p10 = scmp.eq.s32.totalorder %s7388_s21, 0 }
  0x42   : > { %p41_p11 = scmp.ne.s32.totalorder %s7380_s19, %s7376_s18  ;;  %p7136_p12 = scmp.lt.s32.totalorder %s7388_s21, 2 }
  0x43   : > { %s7531_s6 = scalar_select %p26_p9, %s7384_s20, %s28_s28  }
  0x44   : > { %p37_p13 = por %p36_p10, %p35_p7  ;;  %p7535_p0 = por %p8432_p1, %p41_p11 }
  0x45   : > { %s216_s8 = sand.u32 1, %s7384_s20   ;;  %s6429_s9 = sshll.u32 %s7388_s21, 7 }
  0x46   : > { %s8442_s7 = scalar_select %p7535_p0, 1, 0 }
  0x47   : > { %s6428_s10 = sshll.u32 %s216_s8, 3  ;;  %s7544_s13 = scalar_lea.hbm %s8426_s0, %s6429_s9 }
  0x48   : > { %s220_s18 = scalar_lea.vmem [#allocation4], %s6428_s10  ;;  %p7546_p6 = pnand %p7136_p12, %p37_p13 }
  0x49   : > { %s227_s14 = sshll.u32 %s220_s18, 4  ;;  %s217_s16 = scalar_lea.sflag [#allocation5], %s216_s8  ;;  %s228_s14 = int_to_ptr.vmem [resolvable:$true] %s227_s14 }
  0x4a   : > { %s7290_s17 = scalar_lea.hbm %s7544_s13, 128  ;;  %p7292_p5 = pneg %p7546_p6 }
  0x4b   : > { %p7291_p2 = scmp.ne.s32.totalorder %s7544_s13, %s7290_s17  ;;  %s7295_s23 = scalar_lea.hbm %s8426_s0, 256 }
  0x4c   : > { %p7296_p9 = scmp.lt.s32.totalorder %s7544_s13, %s8426_s0  ;;  %p7297_p10 = scmp.lt.s32.totalorder %s7295_s23, %s7290_s17 }
  0x4d   : > { %p7293_p8 = pnand %p7292_p5, %p7291_p2 }
  0x4e   : > { %p7298_p11 = por %p7297_p10, %p7296_p9 }
  0x4f   : > { %p7294_p7 = pneg %p7293_p8 }
  0x51   : > { %p7299_p12 = pnand %p7298_p11, %p7294_p7 }
  0x53   : > { %7302 = shalt.err (!%p7299_p12)
}
  0x54   : > { %s7303_s28 = scalar_lea.vmem %s228_s14, 128  ;;  %s7396_s30 = smov [#allocation4]  }
  0x55   : > { %p7304_p13 = scmp.ne.s32.totalorder %s228_s14, %s7303_s28  ;;  %s7308_s8 = sshll.u32 %s7396_s30, 4  ;;  %s7309_s8 = int_to_ptr.vmem [resolvable:$false] %s7308_s8 }
  0x56   : > { %s7310_s9 = scalar_lea.vmem %s7309_s8, 256  ;;  %p7311_p2 = scmp.lt.s32.totalorder %s228_s14, %s7309_s8 }
  0x57   : > { %p7306_p3 = pnand %p7304_p13, %p7292_p5  ;;  %p7312_p8 = scmp.lt.s32.totalorder %s7310_s9, %s7303_s28 }
  0x59   : > { %p7307_p1 = pneg %p7306_p3  ;;  %p7313_p0 = por %p7312_p8, %p7311_p2 }
  0x5b   : > { %p7314_p4 = pnand %p7313_p0, %p7307_p1 }
  0x5d   : > { %7317 = shalt.err (!%p7314_p4)
}
  0x5e   : > { %7131 = dma.hbm_to_vmem [thread:$0]  (!%p7546_p6), %s7544_s13, 128, %s228_s14, %s217_s16  }
  0x5f   : > { %p8444_p7 = scmp.ne.s32.totalorder %s8440_s25, 0 }
  0x60   : > { %s238_s10 = sand.u32 (!%p8444_p7), 1, %s7380_s19   ;;  %p8445_p3 = scmp.ne.s32.totalorder (!%p8444_p7), %s8442_s7, 0 }
  0x61   : > { %236 = sbr.rel (%p8444_p7) target bundleno = 1145 (0x479), region = 40  ;;  %s6431_s11 = sshll.u32 (!%p8444_p7), %s238_s10, 3 }
  0x62   : > { %s239_s12 = scalar_lea.sflag (!%p8444_p7), [#allocation5], %s238_s10  ;;  %s242_s18 = scalar_lea.vmem (!%p8444_p7), [#allocation4], %s6431_s11 }
  0x66   : > { %7359 = dma.done.wait (%p8445_p3), %s239_s12, 128  }
  0x67   : > { %7361 = vsyncadd (%p8445_p3), %s239_s12, 4294967168  ;;  %p8446_p1 = scmp.eq.s32.totalorder %s7452_s24, 0 }
  0x69   : > { %7363 = dma.done.wait (%p8446_p1), [#allocation8], 800   ;;  %p8447_p4 = pmov %p8446_p1 }
  0x6a   : > { %p8448_p0 = pmov %p8446_p1 }
  0x6b   : > { %7365 = vsyncadd (%p8447_p4), [#allocation8], 4294966496 }
  0x6c   : > { %7367 = dma.done.wait (%p8448_p0), [#allocation11], 82048   ;;  %p8449_p6 = pmov %p8448_p0 }
  0x6d   : > { %p8450_p5 = scmp.ne.s32.totalorder %s7452_s24, 0 }
  0x6e   : > { %7369 = vsyncadd (%p8449_p6), [#allocation11], 4294885248 }
  0x6f   : > { %283 = sbr.rel (%p8450_p5) target bundleno = 118 (0x76), region = 64 }
  0x74   : > { %v7397_v0 = vmov 0.0  }
  0x75   : > { %284 = vst [vmem:[#allocation2] sm:$0xff] %v7397_v0 }
  0x76 PF: > { %v285_v1 = vld [vmem:[%s242_s18] sm:$0xff]  ;;  %p6437_p9 = scmp.ne.s32.totalorder %s7452_s24, 1 }
  0x7b   : > { %292 = sbr.rel (%p6437_p9) target bundleno = 1130 (0x46a), region = 68 }
  0x7c   : > { %v286_v2 = vld [vmem:[#allocation2] sm:$0xff] }
  0x7d   : > { %v287_v3 = vadd.f32 %v286_v2, %v285_v1 }
  0x7f   : > { %288 = vst [vmem:[#allocation2] sm:$0xff] %v287_v3 }
  0x80   : > { %v1551_v5 = vld [vmem:[#allocation10 + $0x1c0] sm:$0xff]  ;;  %vm1005_vm0 = vcmask 1040384   ;;  %vm1006_vm1 = vsmask.f32 256  ;;  %vm1008_vm2 = vcmask 1041409   ;;  %vm1012_vm4 = vcmask 1042434  }
  0x81   : > { %v1555_v6 = vld [vmem:[#allocation10 + $0x1e0] sm:$0xff]  ;;  %vm1009_vm3 = vsmask.f32 1280  ;;  %vm1013_vm5 = vsmask.f32 2304  ;;  %vm8437_vm8 = vcmask 1043459   ;;  %vm7929_vm10 = vmand %vm1005_vm0, %vm1006_vm1 }
  0x82   : > { %v6506_v7 = vcombine.high %v1551_v5, %v1555_v6  ;;  %v6505_v8 = vcombine.low %v1551_v5, %v1555_v6  ;;  %v1679_v9 = vld [vmem:[#allocation10 + $0x5c0] sm:$0xff]  ;;  %vm1464_vm6 = vsmask.f32 7938  ;;  %vm1466_vm7 = vsmask.f32 7942  ;;  %vm7936_vm11 = vmand %vm1008_vm2, %vm1009_vm3 }
  0x83   : > { %v1683_v10 = vld [vmem:[#allocation10 + $0x5e0] sm:$0xff]  ;;  %vm1017_vm9 = vsmask.f32 3328  ;;  %vm1469_vm12 = vsmask.f32 7946  ;;  %vm8438_vm13 = vcmask 1044484   ;;  %vm8436_vm15 = vmor %vm7936_vm11, %vm7929_vm10 }
  0x84   : > { %v1543_v11 = vld [vmem:[#allocation10 + $0x180] sm:$0xff]  ;;  %v6634_v12 = vcombine.high %v1679_v9, %v1683_v10  ;;  %v6633_v13 = vcombine.low %v1679_v9, %v1683_v10  ;;  %5460 = vmatprep.subr.bf16.mxu0 %v6506_v7  ;;  %vm1021_vm14 = vsmask.f32 4352  ;;  %vm1014_vm1 = vmand %vm1012_vm4, %vm1013_vm5 }
  0x85   : > { %v1547_v14 = vld [vmem:[#allocation10 + $0x1a0] sm:$0xff]  ;;  %5461 = vmatpush1.bf16.msra.mxu0 %v6505_v8  ;;  %vm7968_vm3 = vmand %vm1005_vm0, %vm1464_vm6 }
  0x86   : > { %v293_v4 = vld [vmem:[#allocation2] sm:$0xff]  ;;  %v1671_v15 = vld [vmem:[#allocation10 + $0x580] sm:$0xff]  ;;  %v6498_v17 = vcombine.high %v1543_v11, %v1547_v14  ;;  %5501 = vmatprep.subr.bf16.mxu1 %v6634_v12  ;;  %v6497_v22 = vcombine.low %v1543_v11, %v1547_v14  ;;  %vm7977_vm5 = vmand %vm1008_vm2, %vm1466_vm7 }
  0x87   : > { %294 = vadd.xlane.f32.xlu0 %v293_v4  ;;  %v1675_v16 = vld [vmem:[#allocation10 + $0x5a0] sm:$0xff]  ;;  %5502 = vmatpush1.bf16.msra.mxu1 %v6633_v13  ;;  %vm7988_vm0 = vmor %vm1014_vm1, %vm8436_vm15  ;;  %vm1475_vm15 = vsmask.f32 7954 }
  0x88   : > { %v6626_v18 = vcombine.high %v1671_v15, %v1675_v16  ;;  %v1535_v19 = vld [vmem:[#allocation10 + $0x140] sm:$0xff]  ;;  %5462 = vmatprep.subr.bf16.mxu0 %v6498_v17  ;;  %v6625_v24 = vcombine.low %v1671_v15, %v1675_v16  ;;  %vm7998_vm2 = vmand %vm8437_vm8, %vm1017_vm9  ;;  %vm1472_vm8 = vsmask.f32 7950 }
  0x89   : > { %v1539_v20 = vld [vmem:[#allocation10 + $0x160] sm:$0xff]  ;;  %5463 = vmatpush1.bf16.msra.mxu0 %v6497_v22  ;;  %vm8439_vm1 = vmor %vm7977_vm5, %vm7968_vm3 }
  0x8a   : > { %v1663_v21 = vld [vmem:[#allocation10 + $0x540] sm:$0xff]  ;;  %v6490_v25 = vcombine.high %v1535_v19, %v1539_v20  ;;  %5503 = vmatprep.subr.bf16.mxu1 %v6626_v18  ;;  %v6489_v31 = vcombine.low %v1535_v19, %v1539_v20  ;;  %vm8013_vm6 = vmand %vm1012_vm4, %vm1469_vm12  ;;  %vm8474_vm4 = vcmask 1043459  }
  0x8b   : > { %v1667_v23 = vld [vmem:[#allocation10 + $0x560] sm:$0xff]  ;;  %5504 = vmatpush1.bf16.msra.mxu1 %v6625_v24  ;;  %vm1019_vm7 = vmor %vm7998_vm2, %vm7988_vm0  ;;  %vm8483_vm0 = vsmask.f32 5376  ;;  %vm8484_vm2 = vcmask 1045509  }
  0x8c   : > { %v6618_v26 = vcombine.high %v1663_v21, %v1667_v23  ;;  %v1527_v27 = vld [vmem:[#allocation10 + $0x100] sm:$0xff]  ;;  %5464 = vmatprep.subr.bf16.mxu0 %v6490_v25  ;;  %v6617_v32 = vcombine.low %v1663_v21, %v1667_v23  ;;  %vm8027_vm9 = vmand %vm8438_vm13, %vm1021_vm14  ;;  %vm1478_vm13 = vsmask.f32 7958 }
  0x8d   : > { %v1531_v28 = vld [vmem:[#allocation10 + $0x120] sm:$0xff]  ;;  %5465 = vmatpush1.bf16.msra.mxu0 %v6489_v31  ;;  %vm8044_vm14 = vmor %vm8013_vm6, %vm8439_vm1 }
  0x8e   : > { %v1655_v29 = vld [vmem:[#allocation10 + $0x500] sm:$0xff]  ;;  %v6482_v33 = vcombine.high %v1527_v27, %v1531_v28  ;;  %5505 = vmatprep.subr.bf16.mxu1 %v6618_v26  ;;  %v6481_v39 = vcombine.low %v1527_v27, %v1531_v28  ;;  %vm8054_vm12 = vmand %vm8474_vm4, %vm1472_vm8  ;;  %vm8487_vm4 = vcmask 1044484  }
  0x8f   : > { %v1659_v30 = vld [vmem:[#allocation10 + $0x520] sm:$0xff]  ;;  %5506 = vmatpush1.bf16.msra.mxu1 %v6617_v32  ;;  %vm8073_vm8 = vmor %vm8027_vm9, %vm1019_vm7 }
  0x90   : > { %v6610_v34 = vcombine.high %v1655_v29, %v1659_v30  ;;  %v1519_v35 = vld [vmem:[#allocation10 + $0xc0] sm:$0xff]  ;;  %5466 = vmatprep.subr.bf16.mxu0 %v6482_v33  ;;  %v6609_v40 = vcombine.low %v1655_v29, %v1659_v30  ;;  %vm8090_vm7 = vmand %vm8484_vm2, %vm8483_vm0 }
  0x91   : > { %v1523_v36 = vld [vmem:[#allocation10 + $0xe0] sm:$0xff]  ;;  %5467 = vmatpush1.bf16.msra.mxu0 %v6481_v39  ;;  %vm1474_vm9 = vmor %vm8054_vm12, %vm8044_vm14  ;;  %vm8501_vm14 = vsmask.f32 7424 }
  0x92   : > { %v1647_v37 = vld [vmem:[#allocation10 + $0x4c0] sm:$0xff]  ;;  %v6474_v41 = vcombine.high %v1519_v35, %v1523_v36  ;;  %5507 = vmatprep.subr.bf16.mxu1 %v6610_v34  ;;  %v6473_v47 = vcombine.low %v1519_v35, %v1523_v36  ;;  %vm8107_vm0 = vmand %vm8487_vm4, %vm1475_vm15  ;;  %vm8490_vm15 = vsmask.f32 6400  ;;  %vm8491_vm4 = vcmask 1046534  }
  0x93   : > { %v1651_v38 = vld [vmem:[#allocation10 + $0x4e0] sm:$0xff]  ;;  %5508 = vmatpush1.bf16.msra.mxu1 %v6609_v40  ;;  %vm1027_vm2 = vmor %vm8090_vm7, %vm8073_vm8  ;;  %vm8506_vm7 = vcmask 1046534  }
  0x94   : > { %v6602_v42 = vcombine.high %v1647_v37, %v1651_v38  ;;  %v1511_v43 = vld [vmem:[#allocation10 + $0x80] sm:$0xff]  ;;  %5468 = vmatprep.subr.bf16.mxu0 %v6474_v41  ;;  %v6601_v48 = vcombine.low %v1647_v37, %v1651_v38  ;;  %vm8122_vm6 = vmand %vm8491_vm4, %vm8490_vm15  ;;  %vm8496_vm4 = vcmask 1045509  }
  0x95   : > { %v1515_v44 = vld [vmem:[#allocation10 + $0xa0] sm:$0xff]  ;;  %5469 = vmatpush1.bf16.msra.mxu0 %v6473_v47  ;;  %vm8141_vm15 = vmor %vm8107_vm0, %vm1474_vm9 }
  0x96   : > { %v1639_v45 = vld [vmem:[#allocation10 + $0x480] sm:$0xff]  ;;  %v6466_v49 = vcombine.high %v1511_v43, %v1515_v44  ;;  %5509 = vmatprep.subr.bf16.mxu1 %v6602_v42  ;;  %v6465_v55 = vcombine.low %v1511_v43, %v1515_v44  ;;  %vm8151_vm1 = vmand %vm8496_vm4, %vm1478_vm13  ;;  %vm8502_vm13 = vcmask 1047559  }
  0x97   : > { %v1643_v46 = vld [vmem:[#allocation10 + $0x4a0] sm:$0xff]  ;;  %5510 = vmatpush1.bf16.msra.mxu1 %v6601_v48  ;;  %vm8162_vm12 = vmor %vm8122_vm6, %vm1027_vm2  ;;  %vm8505_vm6 = vsmask.f32 7962 }
  0x98   : > { %v6594_v50 = vcombine.high %v1639_v45, %v1643_v46  ;;  %v1503_v51 = vld [vmem:[#allocation10 + $0x40] sm:$0xff]  ;;  %5470 = vmatprep.subr.bf16.mxu0 %v6466_v49  ;;  %v6593_v56 = vcombine.low %v1639_v45, %v1643_v46  ;;  %vm8168_vm9 = vmand %vm8502_vm13, %vm8501_vm14  ;;  %vm8509_vm14 = vsmask.f32 7966 }
  0x99   : > { %v1507_v52 = vld [vmem:[#allocation10 + $0x60] sm:$0xff]  ;;  %5471 = vmatpush1.bf16.msra.mxu0 %v6465_v55  ;;  %vm1480_vm8 = vmor %vm8151_vm1, %vm8141_vm15 }
  0x9a   : > { %v1631_v53 = vld [vmem:[#allocation10 + $0x440] sm:$0xff]  ;;  %v6458_v57 = vcombine.high %v1503_v51, %v1507_v52  ;;  %5511 = vmatprep.subr.bf16.mxu1 %v6594_v50  ;;  %v6457_v63 = vcombine.low %v1503_v51, %v1507_v52  ;;  %vm1482_vm0 = vmand %vm8506_vm7, %vm8505_vm6 }
  0x9b   : > { %v1635_v54 = vld [vmem:[#allocation10 + $0x460] sm:$0xff]  ;;  %5512 = vmatpush1.bf16.msra.mxu1 %v6593_v56  ;;  %vm1035_vm2 = vmor %vm8168_vm9, %vm8162_vm12 }
  0x9c   : > { %v6586_v58 = vcombine.high %v1631_v53, %v1635_v54  ;;  %v1495_v59 = vld [vmem:[#allocation10] sm:$0xff]  ;;  %5472 = vmatprep.subr.bf16.mxu0 %v6458_v57  ;;  %v6585_v0 = vcombine.low %v1631_v53, %v1635_v54  ;;  %vm8206_vm4 = vmor %vm1482_vm0, %vm1480_vm8 }
  0x9d   : > { %v1499_v60 = vld [vmem:[#allocation10 + $0x20] sm:$0xff]  ;;  %5473 = vmatpush1.bf16.msra.mxu0 %v6457_v63  ;;  %vm1485_vm6 = vmand %vm8502_vm13, %vm8509_vm14 }
  0x9e   : > { %v1623_v61 = vld [vmem:[#allocation10 + $0x400] sm:$0xff]  ;;  %v6450_v1 = vcombine.high %v1495_v59, %v1499_v60  ;;  %5513 = vmatprep.subr.bf16.mxu1 %v6586_v58  ;;  %v6449_v7 = vcombine.low %v1495_v59, %v1499_v60  ;;  %vm1486_vm1 = vmor %vm1485_vm6, %vm8206_vm4 }
  0x9f   : > { %v1627_v62 = vld [vmem:[#allocation10 + $0x420] sm:$0xff]  ;;  %5514 = vmatpush1.bf16.msra.mxu1 %v6585_v0  ;;  %vm8510_vm15 = vmor %vm7936_vm11, %vm7929_vm10 }
  0xa0   : > { %v6578_v2 = vcombine.high %v1623_v61, %v1627_v62  ;;  %v1615_v3 = vld [vmem:[#allocation10 + $0x3c0] sm:$0xff]  ;;  %5474 = vmatprep.subr.bf16.mxu0 %v6450_v1  ;;  %v6577_v8 = vcombine.low %v1623_v61, %v1627_v62  ;;  %vm8513_vm10 = vmor %vm7977_vm5, %vm7968_vm3 }
  0xa1   : > { %v1619_v4 = vld [vmem:[#allocation10 + $0x3e0] sm:$0xff]  ;;  %5475 = vmatpush1.bf16.msra.mxu0 %v6449_v7 }
  0xa2   : > { %v1743_v5 = vld [vmem:[#allocation10 + $0x7c0] sm:$0xff]  ;;  %v6570_v9 = vcombine.high %v1615_v3, %v1619_v4  ;;  %5515 = vmatprep.subr.bf16.mxu1 %v6578_v2  ;;  %v6569_v15 = vcombine.low %v1615_v3, %v1619_v4 }
  0xa3   : > { %v1747_v6 = vld [vmem:[#allocation10 + $0x7e0] sm:$0xff]  ;;  %5516 = vmatpush1.bf16.msra.mxu1 %v6577_v8 }
  0xa4   : > { %v6698_v10 = vcombine.high %v1743_v5, %v1747_v6  ;;  %v1607_v11 = vld [vmem:[#allocation10 + $0x380] sm:$0xff]  ;;  %5476 = vmatprep.subr.bf16.mxu0 %v6570_v9  ;;  %v6697_v16 = vcombine.low %v1743_v5, %v1747_v6 }
  0xa5   : > { %v1611_v12 = vld [vmem:[#allocation10 + $0x3a0] sm:$0xff]  ;;  %5477 = vmatpush2.bf16.msra.mxu0 %v6569_v15  ;;  %v7398_v15 = vmov 1966171168  }
  0xa6   : > { %v1735_v13 = vld [vmem:[#allocation10 + $0x780] sm:$0xff]  ;;  %v6562_v17 = vcombine.high %v1607_v11, %v1611_v12  ;;  %5517 = vmatprep.subr.bf16.mxu1 %v6698_v10  ;;  %v6561_v23 = vcombine.low %v1607_v11, %v1611_v12 }
  0xa7   : > { %v1739_v14 = vld [vmem:[#allocation10 + $0x7a0] sm:$0xff]  ;;  %5518 = vmatpush2.bf16.msra.mxu1 %v6697_v16  ;;  %v384_v16 = vunpack.c.l.s4 %v7398_v15 }
  0xa8   : > { %v6690_v18 = vcombine.high %v1735_v13, %v1739_v14  ;;  %v1599_v19 = vld [vmem:[#allocation10 + $0x340] sm:$0xff]  ;;  %5478 = vmatprep.subr.bf16.mxu0 %v6562_v17  ;;  %v6689_v24 = vcombine.low %v1735_v13, %v1739_v14  ;;  %v309_v13 = vlaneseq }
  0xa9   : > { %v1603_v20 = vld [vmem:[#allocation10 + $0x360] sm:$0xff]  ;;  %5479 = vmatpush2.bf16.msra.mxu0 %v6561_v23 }
  0xaa   : > { %v1727_v21 = vld [vmem:[#allocation10 + $0x740] sm:$0xff]  ;;  %v6554_v25 = vcombine.high %v1599_v19, %v1603_v20  ;;  %5519 = vmatprep.subr.bf16.mxu1 %v6690_v18  ;;  %v6553_v31 = vcombine.low %v1599_v19, %v1603_v20  ;;  %v7598_v14 = vshrl.u32 %v309_v13, 7  ;;  %v7606_v19 = vld [vmem:[#allocation7] sm:$0xff]  ;;  %v7608_v20 = vld [vmem:[#allocation7 + $0x8] sm:$0xff] }
  0xab   : > { %v1731_v22 = vld [vmem:[#allocation10 + $0x760] sm:$0xff]  ;;  %5520 = vmatpush2.bf16.msra.mxu1 %v6689_v24 }
  0xac   : > { %v6682_v26 = vcombine.high %v1727_v21, %v1731_v22  ;;  %v1591_v27 = vld [vmem:[#allocation10 + $0x300] sm:$0xff]  ;;  %5480 = vmatprep.subr.bf16.mxu0 %v6554_v25  ;;  %v6681_v32 = vcombine.low %v1727_v21, %v1731_v22  ;;  %8451 = vst [vmem:[#allocation18_spill] sm:$0xff] %v7598_v14  ;;  %v7601_v17 = vsub.s32 0, %v7598_v14  ;;  %v7604_v18 = vsub.s32 4, %v7598_v14 }
  0xad   : > { %v1595_v28 = vld [vmem:[#allocation10 + $0x320] sm:$0xff]  ;;  %5481 = vmatpush2.bf16.msra.mxu0 %v6553_v31  ;;  %v385_v22 = vunpack.c.0.s8 %v384_v16  ;;  %v7613_v23 = vsub.s32 1, %v7598_v14  ;;  %v7616_v24 = vsub.s32 5, %v7598_v14  ;;  %v7631_v31 = vsub.s32 2, %v7598_v14 }
  0xae   : > { %v1719_v29 = vld [vmem:[#allocation10 + $0x700] sm:$0xff]  ;;  %v6546_v33 = vcombine.high %v1591_v27, %v1595_v28  ;;  %5521 = vmatprep.subr.bf16.mxu1 %v6682_v26  ;;  %v6545_v39 = vcombine.low %v1591_v27, %v1595_v28  ;;  %v312_v25 = vrot.slane %v7606_v19, %v7601_v17  ;;  %v316_v26 = vrot.slane %v7606_v19, %v7604_v18 }
  0xaf   : > { %v1723_v30 = vld [vmem:[#allocation10 + $0x720] sm:$0xff]  ;;  %5522 = vmatpush2.bf16.msra.mxu1 %v6681_v32  ;;  %v320_v28 = vrot.slane %v7608_v20, %v7601_v17 }
  0xb0   : > { %v6674_v34 = vcombine.high %v1719_v29, %v1723_v30  ;;  %v1583_v35 = vld [vmem:[#allocation10 + $0x2c0] sm:$0xff]  ;;  %5482 = vmatprep.subr.bf16.mxu0 %v6546_v33  ;;  %v6673_v40 = vcombine.low %v1719_v29, %v1723_v30  ;;  %v324_v29 = vrot.slane %v7608_v20, %v7604_v18  ;;  %v7636_v33 = vsub.s32 %v385_v22, %v7598_v14 }
  0xb1   : > { %v1587_v36 = vld [vmem:[#allocation10 + $0x2e0] sm:$0xff]  ;;  %5483 = vmatpush2.bf16.msra.mxu0 %v6545_v39  ;;  %v7650_v39 = vsub.s32 3, %v7598_v14 }
  0xb2   : > { %v1711_v37 = vld [vmem:[#allocation10 + $0x6c0] sm:$0xff]  ;;  %v6538_v41 = vcombine.high %v1583_v35, %v1587_v36  ;;  %5523 = vmatprep.subr.bf16.mxu1 %v6674_v34  ;;  %v6537_v47 = vcombine.low %v1583_v35, %v1587_v36  ;;  %v450_v34 = vrot.slane %v7606_v19, %v7613_v23  ;;  %v7641_v35 = vsub.s32 6, %v7598_v14 }
  0xb3   : > { %v1715_v38 = vld [vmem:[#allocation10 + $0x6e0] sm:$0xff]  ;;  %5524 = vmatpush2.bf16.msra.mxu1 %v6673_v40  ;;  %v454_v36 = vrot.slane %v7606_v19, %v7616_v24 }
  0xb4   : > { %v6666_v42 = vcombine.high %v1711_v37, %v1715_v38  ;;  %v1575_v43 = vld [vmem:[#allocation10 + $0x280] sm:$0xff]  ;;  %5484 = vmatprep.subr.bf16.mxu0 %v6538_v41  ;;  %v6665_v48 = vcombine.low %v1711_v37, %v1715_v38  ;;  %v458_v37 = vrot.slane %v7608_v20, %v7613_v23  ;;  %v462_v38 = vrot.slane %v7608_v20, %v7616_v24 }
  0xb5   : > { %v1579_v44 = vld [vmem:[#allocation10 + $0x2a0] sm:$0xff]  ;;  %5485 = vmatpush2.bf16.msra.mxu0 %v6537_v47  ;;  %v589_v47 = vrot.slane %v7606_v19, %v7631_v31 }
  0xb6   : > { %v1703_v45 = vld [vmem:[#allocation10 + $0x680] sm:$0xff]  ;;  %v6530_v49 = vcombine.high %v1575_v43, %v1579_v44  ;;  %5525 = vmatprep.subr.bf16.mxu1 %v6666_v42  ;;  %v6529_v55 = vcombine.low %v1575_v43, %v1579_v44  ;;  %v7659_v43 = vsub.s32 7, %v7598_v14 }
  0xb7   : > { %v1707_v46 = vld [vmem:[#allocation10 + $0x6a0] sm:$0xff]  ;;  %5526 = vmatpush2.bf16.msra.mxu1 %v6665_v48  ;;  %v593_v48 = vrot.slane %v7606_v19, %v7641_v35 }
  0xb8   : > { %v6658_v50 = vcombine.high %v1703_v45, %v1707_v46  ;;  %v1567_v51 = vld [vmem:[#allocation10 + $0x240] sm:$0xff]  ;;  %5486 = vmatprep.subr.bf16.mxu0 %v6530_v49  ;;  %v6657_v56 = vcombine.low %v1703_v45, %v1707_v46  ;;  %v597_v49 = vrot.slane %v7608_v20, %v7631_v31 }
  0xb9   : > { %v1571_v52 = vld [vmem:[#allocation10 + $0x260] sm:$0xff]  ;;  %5487 = vmatpush2.bf16.msra.mxu0 %v6529_v55  ;;  %v728_v55 = vrot.slane %v7606_v19, %v7650_v39 }
  0xba   : > { %v1695_v53 = vld [vmem:[#allocation10 + $0x640] sm:$0xff]  ;;  %v6522_v57 = vcombine.high %v1567_v51, %v1571_v52  ;;  %5527 = vmatprep.subr.bf16.mxu1 %v6658_v50  ;;  %v6521_v63 = vcombine.low %v1567_v51, %v1571_v52  ;;  %v601_v50 = vrot.slane %v7608_v20, %v7641_v35 }
  0xbb   : > { %v1699_v54 = vld [vmem:[#allocation10 + $0x660] sm:$0xff]  ;;  %5528 = vmatpush2.bf16.msra.mxu1 %v6657_v56  ;;  %v7685_v56 = vld [vmem:[#allocation7 + $0x20] sm:$0xff] }
  0xbc   : > { %v6650_v58 = vcombine.high %v1695_v53, %v1699_v54  ;;  %v1559_v59 = vld [vmem:[#allocation10 + $0x200] sm:$0xff]  ;;  %5488 = vmatprep.subr.bf16.mxu0 %v6522_v57  ;;  %v6649_v0 = vcombine.low %v1695_v53, %v1699_v54 }
  0xbd   : > { %v1563_v60 = vld [vmem:[#allocation10 + $0x220] sm:$0xff]  ;;  %5489 = vmatpush2.bf16.msra.mxu0 %v6521_v63  ;;  %v740_v63 = vrot.slane %v7608_v20, %v7659_v43 }
  0xbe   : > { %v1687_v61 = vld [vmem:[#allocation10 + $0x600] sm:$0xff]  ;;  %v6514_v1 = vcombine.high %v1559_v59, %v1563_v60  ;;  %5529 = vmatprep.subr.bf16.mxu1 %v6650_v58  ;;  %v6513_v3 = vcombine.low %v1559_v59, %v1563_v60  ;;  %v732_v58 = vrot.slane %v7606_v19, %v7659_v43  ;;  %v736_v59 = vrot.slane %v7608_v20, %v7650_v39 }
  0xbf   : > { %v1691_v62 = vld [vmem:[#allocation10 + $0x620] sm:$0xff]  ;;  %5530 = vmatpush2.bf16.msra.mxu1 %v6649_v0 }
  0xc0   : > { %v6642_v2 = vcombine.high %v1687_v61, %v1691_v62  ;;  %5490 = vmatprep.subr.bf16.mxu0 %v6514_v1  ;;  %v6641_v4 = vcombine.low %v1687_v61, %v1691_v62  ;;  %v7582_v5 = vld [vmem:[#allocation10 + $0x9c0] sm:$0xff] }
  0xc1   : > { %5491 = vmatpush2.bf16.msra.mxu0 %v6513_v3  ;;  %v7584_v6 = vld [vmem:[#allocation10 + $0x9e0] sm:$0xff] }
  0xc2   : > { %5531 = vmatprep.subr.bf16.mxu1 %v6642_v2  ;;  %v6762_v8 = vcombine.high %v7582_v5, %v7584_v6  ;;  %v7590_v9 = vld [vmem:[#allocation10 + $0xdc0] sm:$0xff] }
  0xc3   : > { %5532 = vmatpush2.bf16.msra.mxu1 %v6641_v4  ;;  %v7592_v10 = vld [vmem:[#allocation10 + $0xde0] sm:$0xff] }
  0xc4   : > { %5542 = vmatprep.subr.bf16.mxu0 %v6762_v8  ;;  %v6890_v12 = vcombine.high %v7590_v9, %v7592_v10  ;;  %v7610_v21 = vld [vmem:[#allocation7 + $0x10] sm:$0xff]  ;;  %v7622_v27 = vld [vmem:[#allocation7 + $0x18] sm:$0xff] }
  0xc5   : > { %v328_v30 = vrot.slane %v7610_v21, %v7601_v17  ;;  %v332_v32 = vrot.slane %v7610_v21, %v7604_v18  ;;  %v336_v40 = vrot.slane %v7622_v27, %v7601_v17  ;;  %v340_v41 = vrot.slane %v7622_v27, %v7604_v18 }
  0xc6   : > { %5583 = vmatprep.subr.bf16.mxu1 %v6890_v12  ;;  %v466_v42 = vrot.slane %v7610_v21, %v7613_v23  ;;  %v470_v44 = vrot.slane %v7610_v21, %v7616_v24  ;;  %v474_v45 = vrot.slane %v7622_v27, %v7613_v23  ;;  %v478_v46 = vrot.slane %v7622_v27, %v7616_v24 }
  0xc7   : > { %v605_v51 = vrot.slane %v7610_v21, %v7631_v31  ;;  %v609_v52 = vrot.slane %v7610_v21, %v7641_v35  ;;  %v613_v53 = vrot.slane %v7622_v27, %v7631_v31  ;;  %v617_v54 = vrot.slane %v7622_v27, %v7641_v35 }
  0xc8   : > { %v8452_v19 = vrot.slane %v7610_v21, %v7650_v39 }
 0x110   : > { %v295_v57 = vpop.xlane.xlu0 %294 }
 0x111   : > { %v7695_v62 = vmul.f32 0.00390625, %v295_v57 }
 0x113   : > { %v7712_v12 = vmul.f32 %v312_v25, %v7695_v62  ;;  %v7715_v13 = vmul.f32 %v316_v26, %v7695_v62  ;;  %v7718_v15 = vmul.f32 %v320_v28, %v7695_v62  ;;  %v7721_v16 = vmul.f32 %v324_v29, %v7695_v62 }
 0x114   : > { %v7724_v22 = vmul.f32 %v328_v30, %v7695_v62  ;;  %v7727_v57 = vmul.f32 %v332_v32, %v7695_v62  ;;  %v7730_v11 = vmul.f32 %v336_v40, %v7695_v62  ;;  %v7733_v25 = vmul.f32 %v340_v41, %v7695_v62 }
 0x115   : > { %v379_v26 = vcombine.low %v7712_v12, %v7715_v13  ;;  %v380_v28 = vcombine.low %v7718_v15, %v7721_v16  ;;  %v7740_v29 = vmul.f32 %v450_v34, %v7695_v62  ;;  %v7743_v30 = vmul.f32 %v454_v36, %v7695_v62 }
 0x116   : > { %v381_v32 = vcombine.low %v7724_v22, %v7727_v57  ;;  %v382_v40 = vcombine.low %v7730_v11, %v7733_v25  ;;  %v7750_v41 = vmul.f32 %v458_v37, %v7695_v62  ;;  %v7753_v7 = vmul.f32 %v462_v38, %v7695_v62 }
 0x117   : > { %v389_v8 = vrot.slane %v379_v26, %v7636_v33  ;;  %v396_v34 = vrot.slane %v380_v28, %v7636_v33  ;;  %v7758_v4 = vmul.f32 %v466_v42, %v7695_v62  ;;  %v7761_v36 = vmul.f32 %v470_v44, %v7695_v62 }
 0x118   : > { %v403_v3 = vrot.slane %v381_v32, %v7636_v33  ;;  %v410_v2 = vrot.slane %v382_v40, %v7636_v33  ;;  %v7766_v37 = vmul.f32 %v474_v45, %v7695_v62  ;;  %v7769_v38 = vmul.f32 %v478_v46, %v7695_v62 }
 0x119   : > { %v411_v1 = vcombine.low %v389_v8, %v396_v34  ;;  %v517_v26 = vcombine.low %v7740_v29, %v7743_v30  ;;  %v518_v42 = vcombine.low %v7750_v41, %v7753_v7  ;;  %v519_v44 = vcombine.low %v7758_v4, %v7761_v36 }
 0x11a   : > { %v412_v28 = vcombine.low %v403_v3, %v410_v2  ;;  %v520_v32 = vcombine.low %v7766_v37, %v7769_v38  ;;  %v7780_v45 = vmul.f32 %v589_v47, %v7695_v62  ;;  %v7783_v46 = vmul.f32 %v593_v48, %v7695_v62  ;;  %v7797_v48 = vld [vmem:[#allocation9] sm:$0xff] }
 0x11b   : > { %v419_v8 = vrot.slane %v411_v1, %v7636_v33  ;;  %v527_v40 = vrot.slane %v517_v26, %v7636_v33  ;;  %v534_v34 = vrot.slane %v518_v42, %v7636_v33  ;;  %v541_v61 = vrot.slane %v519_v44, %v7636_v33 }
 0x11c   : > { %v426_v0 = vrot.slane %v412_v28, %v7636_v33  ;;  %v548_v2 = vrot.slane %v520_v32, %v7636_v33  ;;  %v7792_v3 = vmul.f32 %v597_v49, %v7695_v62  ;;  %v7795_v47 = vmul.f32 %v601_v50, %v7695_v62 }
 0x11d   : > { %v549_v60 = vcombine.high %v527_v40, %v534_v34  ;;  %v7800_v1 = vmul.f32 %v605_v51, %v7695_v62  ;;  %v7803_v26 = vmul.f32 %v609_v52, %v7695_v62  ;;  %v7806_v42 = vmul.f32 %v613_v53, %v7695_v62 }
 0x11e   : > { %v427_v44 = vcombine.low %v419_v8, %v426_v0  ;;  %v550_v28 = vcombine.high %v541_v61, %v548_v2  ;;  %v7812_v49 = vmul.f32 %v617_v54, %v7695_v62  ;;  %v656_v50 = vcombine.low %v7780_v45, %v7783_v46 }
 0x11f   : > { %v557_v51 = vrot.slane %v549_v60, %v7636_v33  ;;  %v657_v52 = vcombine.low %v7792_v3, %v7795_v47  ;;  %v658_v53 = vcombine.low %v7800_v1, %v7803_v26  ;;  %v7825_v61 = vmul.f32 %v728_v55, %v7695_v62 }
 0x120   : > { %v445_v54 = vadd.f32 %v427_v44, %v7797_v48  ;;  %v564_v0 = vrot.slane %v550_v28, %v7636_v33  ;;  %v659_v32 = vcombine.low %v7806_v42, %v7812_v49  ;;  %v666_v60 = vrot.slane %v656_v50, %v7636_v33 }
 0x121   : > { %v673_v8 = vrot.slane %v657_v52, %v7636_v33  ;;  %v680_v40 = vrot.slane %v658_v53, %v7636_v33  ;;  %v7838_v34 = vmul.f32 %v732_v58, %v7695_v62  ;;  %v7844_v55 = vmul.f32 %v736_v59, %v7695_v62 }
 0x122   : > { %v565_v2 = vcombine.low %v557_v51, %v564_v0  ;;  %v687_v44 = vrot.slane %v659_v32, %v7636_v33  ;;  %v7851_v28 = vmul.f32 %v740_v63, %v7695_v62  ;;  %v7857_v58 = vmul.f32 %v8452_v19, %v7695_v62 }
 0x123   : > { %v688_v50 = vcombine.low %v666_v60, %v673_v8  ;;  %v8453_v59 = vrot.slane %v7610_v21, %v7659_v43  ;;  %v8454_v52 = vrot.slane %v7622_v27, %v7650_v39  ;;  %v8455_v63 = vrot.slane %v7622_v27, %v7659_v43 }
 0x124   : > { %v584_v0 = vadd.f32 %v565_v2, %v445_v54  ;;  %v689_v32 = vcombine.low %v680_v40, %v687_v44  ;;  %v795_v60 = vcombine.low %v7825_v61, %v7838_v34  ;;  %v796_v21 = vcombine.low %v7844_v55, %v7851_v28 }
 0x125   : > { %v7863_v51 = vmul.f32 %v8453_v59, %v7695_v62  ;;  %v7869_v20 = vmul.f32 %v8454_v52, %v7695_v62  ;;  %v7875_v53 = vmul.f32 %v8455_v63, %v7695_v62  ;;  %v696_v8 = vrot.slane %v688_v50, %v7636_v33 }
 0x126   : > { %v1042_v54 = vcombine.high %v7712_v12, %v7715_v13  ;;  %v703_v40 = vrot.slane %v689_v32, %v7636_v33  ;;  %v805_v2 = vrot.slane %v795_v60, %v7636_v33  ;;  %v812_v44 = vrot.slane %v796_v21, %v7636_v33 }
 0x127   : > { %v797_v19 = vcombine.low %v7857_v58, %v7863_v51  ;;  %v798_v27 = vcombine.low %v7869_v20, %v7875_v53  ;;  %v1043_v50 = vcombine.high %v7718_v15, %v7721_v16  ;;  %v1044_v63 = vcombine.high %v7724_v22, %v7727_v57 }
 0x128   : > { %v1045_v14 = vcombine.high %v7730_v11, %v7733_v25  ;;  %v704_v12 = vcombine.high %v696_v8, %v703_v40  ;;  %v827_v13 = vcombine.high %v805_v2, %v812_v44  ;;  %v1052_v32 = vrot.slane %v1042_v54, %v7636_v33 }
 0x129   : > { %v819_v59 = vrot.slane %v797_v19, %v7636_v33  ;;  %v826_v52 = vrot.slane %v798_v27, %v7636_v33  ;;  %v1059_v60 = vrot.slane %v1043_v50, %v7636_v33  ;;  %v1066_v15 = vrot.slane %v1044_v63, %v7636_v33 }
 0x12a   : > { %v1073_v16 = vrot.slane %v1045_v14, %v7636_v33  ;;  %v1110_v19 = vcombine.high %v7740_v29, %v7743_v30  ;;  %v723_v22 = vadd.f32 %v704_v12, %v584_v0  ;;  %v835_v57 = vrot.slane %v827_v13, %v7636_v33 }
 0x12b   : > { %v828_v21 = vcombine.high %v819_v59, %v826_v52  ;;  %v1074_v11 = vcombine.low %v1052_v32, %v1059_v60  ;;  %v1111_v25 = vcombine.high %v7750_v41, %v7753_v7  ;;  %v1112_v54 = vcombine.high %v7758_v4, %v7761_v36 }
 0x12c   : > { %v1075_v27 = vcombine.low %v1066_v15, %v1073_v16  ;;  %v1113_v14 = vcombine.high %v7766_v37, %v7769_v38  ;;  %v1120_v30 = vrot.slane %v1110_v19, %v7636_v33  ;;  %v1179_v7 = vcombine.high %v7780_v45, %v7783_v46 }
 0x12d   : > { %v842_v8 = vrot.slane %v828_v21, %v7636_v33  ;;  %v1082_v29 = vrot.slane %v1074_v11, %v7636_v33  ;;  %v1127_v0 = vrot.slane %v1111_v25, %v7636_v33  ;;  %v1134_v4 = vrot.slane %v1112_v54, %v7636_v33 }
 0x12e   : > { %v1089_v40 = vrot.slane %v1075_v27, %v7636_v33  ;;  %v1141_v36 = vrot.slane %v1113_v14, %v7636_v33  ;;  %v1180_v38 = vcombine.high %v7792_v3, %v7795_v47  ;;  %v1181_v2 = vcombine.high %v7800_v1, %v7803_v26 }
 0x12f   : > { %v843_v41 = vcombine.high %v835_v57, %v842_v8  ;;  %v1142_v37 = vcombine.high %v1120_v30, %v1127_v0  ;;  %v1182_v44 = vcombine.high %v7806_v42, %v7812_v49  ;;  %v1189_v52 = vrot.slane %v1179_v7, %v7636_v33  ;;  %v1759_v8 = vld [vmem:[#allocation10 + $0x840] sm:$0xff] }
 0x130   : > { %v1090_v50 = vcombine.low %v1082_v29, %v1089_v40  ;;  %v1143_v59 = vcombine.high %v1134_v4, %v1141_v36  ;;  %v1196_v47 = vrot.slane %v1180_v38, %v7636_v33  ;;  %v1203_v1 = vrot.slane %v1181_v2, %v7636_v33 }
 0x131   : > { %v863_v45 = vadd.f32 %v843_v41, %v723_v22  ;;  %v1210_v26 = vrot.slane %v1182_v44, %v7636_v33  ;;  %v1150_v63 = vrot.slane %v1142_v37, %v7636_v33  ;;  %v1248_v60 = vcombine.high %v7825_v61, %v7838_v34 }
 0x132   : > { %v1108_v49 = vadd.f32 %v1090_v50, %v7797_v48  ;;  %v1157_v12 = vrot.slane %v1143_v59, %v7636_v33  ;;  %v1211_v13 = vcombine.low %v1189_v52, %v1196_v47  ;;  %v1249_v21 = vcombine.high %v7844_v55, %v7851_v28 }
 0x133   : > { %v865_v42 = vmax.f32 %v863_v45, 0.0  ;;  %v1212_v32 = vcombine.low %v1203_v1, %v1210_v26  ;;  %v1250_v25 = vcombine.high %v7857_v58, %v7863_v51  ;;  %v1251_v29 = vcombine.high %v7869_v20, %v7875_v53 }
 0x134   : > { %v1158_v11 = vcombine.low %v1150_v63, %v1157_v12  ;;  %v1219_v14 = vrot.slane %v1211_v13, %v7636_v33  ;;  %v1258_v53 = vrot.slane %v1248_v60, %v7636_v33  ;;  %v1265_v4 = vrot.slane %v1249_v21, %v7636_v33 }
 0x135   : > { %v872_v15 = vrot.slane %v865_v42, %v7601_v17  ;;  %v876_v16 = vrot.slane %v865_v42, %v7613_v23  ;;  %v880_v19 = vrot.slane %v865_v42, %v7631_v31  ;;  %v884_v48 = vrot.slane %v865_v42, %v7650_v39 }
 0x136   : > { %v888_v22 = vrot.slane %v865_v42, %v7604_v18  ;;  %v892_v61 = vrot.slane %v865_v42, %v7616_v24  ;;  %v896_v34 = vrot.slane %v865_v42, %v7641_v35  ;;  %v900_v55 = vrot.slane %v865_v42, %v7659_v43 }
 0x137   : > { %v6438_v28 = vpack.c.bf16 %v876_v16, %v872_v15  ;;  %v6439_v57 = vpack.c.bf16 %v884_v48, %v880_v19  ;;  %v1226_v20 = vrot.slane %v1212_v32, %v7636_v33  ;;  %v1177_v36 = vadd.f32 %v1158_v11, %v1108_v49 }
 0x138   : > { %v6440_v27 = vpack.c.bf16 %v892_v61, %v888_v22  ;;  %v6441_v54 = vpack.c.bf16 %v900_v55, %v896_v34  ;;  %v1272_v37 = vrot.slane %v1250_v25, %v7636_v33  ;;  %v1279_v38 = vrot.slane %v1251_v29, %v7636_v33 }
 0x139   : > { %v949_v58 = vrot.slane %v6438_v28, %v7636_v33  ;;  %v956_v51 = vrot.slane %v6439_v57, %v7636_v33  ;;  %v1280_v44 = vcombine.high %v1258_v53, %v1265_v4  ;;  %v1227_v50 = vcombine.high %v1219_v14, %v1226_v20 }
 0x13a   : > { %v963_v7 = vrot.slane %v6440_v27, %v7636_v33  ;;  %v970_v41 = vrot.slane %v6441_v54, %v7636_v33  ;;  %v1281_v59 = vcombine.high %v1272_v37, %v1279_v38  ;;  %v621_v52 = vrot.slane %v7685_v56, %v7631_v31 }
 0x13b   : > { %v8009_v2 = vcombine.low %v949_v58, %v956_v51  ;;  %v1288_v26 = vrot.slane %v1280_v44, %v7636_v33  ;;  %v625_v42 = vrot.slane %v7685_v56, %v7641_v35  ;;  %v760_v49 = vrot.slane %v7685_v56, %v7650_v39  ;;  %v303_v44 = vld [vmem:[#allocation9 + $0x8] sm:$0x3] }
 0x13c   : > { %v8023_v47 = vcombine.low %v963_v7, %v970_v41  ;;  %v1246_v63 = vadd.f32 %v1227_v50, %v1177_v36  ;;  %v1295_v12 = vrot.slane %v1281_v59, %v7636_v33  ;;  %v764_v32 = vrot.slane %v7685_v56, %v7659_v43 }
 0x13d   : > { %v979_v60 = vrot.slane %v8009_v2, %v7636_v33  ;;  %v8477_v15 = vrot.slane %v7685_v56, %v7601_v17  ;;  %v8478_v19 = vrot.slane %v7685_v56, %v7604_v18  ;;  %v8481_v34 = vrot.slane %v7685_v56, %v7613_v23 }
 0x13e   : > { %v1296_v61 = vcombine.high %v1288_v26, %v1295_v12  ;;  %v8482_v28 = vrot.slane %v7685_v56, %v7616_v24  ;;  %v644_v11 = vmul.f32 %v621_v52, %v7695_v62  ;;  %v986_v25 = vrot.slane %v8023_v47, %v7636_v33 }
 0x13f   : > { %v367_v16 = vmul.f32 %v8477_v15, %v7695_v62  ;;  %v368_v48 = vmul.f32 %v8478_v19, %v7695_v62  ;;  %v505_v55 = vmul.f32 %v8481_v34, %v7695_v62  ;;  %v645_v14 = vmul.f32 %v625_v42, %v7695_v62 }
 0x140   : > { %v506_v57 = vmul.f32 %v8482_v28, %v7695_v62  ;;  %v8096_v29 = vmul.f32 %v760_v49, %v7695_v62  ;;  %v1316_v58 = vadd.f32 %v1296_v61, %v1246_v63  ;;  %v8103_v51 = vmul.f32 %v764_v32, %v7695_v62 }
 0x141   : > { %v428_v54 = vcombine.low %v367_v16, %v368_v48  ;;  %v1091_v0 = vcombine.high %v367_v16, %v368_v48  ;;  %v705_v7 = vcombine.low %v644_v11, %v645_v14  ;;  %v1228_v40 = vcombine.high %v644_v11, %v645_v14 }
 0x142   : > { %v566_v56 = vcombine.low %v505_v55, %v506_v57  ;;  %v1159_v41 = vcombine.high %v505_v55, %v506_v57  ;;  %v1318_v4 = vmax.f32 %v1316_v58, 0.0  ;;  %v844_v36 = vcombine.low %v8096_v29, %v8103_v51 }
 0x143   : > { %v435_v53 = vrot.slane %v428_v54, %v7636_v33  ;;  %v1098_v37 = vrot.slane %v1091_v0, %v7636_v33  ;;  %v712_v50 = vrot.slane %v705_v7, %v7636_v33  ;;  %v1235_v52 = vrot.slane %v1228_v40, %v7636_v33 }
 0x144   : > { %v573_v62 = vrot.slane %v566_v56, %v7636_v33  ;;  %v1166_v59 = vrot.slane %v1159_v41, %v7636_v33  ;;  %v1325_v1 = vrot.slane %v1318_v4, %v7601_v17  ;;  %v1329_v26 = vrot.slane %v1318_v4, %v7613_v23 }
 0x145   : > { %v442_v45 = vrot.slane %v435_v53, %v7636_v33  ;;  %v1333_v42 = vrot.slane %v1318_v4, %v7631_v31  ;;  %v1337_v49 = vrot.slane %v1318_v4, %v7650_v39  ;;  %v1341_v12 = vrot.slane %v1318_v4, %v7604_v18 }
 0x146   : > { %v1345_v32 = vrot.slane %v1318_v4, %v7616_v24  ;;  %v1349_v15 = vrot.slane %v1318_v4, %v7641_v35  ;;  %v1353_v16 = vrot.slane %v1318_v4, %v7659_v43  ;;  %v6443_v19 = vpack.c.bf16 %v1329_v26, %v1325_v1 }
 0x147   : > { %v6444_v48 = vpack.c.bf16 %v1337_v49, %v1333_v42  ;;  %v446_v61 = vadd.f32 %v442_v45, %v303_v44  ;;  %v574_v34 = vcombine.high %v573_v62, %v573_v62  ;;  %v719_v22 = vrot.slane %v712_v50, %v7636_v33 }
 0x148   : > { %v6445_v28 = vpack.c.bf16 %v1345_v32, %v1341_v12  ;;  %v6446_v57 = vpack.c.bf16 %v1353_v16, %v1349_v15  ;;  %v851_v11 = vrot.slane %v844_v36, %v7636_v33  ;;  %v1402_v27 = vrot.slane %v6443_v19, %v7636_v33 }
 0x149   : > { %v1409_v54 = vrot.slane %v6444_v48, %v7636_v33  ;;  %v581_v14 = vrot.slane %v574_v34, %v7636_v33  ;;  %v1105_v58 = vrot.slane %v1098_v37, %v7636_v33  ;;  %v720_v20 = vcombine.high %v719_v22, %v719_v22 }
 0x14a   : > { %v1416_v56 = vrot.slane %v6445_v28, %v7636_v33  ;;  %v1423_v0 = vrot.slane %v6446_v57, %v7636_v33  ;;  %v852_v53 = vcombine.high %v851_v11, %v851_v11  ;;  %v1167_v4 = vcombine.high %v1166_v59, %v1166_v59  ;;  %v1799_v11 = vld [vmem:[#allocation10 + $0x980] sm:$0xff] }
 0x14b   : > { %v1424_v7 = vcombine.low %v1402_v27, %v1409_v54  ;;  %v585_v41 = vadd.f32 %v581_v14, %v446_v61  ;;  %v1109_v40 = vadd.f32 %v1105_v58, %v303_v44  ;;  %v1242_v37 = vrot.slane %v1235_v52, %v7636_v33  ;;  %v1803_v27 = vld [vmem:[#allocation10 + $0x9a0] sm:$0xff] }
 0x14c   : > { %v1425_v62 = vcombine.low %v1416_v56, %v1423_v0  ;;  %v859_v36 = vrot.slane %v852_v53, %v7636_v33  ;;  %v1297_v38 = vcombine.high %v8096_v29, %v8103_v51  ;;  %v987_v44 = vcombine.low %v979_v60, %v986_v25  ;;  %v1036_v51 = vld [vmem:[#allocation3] sm:$0xff]  ;;  %v1927_v0 = vld [vmem:[#allocation10 + $0xd80] sm:$0xff]  ;;  %v1039_v53 = vld [vmem:[#allocation3 + $0x8] sm:$0x3] }
 0x14d   : > { %v1432_v45 = vrot.slane %v1424_v7, %v7636_v33  ;;  %v724_v59 = vadd.f32 %v720_v20, %v585_v41  ;;  %v1174_v29 = vrot.slane %v1167_v4, %v7636_v33  ;;  %v1243_v26 = vcombine.high %v1242_v37, %v1242_v37  ;;  %v1931_v20 = vld [vmem:[#allocation10 + $0xda0] sm:$0xff] }
 0x14e   : > { %v1439_v47 = vrot.slane %v1425_v62, %v7636_v33  ;;  %v860_v2 = vcombine.high %v859_v36, %v859_v36  ;;  %v1304_v60 = vrot.slane %v1297_v38, %v7636_v33  ;;  %v1037_v49 = vsel %vm1035_vm2, %v987_v44, %v1036_v51  ;;  %v1791_v37 = vld [vmem:[#allocation10 + $0x940] sm:$0xff] }
 0x14f   : > { %v1178_v25 = vadd.f32 %v1174_v29, %v1109_v40  ;;  %v6754_v36 = vcombine.high %v1799_v11, %v1803_v27  ;;  %v1795_v38 = vld [vmem:[#allocation10 + $0x960] sm:$0xff]  ;;  %v8511_v29 = vcombine.low %v7582_v5, %v7584_v6  ;;  %v6753_v51 = vcombine.low %v1799_v11, %v1803_v27 }
 0x150   : > { %v1440_v52 = vcombine.low %v1432_v45, %v1439_v47  ;;  %v864_v1 = vadd.f32 %v860_v2, %v724_v59  ;;  %v1305_v42 = vcombine.high %v1304_v60, %v1304_v60  ;;  %v6882_v45 = vcombine.high %v1927_v0, %v1931_v20  ;;  %v1919_v2 = vld [vmem:[#allocation10 + $0xd40] sm:$0xff] }
 0x151   : > { %v1247_v32 = vadd.f32 %v1243_v26, %v1178_v25  ;;  %v1923_v60 = vld [vmem:[#allocation10 + $0xd60] sm:$0xff]  ;;  %v6746_v46 = vcombine.high %v1791_v37, %v1795_v38  ;;  %v8512_v5 = vcombine.low %v7590_v9, %v7592_v10  ;;  %v6881_v6 = vcombine.low %v1927_v0, %v1931_v20 }
 0x152   : > { %v1457_v63 = vshll.u32 %v1440_v52, 16  ;;  %v866_v12 = vmax.f32 %v864_v1, 0.0  ;;  %v1312_v15 = vrot.slane %v1305_v42, %v7636_v33  ;;  %v1783_v25 = vld [vmem:[#allocation10 + $0x900] sm:$0xff]  ;;  %v6874_v1 = vcombine.high %v1919_v2, %v1923_v60 }
 0x153   : > { %v1787_v52 = vld [vmem:[#allocation10 + $0x920] sm:$0xff]  ;;  %v6745_v42 = vcombine.low %v1791_v37, %v1795_v38 }
 0x154   : > { %v1488_v16 = vsel %vm1486_vm1, %v1457_v63, %v1037_v49  ;;  %v904_v21 = vrot.slane %v866_v12, %v7601_v17  ;;  %v908_v19 = vrot.slane %v866_v12, %v7613_v23  ;;  %v1313_v48 = vcombine.high %v1312_v15, %v1312_v15  ;;  %v1911_v49 = vld [vmem:[#allocation10 + $0xd00] sm:$0xff] }
 0x155   : > { %1489 = vst [vmem:[#allocation3] sm:$0xff] %v1488_v16  ;;  %v2186_v61 = vrot.slane %v1488_v16, %v7636_v33  ;;  %v2179_v13 = vcombine.high %v1488_v16, %v1488_v16  ;;  %v1915_v63 = vld [vmem:[#allocation10 + $0xd20] sm:$0xff]  ;;  %v6738_v12 = vcombine.high %v1783_v25, %v1787_v52 }
 0x156   : > { %v6442_v34 = vpack.c.bf16 %v908_v19, %v904_v21  ;;  %v1317_v55 = vadd.f32 %v1313_v48, %v1247_v32  ;;  %v6873_v32 = vcombine.low %v1919_v2, %v1923_v60  ;;  %v1775_v9 = vld [vmem:[#allocation10 + $0x8c0] sm:$0xff]  ;;  %v6866_v16 = vcombine.high %v1911_v49, %v1915_v63 }
 0x157   : > { %v2194_v28 = vcombine.high %v2186_v61, %v2186_v61  ;;  %v8227_v57 = vrot.slane %v2179_v13, %v7636_v33  ;;  %v8230_v22 = vrot.slane %v2186_v61, %v7636_v33  ;;  %v1779_v10 = vld [vmem:[#allocation10 + $0x8e0] sm:$0xff]  ;;  %v6737_v19 = vcombine.low %v1783_v25, %v1787_v52 }
 0x158   : > { %v995_v54 = vrot.slane %v6442_v34, %v7636_v33  ;;  %v1319_v14 = vmax.f32 %v1317_v55, 0.0  ;;  %v1903_v48 = vld [vmem:[#allocation10 + $0xcc0] sm:$0xff]  ;;  %v6730_v34 = vcombine.high %v1775_v9, %v1779_v10  ;;  %v6865_v55 = vcombine.low %v1911_v49, %v1915_v63 }
 0x159   : > { %v8234_v58 = vrot.slane %v2194_v28, %v7636_v33  ;;  %v2195_v56 = vcombine.high %v8227_v57, %v8227_v57  ;;  %v8252_v44 = vcombine.high %v8230_v22, %v8230_v22  ;;  %v1907_v61 = vld [vmem:[#allocation10 + $0xce0] sm:$0xff] }
 0x15a   : > { %v1002_v7 = vrot.slane %v995_v54, %v7636_v33  ;;  %v1357_v41 = vrot.slane %v1319_v14, %v7601_v17  ;;  %v1361_v40 = vrot.slane %v1319_v14, %v7613_v23  ;;  %v1767_v28 = vld [vmem:[#allocation10 + $0x880] sm:$0xff]  ;;  %v6858_v27 = vcombine.high %v1903_v48, %v1907_v61 }
 0x15b   : > { %5492 = vmatprep.mubr.bf16.mxu0 %v8234_v58  ;;  %v8244_v4 = vcombine.high %v8234_v58, %v8234_v58  ;;  %v8247_v62 = vrot.slane %v2195_v56, %v7636_v33  ;;  %v1771_v11 = vld [vmem:[#allocation10 + $0x8a0] sm:$0xff]  ;;  %v6729_v54 = vcombine.low %v1775_v9, %v1779_v10  ;;  %v6857_v30 = vcombine.low %v1903_v48, %v1907_v61 }
 0x15c   : > { %5493 = vmatmul.mubr.bf16.vlgmr.msra.gmra.mxu0 %v8230_v22  ;;  %v1040_v50 = vsel %vm8510_vm15, %v1002_v7, %v1039_v53  ;;  %v6447_v59 = vpack.c.bf16 %v1361_v40, %v1357_v41  ;;  %v1895_v14 = vld [vmem:[#allocation10 + $0xc80] sm:$0xff]  ;;  %v6722_v0 = vcombine.high %v1767_v28, %v1771_v11  ;;  %v6721_v7 = vcombine.low %v1767_v28, %v1771_v11 }
 0x15d   : > { %5543 = vmatpush1.bf16.msra.mxu0 %v8511_v29  ;;  %5533 = vmatprep.mubr.bf16.mxu1 %v8244_v4  ;;  %v8265_v47 = vcombine.high %v8247_v62, %v8247_v62  ;;  %1041 = vst [vmem:[#allocation3 + $0x8] sm:$0x3] %v1040_v50  ;;  %v1899_v56 = vld [vmem:[#allocation10 + $0xca0] sm:$0xff] }
 0x15e   : > { %5574 = vmatprep.mubr.bf16.mxu0 %v8247_v62  ;;  %5534 = vmatmul.mubr.bf16.vlgmr.msra.gmra.mxu1 %v8252_v44  ;;  %v1448_v3 = vrot.slane %v6447_v59, %v7636_v33  ;;  %v1763_v20 = vld [vmem:[#allocation10 + $0x860] sm:$0xff]  ;;  %v6850_v53 = vcombine.high %v1895_v14, %v1899_v56  ;;  %v6849_v37 = vcombine.low %v1895_v14, %v1899_v56 }
 0x15f   : > { %5584 = vmatpush1.bf16.msra.mxu1 %v8512_v5  ;;  %5544 = vmatprep.subr.bf16.mxu0 %v6754_v36  ;;  %v1887_v41 = vld [vmem:[#allocation10 + $0xc40] sm:$0xff]  ;;  %v6714_v36 = vcombine.high %v1759_v8, %v1763_v20  ;;  %v6713_v59 = vcombine.low %v1759_v8, %v1763_v20 }
 0x160   : > { %5615 = vmatprep.mubr.bf16.mxu1 %v8265_v47  ;;  %5585 = vmatprep.subr.bf16.mxu1 %v6882_v45  ;;  %v1455_v26 = vrot.slane %v1448_v3, %v7636_v33  ;;  %v1891_v40 = vld [vmem:[#allocation10 + $0xc60] sm:$0xff] }
 0x161   : > { %5545 = vmatpush1.bf16.msra.mxu0 %v6753_v51  ;;  %v1751_v38 = vld [vmem:[#allocation10 + $0x800] sm:$0xff]  ;;  %v6842_v50 = vcombine.high %v1887_v41, %v1891_v40  ;;  %v6841_v60 = vcombine.low %v1887_v41, %v1891_v40 }
 0x162   : > { %5546 = vmatprep.subr.bf16.mxu0 %v6746_v46  ;;  %v1460_v15 = vshll.u32 %v1455_v26, 16  ;;  %v1755_v45 = vld [vmem:[#allocation10 + $0x820] sm:$0xff] }
 0x163   : > { %5586 = vmatpush1.bf16.msra.mxu1 %v6881_v6  ;;  %v1879_v29 = vld [vmem:[#allocation10 + $0xc00] sm:$0xff]  ;;  %v6706_v2 = vcombine.high %v1751_v38, %v1755_v45  ;;  %v6705_v6 = vcombine.low %v1751_v38, %v1755_v45 }
 0x164   : > { %5587 = vmatprep.subr.bf16.mxu1 %v6874_v1  ;;  %v1490_v21 = vld [vmem:[#allocation3 + $0x8] sm:$0x3]  ;;  %v1883_v51 = vld [vmem:[#allocation10 + $0xc20] sm:$0xff] }
 0x165   : > { %5547 = vmatpush1.bf16.msra.mxu0 %v6745_v42  ;;  %v1491_v13 = vsel %vm8513_vm10, %v1460_v15, %v1490_v21  ;;  %v1871_v46 = vld [vmem:[#allocation10 + $0xbc0] sm:$0xff]  ;;  %v6834_v5 = vcombine.high %v1879_v29, %v1883_v51  ;;  %v6833_v26 = vcombine.low %v1879_v29, %v1883_v51 }
 0x166   : > { %5548 = vmatprep.subr.bf16.mxu0 %v6738_v12  ;;  %1492 = vst [vmem:[#allocation3 + $0x8] sm:$0x3] %v1491_v13  ;;  %v1875_v3 = vld [vmem:[#allocation10 + $0xbe0] sm:$0xff] }
 0x167   : > { %5588 = vmatpush1.bf16.msra.mxu1 %v6873_v32  ;;  %v1999_v25 = vld [vmem:[#allocation10 + $0xfc0] sm:$0xff]  ;;  %v6826_v1 = vcombine.high %v1871_v46, %v1875_v3  ;;  %v6825_v12 = vcombine.low %v1871_v46, %v1875_v3 }
 0x168   : > { %5589 = vmatprep.subr.bf16.mxu1 %v6866_v16  ;;  %v2003_v52 = vld [vmem:[#allocation10 + $0xfe0] sm:$0xff] }
 0x169   : > { %5549 = vmatpush1.bf16.msra.mxu0 %v6737_v19  ;;  %v1863_v42 = vld [vmem:[#allocation10 + $0xb80] sm:$0xff]  ;;  %v6954_v63 = vcombine.high %v1999_v25, %v2003_v52  ;;  %v6953_v15 = vcombine.low %v1999_v25, %v2003_v52 }
 0x16a   : > { %5550 = vmatprep.subr.bf16.mxu0 %v6730_v34  ;;  %v1867_v49 = vld [vmem:[#allocation10 + $0xba0] sm:$0xff] }
 0x16b   : > { %5590 = vmatpush1.bf16.msra.mxu1 %v6865_v55  ;;  %v1991_v32 = vld [vmem:[#allocation10 + $0xf80] sm:$0xff]  ;;  %v6818_v10 = vcombine.high %v1863_v42, %v1867_v49  ;;  %v6817_v48 = vcombine.low %v1863_v42, %v1867_v49 }
 0x16c   : > { %5591 = vmatprep.subr.bf16.mxu1 %v6858_v27  ;;  %v1995_v9 = vld [vmem:[#allocation10 + $0xfa0] sm:$0xff] }
 0x16d   : > { %5551 = vmatpush1.bf16.msra.mxu0 %v6729_v54  ;;  %v1855_v16 = vld [vmem:[#allocation10 + $0xb40] sm:$0xff]  ;;  %v6946_v19 = vcombine.high %v1991_v32, %v1995_v9  ;;  %v6945_v55 = vcombine.low %v1991_v32, %v1995_v9 }
 0x16e   : > { %5552 = vmatprep.subr.bf16.mxu0 %v6722_v0  ;;  %v1859_v21 = vld [vmem:[#allocation10 + $0xb60] sm:$0xff] }
 0x16f   : > { %5592 = vmatpush1.bf16.msra.mxu1 %v6857_v30  ;;  %v1983_v61 = vld [vmem:[#allocation10 + $0xf40] sm:$0xff]  ;;  %v6810_v34 = vcombine.high %v1855_v16, %v1859_v21  ;;  %v6809_v54 = vcombine.low %v1855_v16, %v1859_v21 }
 0x170   : > { %5593 = vmatprep.subr.bf16.mxu1 %v6850_v53  ;;  %v1987_v13 = vld [vmem:[#allocation10 + $0xf60] sm:$0xff] }
 0x171   : > { %5553 = vmatpush1.bf16.msra.mxu0 %v6721_v7  ;;  %v1847_v28 = vld [vmem:[#allocation10 + $0xb00] sm:$0xff]  ;;  %v6938_v27 = vcombine.high %v1983_v61, %v1987_v13  ;;  %v6937_v30 = vcombine.low %v1983_v61, %v1987_v13  ;;  %v1552_v13 = vld [vmem:[#allocation10 + $0x1c8] sm:$0xff] }
 0x172   : > { %5554 = vmatprep.subr.bf16.mxu0 %v6714_v36  ;;  %v1851_v11 = vld [vmem:[#allocation10 + $0xb20] sm:$0xff] }
 0x173   : > { %5594 = vmatpush1.bf16.msra.mxu1 %v6849_v37  ;;  %v1975_v14 = vld [vmem:[#allocation10 + $0xf00] sm:$0xff]  ;;  %v6802_v0 = vcombine.high %v1847_v28, %v1851_v11  ;;  %v6801_v7 = vcombine.low %v1847_v28, %v1851_v11 }
 0x174   : > { %5595 = vmatprep.subr.bf16.mxu1 %v6842_v50  ;;  %v1979_v56 = vld [vmem:[#allocation10 + $0xf20] sm:$0xff] }
 0x175   : > { %5555 = vmatpush1.bf16.msra.mxu0 %v6713_v59  ;;  %v1839_v8 = vld [vmem:[#allocation10 + $0xac0] sm:$0xff]  ;;  %v6930_v53 = vcombine.high %v1975_v14, %v1979_v56  ;;  %v6929_v37 = vcombine.low %v1975_v14, %v1979_v56  ;;  %v8286_v14 = vrot.slane %v8227_v57, %v7636_v33 }
 0x176   : > { %5556 = vmatprep.subr.bf16.mxu0 %v6706_v2  ;;  %v1843_v20 = vld [vmem:[#allocation10 + $0xae0] sm:$0xff] }
 0x177   : > { %5596 = vmatpush1.bf16.msra.mxu1 %v6841_v60  ;;  %v1967_v41 = vld [vmem:[#allocation10 + $0xec0] sm:$0xff]  ;;  %v6794_v36 = vcombine.high %v1839_v8, %v1843_v20  ;;  %v6793_v59 = vcombine.low %v1839_v8, %v1843_v20  ;;  %v1548_v8 = vld [vmem:[#allocation10 + $0x1a8] sm:$0xff]  ;;  %v8294_v57 = vcombine.high %v8286_v14, %v8286_v14 }
 0x178   : > { %5597 = vmatprep.subr.bf16.mxu1 %v6834_v5  ;;  %v1971_v40 = vld [vmem:[#allocation10 + $0xee0] sm:$0xff] }
 0x179   : > { %5557 = vmatpush1.bf16.msra.mxu0 %v6705_v6  ;;  %v1831_v38 = vld [vmem:[#allocation10 + $0xa80] sm:$0xff]  ;;  %v6922_v50 = vcombine.high %v1967_v41, %v1971_v40  ;;  %v6921_v60 = vcombine.low %v1967_v41, %v1971_v40 }
 0x17a   : > { %5558 = vmatprep.subr.bf16.mxu0 %v6826_v1  ;;  %v1835_v45 = vld [vmem:[#allocation10 + $0xaa0] sm:$0xff] }
 0x17b   : > { %5598 = vmatpush1.bf16.msra.mxu1 %v6833_v26  ;;  %v1959_v29 = vld [vmem:[#allocation10 + $0xe80] sm:$0xff]  ;;  %v6786_v2 = vcombine.high %v1831_v38, %v1835_v45  ;;  %v6785_v6 = vcombine.low %v1831_v38, %v1835_v45  ;;  %v1536_v38 = vld [vmem:[#allocation10 + $0x148] sm:$0xff] }
 0x17c   : > { %5599 = vmatprep.subr.bf16.mxu1 %v6954_v63  ;;  %v1963_v51 = vld [vmem:[#allocation10 + $0xea0] sm:$0xff]  ;;  %v1540_v45 = vld [vmem:[#allocation10 + $0x168] sm:$0xff] }
 0x17d   : > { %5559 = vmatpush2.bf16.msra.mxu0 %v6825_v12  ;;  %v1823_v46 = vld [vmem:[#allocation10 + $0xa40] sm:$0xff]  ;;  %v6914_v5 = vcombine.high %v1959_v29, %v1963_v51  ;;  %v6913_v26 = vcombine.low %v1959_v29, %v1963_v51 }
 0x17e   : > { %5560 = vmatprep.subr.bf16.mxu0 %v6818_v10  ;;  %v1827_v3 = vld [vmem:[#allocation10 + $0xa60] sm:$0xff] }
 0x17f   : > { %5600 = vmatpush2.bf16.msra.mxu1 %v6953_v15  ;;  %v1951_v25 = vld [vmem:[#allocation10 + $0xe40] sm:$0xff]  ;;  %v6778_v1 = vcombine.high %v1823_v46, %v1827_v3  ;;  %v6777_v12 = vcombine.low %v1823_v46, %v1827_v3  ;;  %v1528_v46 = vld [vmem:[#allocation10 + $0x108] sm:$0xff] }
 0x180   : > { %5601 = vmatprep.subr.bf16.mxu1 %v6946_v19  ;;  %v1955_v52 = vld [vmem:[#allocation10 + $0xe60] sm:$0xff]  ;;  %v1532_v3 = vld [vmem:[#allocation10 + $0x128] sm:$0xff] }
 0x181   : > { %5561 = vmatpush2.bf16.msra.mxu0 %v6817_v48  ;;  %v1815_v42 = vld [vmem:[#allocation10 + $0xa00] sm:$0xff]  ;;  %v6906_v63 = vcombine.high %v1951_v25, %v1955_v52  ;;  %v6905_v15 = vcombine.low %v1951_v25, %v1955_v52  ;;  %v8280_v48 = vld.sshfl [vmem:[#allocation3 + $0x8] sm:$0x11 pattern:$0x75316420] }
 0x182   : > { %5562 = vmatprep.subr.bf16.mxu0 %v6810_v34  ;;  %v1819_v49 = vld [vmem:[#allocation10 + $0xa20] sm:$0xff]  ;;  %v1556_v34 = vld [vmem:[#allocation10 + $0x1e8] sm:$0xff]  ;;  %v2235_v11 = vcombine.high %v8280_v48, %v8280_v48 }
 0x183   : > { %5602 = vmatpush2.bf16.msra.mxu1 %v6945_v55  ;;  %v1943_v32 = vld [vmem:[#allocation10 + $0xe00] sm:$0xff]  ;;  %v6770_v10 = vcombine.high %v1815_v42, %v1819_v49  ;;  %v6769_v61 = vcombine.low %v1815_v42, %v1819_v49  ;;  %v6508_v56 = vcombine.high %v1552_v13, %v1556_v34  ;;  %v1520_v42 = vld [vmem:[#allocation10 + $0xc8] sm:$0xff] }
 0x184   : > { %5603 = vmatprep.subr.bf16.mxu1 %v6938_v27  ;;  %v1947_v9 = vld [vmem:[#allocation10 + $0xe20] sm:$0xff]  ;;  %v1524_v49 = vld [vmem:[#allocation10 + $0xe8] sm:$0xff] }
 0x185   : > { %5563 = vmatpush2.bf16.msra.mxu0 %v6809_v54  ;;  %v2063_v16 = vld [vmem:[#allocation10 + $0x11c0] sm:$0xff]  ;;  %v6898_v19 = vcombine.high %v1943_v32, %v1947_v9  ;;  %v6897_v28 = vcombine.low %v1943_v32, %v1947_v9 }
 0x186   : > { %5564 = vmatprep.subr.bf16.mxu0 %v6802_v0  ;;  %v2067_v21 = vld [vmem:[#allocation10 + $0x11e0] sm:$0xff] }
 0x187   : > { %5604 = vmatpush2.bf16.msra.mxu1 %v6937_v30  ;;  %v7018_v55 = vcombine.high %v2063_v16, %v2067_v21  ;;  %v2055_v27 = vld [vmem:[#allocation10 + $0x1180] sm:$0xff]  ;;  %v7017_v0 = vcombine.low %v2063_v16, %v2067_v21  ;;  %v1544_v30 = vld [vmem:[#allocation10 + $0x188] sm:$0xff] }
 0x188   : > { %5605 = vmatprep.subr.bf16.mxu1 %v6930_v53  ;;  %v2059_v54 = vld [vmem:[#allocation10 + $0x11a0] sm:$0xff]  ;;  %v8289_v53 = vrot.slane %v2235_v11, %v7636_v33  ;;  %v1512_v16 = vld [vmem:[#allocation10 + $0x88] sm:$0xff] }
 0x189   : > { %5565 = vmatpush2.bf16.msra.mxu0 %v6801_v7  ;;  %v7010_v20 = vcombine.high %v2055_v27, %v2059_v54  ;;  %v6507_v7 = vcombine.low %v1552_v13, %v1556_v34  ;;  %v2047_v41 = vld [vmem:[#allocation10 + $0x1140] sm:$0xff]  ;;  %v1516_v21 = vld [vmem:[#allocation10 + $0xa8] sm:$0xff] }
 0x18a   : > { %5566 = vmatprep.subr.bf16.mxu0 %v6794_v36  ;;  %v2051_v40 = vld [vmem:[#allocation10 + $0x1160] sm:$0xff]  ;;  %v6500_v36 = vcombine.high %v1544_v30, %v1548_v8  ;;  %v1504_v11 = vld [vmem:[#allocation10 + $0x48] sm:$0xff] }
 0x18b   : > { %5606 = vmatpush2.bf16.msra.mxu1 %v6929_v37  ;;  %v7009_v37 = vcombine.low %v2055_v27, %v2059_v54  ;;  %v2039_v29 = vld [vmem:[#allocation10 + $0x1100] sm:$0xff]  ;;  %v1508_v27 = vld [vmem:[#allocation10 + $0x68] sm:$0xff] }
 0x18c   : > { %5607 = vmatprep.subr.bf16.mxu1 %v6922_v50  ;;  %v7002_v50 = vcombine.high %v2047_v41, %v2051_v40  ;;  %v2043_v51 = vld [vmem:[#allocation10 + $0x1120] sm:$0xff] }
 0x18d   : > { %5567 = vmatpush2.bf16.msra.mxu0 %v6793_v59  ;;  %v6499_v59 = vcombine.low %v1544_v30, %v1548_v8  ;;  %v2031_v25 = vld [vmem:[#allocation10 + $0x10c0] sm:$0xff]  ;;  %v6460_v8 = vcombine.high %v1504_v11, %v1508_v27 }
 0x18e   : > { %5568 = vmatprep.subr.bf16.mxu0 %v6786_v2  ;;  %v6492_v2 = vcombine.high %v1536_v38, %v1540_v45  ;;  %v2035_v52 = vld [vmem:[#allocation10 + $0x10e0] sm:$0xff] }
 0x18f   : > { %5608 = vmatpush2.bf16.msra.mxu1 %v6921_v60  ;;  %v7001_v60 = vcombine.low %v2047_v41, %v2051_v40  ;;  %v2023_v32 = vld [vmem:[#allocation10 + $0x1080] sm:$0xff]  ;;  %v1500_v41 = vld [vmem:[#allocation10 + $0x28] sm:$0xff] }
 0x190   : > { %5609 = vmatprep.subr.bf16.mxu1 %v6914_v5  ;;  %v6994_v5 = vcombine.high %v2039_v29, %v2043_v51  ;;  %v2027_v9 = vld [vmem:[#allocation10 + $0x10a0] sm:$0xff] }
 0x191   : > { %5569 = vmatpush2.bf16.msra.mxu0 %v6785_v6  ;;  %v6491_v6 = vcombine.low %v1536_v38, %v1540_v45  ;;  %v2015_v13 = vld [vmem:[#allocation10 + $0x1040] sm:$0xff] }
 0x192   : > { %5570 = vmatprep.subr.bf16.mxu0 %v6778_v1  ;;  %v6484_v1 = vcombine.high %v1528_v46, %v1532_v3  ;;  %v2019_v34 = vld [vmem:[#allocation10 + $0x1060] sm:$0xff] }
 0x193   : > { %5610 = vmatpush2.bf16.msra.mxu1 %v6913_v26  ;;  %v6993_v26 = vcombine.low %v2039_v29, %v2043_v51  ;;  %v6970_v54 = vcombine.high %v2015_v13, %v2019_v34  ;;  %v2011_v30 = vld [vmem:[#allocation10 + $0x1020] sm:$0xff]  ;;  %v1620_v29 = vld [vmem:[#allocation10 + $0x3e8] sm:$0xff] }
 0x194   : > { %5611 = vmatprep.subr.bf16.mxu1 %v6906_v63  ;;  %v6986_v63 = vcombine.high %v2031_v25, %v2035_v52  ;;  %v2131_v38 = vld [vmem:[#allocation10 + $0x13e0] sm:$0xff] }
 0x195   : > { %5571 = vmatpush2.bf16.msra.mxu0 %v6777_v12  ;;  %v6483_v12 = vcombine.low %v1528_v46, %v1532_v3  ;;  %v2123_v46 = vld [vmem:[#allocation10 + $0x13a0] sm:$0xff] }
 0x196   : > { %5572 = vmatprep.subr.bf16.mxu0 %v6770_v10  ;;  %v6476_v10 = vcombine.high %v1520_v42, %v1524_v49 }
 0x197   : > { %5612 = vmatpush2.bf16.msra.mxu1 %v6905_v15  ;;  %v6985_v15 = vcombine.low %v2031_v25, %v2035_v52  ;;  %v1612_v25 = vld [vmem:[#allocation10 + $0x3a8] sm:$0xff] }
 0x198   : > { %5613 = vmatprep.subr.bf16.mxu1 %v6898_v19  ;;  %v6978_v19 = vcombine.high %v2023_v32, %v2027_v9 }
 0x199   : > { %5573 = vmatpush2.bf16.msra.mxu0 %v6769_v61  ;;  %v6475_v61 = vcombine.low %v1520_v42, %v1524_v49  ;;  %v2115_v42 = vld [vmem:[#allocation10 + $0x1360] sm:$0xff] }
 0x19a   : > { %5624 = vmatprep.subr.bf16.mxu0 %v7018_v55  ;;  %v6468_v55 = vcombine.high %v1512_v16, %v1516_v21 }
 0x19b   : > { %5614 = vmatpush2.bf16.msra.mxu1 %v6897_v28  ;;  %v6977_v28 = vcombine.low %v2023_v32, %v2027_v9  ;;  %v1604_v32 = vld [vmem:[#allocation10 + $0x368] sm:$0xff] }
 0x19c   : > { %5575 = vmatmul.mubr.bf16.vlgmr.msra.gmra.mxu0 %v8286_v14  ;;  %5665 = vmatprep.subr.bf16.mxu1 %v6508_v56  ;;  %v6467_v56 = vcombine.low %v1512_v16, %v1516_v21  ;;  %v2107_v16 = vld [vmem:[#allocation10 + $0x1320] sm:$0xff] }
 0x19d   : > { %5625 = vmatpush1.bf16.msra.mxu0 %v7017_v0  ;;  %5656 = vmatprep.mubr.bf16.mxu0 %v8289_v53  ;;  %v2007_v0 = vld [vmem:[#allocation10 + $0x1000] sm:$0xff] }
 0x19e   : > { %5616 = vmatmul.mubr.bf16.vlgmr.msra.gmra.mxu1 %v8294_v57  ;;  %5626 = vmatprep.subr.bf16.mxu0 %v7010_v20  ;;  %v6969_v20 = vcombine.low %v2015_v13, %v2019_v34  ;;  %v6962_v40 = vcombine.high %v2007_v0, %v2011_v30  ;;  %v1596_v13 = vld [vmem:[#allocation10 + $0x328] sm:$0xff] }
 0x19f   : > { %5666 = vmatpush1.bf16.msra.mxu1 %v6507_v7  ;;  %5697 = vmatprep.mubr.bf16.mxu1 %v8234_v58  ;;  %v1496_v7 = vld [vmem:[#allocation10 + $0x8] sm:$0xff] }
 0x1a0   : > { %5667 = vmatprep.subr.bf16.mxu1 %v6500_v36  ;;  %v6459_v36 = vcombine.low %v1504_v11, %v1508_v27  ;;  %v6452_v45 = vcombine.high %v1496_v7, %v1500_v41  ;;  %v2099_v11 = vld [vmem:[#allocation10 + $0x12e0] sm:$0xff] }
 0x1a1   : > { %5627 = vmatpush1.bf16.msra.mxu0 %v7009_v37  ;;  %v2127_v37 = vld [vmem:[#allocation10 + $0x13c0] sm:$0xff] }
 0x1a2   : > { %5628 = vmatprep.subr.bf16.mxu0 %v7002_v50  ;;  %v6961_v50 = vcombine.low %v2007_v0, %v2011_v30  ;;  %v7082_v51 = vcombine.high %v2127_v37, %v2131_v38  ;;  %v1588_v0 = vld [vmem:[#allocation10 + $0x2e8] sm:$0xff] }
 0x1a3   : > { %5668 = vmatpush1.bf16.msra.mxu1 %v6499_v59  ;;  %v1616_v59 = vld [vmem:[#allocation10 + $0x3c8] sm:$0xff] }
 0x1a4   : > { %5669 = vmatprep.subr.bf16.mxu1 %v6492_v2  ;;  %v6451_v2 = vcombine.low %v1496_v7, %v1500_v41  ;;  %v6572_v3 = vcombine.high %v1616_v59, %v1620_v29  ;;  %v2091_v7 = vld [vmem:[#allocation10 + $0x12a0] sm:$0xff] }
 0x1a5   : > { %5629 = vmatpush1.bf16.msra.mxu0 %v7001_v60  ;;  %v2119_v60 = vld [vmem:[#allocation10 + $0x1380] sm:$0xff] }
 0x1a6   : > { %5630 = vmatprep.subr.bf16.mxu0 %v6994_v5  ;;  %v7081_v5 = vcombine.low %v2127_v37, %v2131_v38  ;;  %v7074_v52 = vcombine.high %v2119_v60, %v2123_v46  ;;  %v1580_v37 = vld [vmem:[#allocation10 + $0x2a8] sm:$0xff] }
 0x1a7   : > { %5670 = vmatpush1.bf16.msra.mxu1 %v6491_v6  ;;  %v1608_v6 = vld [vmem:[#allocation10 + $0x388] sm:$0xff] }
 0x1a8   : > { %5671 = vmatprep.subr.bf16.mxu1 %v6484_v1  ;;  %v6571_v1 = vcombine.low %v1616_v59, %v1620_v29  ;;  %v6564_v49 = vcombine.high %v1608_v6, %v1612_v25  ;;  %v2083_v59 = vld [vmem:[#allocation10 + $0x1260] sm:$0xff] }
 0x1a9   : > { %5631 = vmatpush1.bf16.msra.mxu0 %v6993_v26  ;;  %v2111_v26 = vld [vmem:[#allocation10 + $0x1340] sm:$0xff] }
 0x1aa   : > { %5632 = vmatprep.subr.bf16.mxu0 %v6986_v63  ;;  %v7073_v63 = vcombine.low %v2119_v60, %v2123_v46  ;;  %v7066_v9 = vcombine.high %v2111_v26, %v2115_v42  ;;  %v1572_v60 = vld [vmem:[#allocation10 + $0x268] sm:$0xff] }
 0x1ab   : > { %5672 = vmatpush1.bf16.msra.mxu1 %v6483_v12  ;;  %v1600_v12 = vld [vmem:[#allocation10 + $0x348] sm:$0xff] }
 0x1ac   : > { %5673 = vmatprep.subr.bf16.mxu1 %v6476_v10  ;;  %v6563_v10 = vcombine.low %v1608_v6, %v1612_v25  ;;  %v6556_v21 = vcombine.high %v1600_v12, %v1604_v32  ;;  %v2075_v6 = vld [vmem:[#allocation10 + $0x1220] sm:$0xff] }
 0x1ad   : > { %5633 = vmatpush1.bf16.msra.mxu0 %v6985_v15  ;;  %v2103_v15 = vld [vmem:[#allocation10 + $0x1300] sm:$0xff] }
 0x1ae   : > { %5634 = vmatprep.subr.bf16.mxu0 %v6978_v19  ;;  %v7065_v19 = vcombine.low %v2111_v26, %v2115_v42  ;;  %v7058_v34 = vcombine.high %v2103_v15, %v2107_v16  ;;  %v1564_v26 = vld [vmem:[#allocation10 + $0x228] sm:$0xff] }
 0x1af   : > { %5674 = vmatpush1.bf16.msra.mxu1 %v6475_v61  ;;  %v1592_v61 = vld [vmem:[#allocation10 + $0x308] sm:$0xff] }
 0x1b0   : > { %5675 = vmatprep.subr.bf16.mxu1 %v6468_v55  ;;  %v6555_v55 = vcombine.low %v1600_v12, %v1604_v32  ;;  %v6548_v27 = vcombine.high %v1592_v61, %v1596_v13  ;;  %v1684_v12 = vld [vmem:[#allocation10 + $0x5e8] sm:$0xff] }
 0x1b1   : > { %5635 = vmatpush1.bf16.msra.mxu0 %v6977_v28  ;;  %v2095_v28 = vld [vmem:[#allocation10 + $0x12c0] sm:$0xff] }
 0x1b2   : > { %5636 = vmatprep.subr.bf16.mxu0 %v6970_v54  ;;  %v7057_v54 = vcombine.low %v2103_v15, %v2107_v16  ;;  %v7050_v30 = vcombine.high %v2095_v28, %v2099_v11  ;;  %v1812_v15 = vld [vmem:[#allocation10 + $0x9e8] sm:$0xff] }
 0x1b3   : > { %5676 = vmatpush1.bf16.msra.mxu1 %v6467_v56  ;;  %v1584_v56 = vld [vmem:[#allocation10 + $0x2c8] sm:$0xff] }
 0x1b4   : > { %5677 = vmatprep.subr.bf16.mxu1 %v6460_v8  ;;  %v6547_v8 = vcombine.low %v1592_v61, %v1596_v13  ;;  %v6540_v41 = vcombine.high %v1584_v56, %v1588_v0  ;;  %v1676_v61 = vld [vmem:[#allocation10 + $0x5a8] sm:$0xff] }
 0x1b5   : > { %5637 = vmatpush1.bf16.msra.mxu0 %v6969_v20  ;;  %v2087_v20 = vld [vmem:[#allocation10 + $0x1280] sm:$0xff] }
 0x1b6   : > { %5638 = vmatprep.subr.bf16.mxu0 %v6962_v40  ;;  %v7049_v40 = vcombine.low %v2095_v28, %v2099_v11  ;;  %v7042_v38 = vcombine.high %v2087_v20, %v2091_v7  ;;  %v1804_v28 = vld [vmem:[#allocation10 + $0x9a8] sm:$0xff]  ;;  %v8301_v11 = vrot.slane %v8280_v48, %v7636_v33 }
 0x1b7   : > { %5678 = vmatpush1.bf16.msra.mxu1 %v6459_v36  ;;  %v1576_v36 = vld [vmem:[#allocation10 + $0x288] sm:$0xff] }
 0x1b8   : > { %5679 = vmatprep.subr.bf16.mxu1 %v6452_v45  ;;  %v6539_v45 = vcombine.low %v1584_v56, %v1588_v0  ;;  %v6532_v29 = vcombine.high %v1576_v36, %v1580_v37  ;;  %v1664_v56 = vld [vmem:[#allocation10 + $0x548] sm:$0xff] }
 0x1b9   : > { %5639 = vmatpush1.bf16.msra.mxu0 %v6961_v50  ;;  %v2079_v50 = vld [vmem:[#allocation10 + $0x1240] sm:$0xff]  ;;  %v1668_v0 = vld [vmem:[#allocation10 + $0x568] sm:$0xff] }
 0x1ba   : > { %5640 = vmatprep.subr.bf16.mxu0 %v7082_v51  ;;  %v7041_v51 = vcombine.low %v2087_v20, %v2091_v7  ;;  %v7034_v46 = vcombine.high %v2079_v50, %v2083_v59  ;;  %v1792_v20 = vld [vmem:[#allocation10 + $0x948] sm:$0xff]  ;;  %v6620_v33 = vcombine.high %v1664_v56, %v1668_v0 }
 0x1bb   : > { %5680 = vmatpush1.bf16.msra.mxu1 %v6451_v2  ;;  %v1568_v2 = vld [vmem:[#allocation10 + $0x248] sm:$0xff] }
 0x1bc   : > { %5681 = vmatprep.subr.bf16.mxu1 %v6572_v3  ;;  %v6531_v3 = vcombine.low %v1576_v36, %v1580_v37  ;;  %v6524_v25 = vcombine.high %v1568_v2, %v1572_v60  ;;  %v1796_v7 = vld [vmem:[#allocation10 + $0x968] sm:$0xff]  ;;  %v6619_v37 = vcombine.low %v1664_v56, %v1668_v0 }
 0x1bd   : > { %5641 = vmatpush2.bf16.msra.mxu0 %v7081_v5  ;;  %v2071_v5 = vld [vmem:[#allocation10 + $0x1200] sm:$0xff]  ;;  %v6748_v36 = vcombine.high %v1792_v20, %v1796_v7 }
 0x1be   : > { %5642 = vmatprep.subr.bf16.mxu0 %v7074_v52  ;;  %v7033_v52 = vcombine.low %v2079_v50, %v2083_v59  ;;  %v7026_v42 = vcombine.high %v2071_v5, %v2075_v6  ;;  %v6747_v59 = vcombine.low %v1792_v20, %v1796_v7 }
 0x1bf   : > { %5682 = vmatpush2.bf16.msra.mxu1 %v6571_v1  ;;  %v1560_v1 = vld [vmem:[#allocation10 + $0x208] sm:$0xff] }
 0x1c0   : > { %5683 = vmatprep.subr.bf16.mxu1 %v6564_v49  ;;  %v6523_v49 = vcombine.low %v1568_v2, %v1572_v60  ;;  %v6516_v32 = vcombine.high %v1560_v1, %v1564_v26 }
 0x1c1   : > { %5643 = vmatpush2.bf16.msra.mxu0 %v7073_v63  ;;  %v1680_v63 = vld [vmem:[#allocation10 + $0x5c8] sm:$0xff] }
 0x1c2   : > { %5644 = vmatprep.subr.bf16.mxu0 %v7066_v9  ;;  %v7025_v9 = vcombine.low %v2071_v5, %v2075_v6  ;;  %v6636_v16 = vcombine.high %v1680_v63, %v1684_v12 }
 0x1c3   : > { %5684 = vmatpush2.bf16.msra.mxu1 %v6563_v10  ;;  %v1808_v10 = vld [vmem:[#allocation10 + $0x9c8] sm:$0xff] }
 0x1c4   : > { %5685 = vmatprep.subr.bf16.mxu1 %v6556_v21  ;;  %v6515_v21 = vcombine.low %v1560_v1, %v1564_v26  ;;  %v6764_v13 = vcombine.high %v1808_v10, %v1812_v15 }
 0x1c5   : > { %5645 = vmatpush2.bf16.msra.mxu0 %v7065_v19  ;;  %v1672_v19 = vld [vmem:[#allocation10 + $0x588] sm:$0xff] }
 0x1c6   : > { %5646 = vmatprep.subr.bf16.mxu0 %v7058_v34  ;;  %v6635_v34 = vcombine.low %v1680_v63, %v1684_v12 }
 0x1c7   : > { %5686 = vmatpush2.bf16.msra.mxu1 %v6555_v55  ;;  %v1800_v55 = vld [vmem:[#allocation10 + $0x988] sm:$0xff] }
 0x1c8   : > { %5687 = vmatprep.subr.bf16.mxu1 %v6548_v27  ;;  %v6628_v27 = vcombine.high %v1672_v19, %v1676_v61  ;;  %v6755_v48 = vcombine.low %v1800_v55, %v1804_v28 }
 0x1c9   : > { %5647 = vmatpush2.bf16.msra.mxu0 %v7057_v54  ;;  %v6763_v54 = vcombine.low %v1808_v10, %v1812_v15 }
 0x1ca   : > { %5648 = vmatprep.subr.bf16.mxu0 %v7050_v30  ;;  %v6756_v30 = vcombine.high %v1800_v55, %v1804_v28 }
 0x1cb   : > { %5688 = vmatpush2.bf16.msra.mxu1 %v6547_v8  ;;  %v6627_v8 = vcombine.low %v1672_v19, %v1676_v61 }
 0x1cc   : > { %5689 = vmatprep.subr.bf16.mxu1 %v6540_v41  ;;  %v1656_v41 = vld [vmem:[#allocation10 + $0x508] sm:$0xff] }
 0x1cd   : > { %5649 = vmatpush2.bf16.msra.mxu0 %v7049_v40  ;;  %v1660_v40 = vld [vmem:[#allocation10 + $0x528] sm:$0xff] }
 0x1ce   : > { %5650 = vmatprep.subr.bf16.mxu0 %v7042_v38  ;;  %v1784_v38 = vld [vmem:[#allocation10 + $0x908] sm:$0xff]  ;;  %v6612_v50 = vcombine.high %v1656_v41, %v1660_v40  ;;  %v6611_v60 = vcombine.low %v1656_v41, %v1660_v40 }
 0x1cf   : > { %5690 = vmatpush2.bf16.msra.mxu1 %v6539_v45  ;;  %v1788_v45 = vld [vmem:[#allocation10 + $0x928] sm:$0xff] }
 0x1d0   : > { %5691 = vmatprep.subr.bf16.mxu1 %v6532_v29  ;;  %v1648_v29 = vld [vmem:[#allocation10 + $0x4c8] sm:$0xff]  ;;  %v6740_v2 = vcombine.high %v1784_v38, %v1788_v45  ;;  %v6739_v6 = vcombine.low %v1784_v38, %v1788_v45 }
 0x1d1   : > { %5651 = vmatpush2.bf16.msra.mxu0 %v7041_v51  ;;  %v1652_v51 = vld [vmem:[#allocation10 + $0x4e8] sm:$0xff] }
 0x1d2   : > { %5652 = vmatprep.subr.bf16.mxu0 %v7034_v46  ;;  %v1776_v46 = vld [vmem:[#allocation10 + $0x8c8] sm:$0xff]  ;;  %v6604_v5 = vcombine.high %v1648_v29, %v1652_v51  ;;  %v6603_v26 = vcombine.low %v1648_v29, %v1652_v51 }
 0x1d3   : > { %5692 = vmatpush2.bf16.msra.mxu1 %v6531_v3  ;;  %v1780_v3 = vld [vmem:[#allocation10 + $0x8e8] sm:$0xff] }
 0x1d4   : > { %5693 = vmatprep.subr.bf16.mxu1 %v6524_v25  ;;  %v1640_v25 = vld [vmem:[#allocation10 + $0x488] sm:$0xff]  ;;  %v6732_v1 = vcombine.high %v1776_v46, %v1780_v3  ;;  %v6731_v12 = vcombine.low %v1776_v46, %v1780_v3 }
 0x1d5   : > { %5653 = vmatpush2.bf16.msra.mxu0 %v7033_v52  ;;  %v1644_v52 = vld [vmem:[#allocation10 + $0x4a8] sm:$0xff] }
 0x1d6   : > { %5654 = vmatprep.subr.bf16.mxu0 %v7026_v42  ;;  %v1768_v42 = vld [vmem:[#allocation10 + $0x888] sm:$0xff]  ;;  %v6596_v63 = vcombine.high %v1640_v25, %v1644_v52  ;;  %v6595_v15 = vcombine.low %v1640_v25, %v1644_v52 }
 0x1d7   : > { %5694 = vmatpush2.bf16.msra.mxu1 %v6523_v49  ;;  %v1772_v49 = vld [vmem:[#allocation10 + $0x8a8] sm:$0xff] }
 0x1d8   : > { %5695 = vmatprep.subr.bf16.mxu1 %v6516_v32  ;;  %v1632_v32 = vld [vmem:[#allocation10 + $0x448] sm:$0xff]  ;;  %v6724_v10 = vcombine.high %v1768_v42, %v1772_v49  ;;  %v6723_v61 = vcombine.low %v1768_v42, %v1772_v49 }
 0x1d9   : > { %5655 = vmatpush2.bf16.msra.mxu0 %v7025_v9  ;;  %v1636_v9 = vld [vmem:[#allocation10 + $0x468] sm:$0xff] }
 0x1da   : > { %5706 = vmatprep.subr.bf16.mxu0 %v6636_v16  ;;  %v1760_v16 = vld [vmem:[#allocation10 + $0x848] sm:$0xff]  ;;  %v6588_v19 = vcombine.high %v1632_v32, %v1636_v9  ;;  %v6587_v28 = vcombine.low %v1632_v32, %v1636_v9 }
 0x1db   : > { %5696 = vmatpush2.bf16.msra.mxu1 %v6515_v21  ;;  %v1764_v21 = vld [vmem:[#allocation10 + $0x868] sm:$0xff] }
 0x1dc   : > { %5657 = vmatmul.mubr.bf16.vlgmr.msra.gmra.mxu0 %v8301_v11  ;;  %5747 = vmatprep.subr.bf16.mxu1 %v6764_v13  ;;  %v1624_v13 = vld [vmem:[#allocation10 + $0x408] sm:$0xff]  ;;  %v6716_v55 = vcombine.high %v1760_v16, %v1764_v21  ;;  %v6715_v0 = vcombine.low %v1760_v16, %v1764_v21 }
 0x1dd   : > { %5707 = vmatpush1.bf16.msra.mxu0 %v6635_v34  ;;  %5738 = vmatprep.mubr.bf16.mxu0 %v8244_v4  ;;  %v1628_v34 = vld [vmem:[#allocation10 + $0x428] sm:$0xff] }
 0x1de   : > { %5698 = vmatmul.mubr.bf16.vlgmr.msra.gmra.mxu1 %v8230_v22  ;;  %5708 = vmatprep.subr.bf16.mxu0 %v6628_v27  ;;  %v1752_v27 = vld [vmem:[#allocation10 + $0x808] sm:$0xff]  ;;  %v6580_v56 = vcombine.high %v1624_v13, %v1628_v34  ;;  %v6579_v7 = vcombine.low %v1624_v13, %v1628_v34 }
 0x1df   : > { %5748 = vmatpush1.bf16.msra.mxu1 %v6763_v54  ;;  %5779 = vmatprep.mubr.bf16.mxu1 %v8247_v62  ;;  %v1756_v54 = vld [vmem:[#allocation10 + $0x828] sm:$0xff] }
 0x1e0   : > { %5749 = vmatprep.subr.bf16.mxu1 %v6756_v30  ;;  %v1744_v30 = vld [vmem:[#allocation10 + $0x7c8] sm:$0xff]  ;;  %v6708_v20 = vcombine.high %v1752_v27, %v1756_v54  ;;  %v6707_v40 = vcombine.low %v1752_v27, %v1756_v54 }
 0x1e1   : > { %5709 = vmatpush1.bf16.msra.mxu0 %v6627_v8  ;;  %v1748_v8 = vld [vmem:[#allocation10 + $0x7e8] sm:$0xff] }
 0x1e2   : > { %5710 = vmatprep.subr.bf16.mxu0 %v6620_v33  ;;  %v1872_v33 = vld [vmem:[#allocation10 + $0xbc8] sm:$0xff]  ;;  %v6700_v41 = vcombine.high %v1744_v30, %v1748_v8  ;;  %v6699_v45 = vcombine.low %v1744_v30, %v1748_v8 }
 0x1e3   : > { %5750 = vmatpush1.bf16.msra.mxu1 %v6755_v48  ;;  %v1876_v48 = vld [vmem:[#allocation10 + $0xbe8] sm:$0xff] }
 0x1e4   : > { %5751 = vmatprep.subr.bf16.mxu1 %v6748_v36  ;;  %v1736_v36 = vld [vmem:[#allocation10 + $0x788] sm:$0xff]  ;;  %v6828_v38 = vcombine.high %v1872_v33, %v1876_v48  ;;  %v6827_v51 = vcombine.low %v1872_v33, %v1876_v48 }
 0x1e5   : > { %5711 = vmatpush1.bf16.msra.mxu0 %v6619_v37  ;;  %v1740_v37 = vld [vmem:[#allocation10 + $0x7a8] sm:$0xff] }
 0x1e6   : > { %5712 = vmatprep.subr.bf16.mxu0 %v6612_v50  ;;  %v1864_v50 = vld [vmem:[#allocation10 + $0xb88] sm:$0xff]  ;;  %v6692_v29 = vcombine.high %v1736_v36, %v1740_v37  ;;  %v6691_v3 = vcombine.low %v1736_v36, %v1740_v37 }
 0x1e7   : > { %5752 = vmatpush1.bf16.msra.mxu1 %v6747_v59  ;;  %v1868_v59 = vld [vmem:[#allocation10 + $0xba8] sm:$0xff] }
 0x1e8   : > { %5753 = vmatprep.subr.bf16.mxu1 %v6740_v2  ;;  %v1728_v2 = vld [vmem:[#allocation10 + $0x748] sm:$0xff]  ;;  %v6820_v46 = vcombine.high %v1864_v50, %v1868_v59  ;;  %v6819_v52 = vcombine.low %v1864_v50, %v1868_v59 }
 0x1e9   : > { %5713 = vmatpush1.bf16.msra.mxu0 %v6611_v60  ;;  %v1732_v60 = vld [vmem:[#allocation10 + $0x768] sm:$0xff] }
 0x1ea   : > { %5714 = vmatprep.subr.bf16.mxu0 %v6604_v5  ;;  %v1856_v5 = vld [vmem:[#allocation10 + $0xb48] sm:$0xff]  ;;  %v6684_v25 = vcombine.high %v1728_v2, %v1732_v60  ;;  %v6683_v49 = vcombine.low %v1728_v2, %v1732_v60 }
 0x1eb   : > { %5754 = vmatpush1.bf16.msra.mxu1 %v6739_v6  ;;  %v1860_v6 = vld [vmem:[#allocation10 + $0xb68] sm:$0xff] }
 0x1ec   : > { %5755 = vmatprep.subr.bf16.mxu1 %v6732_v1  ;;  %v1720_v1 = vld [vmem:[#allocation10 + $0x708] sm:$0xff]  ;;  %v6812_v42 = vcombine.high %v1856_v5, %v1860_v6  ;;  %v6811_v9 = vcombine.low %v1856_v5, %v1860_v6 }
 0x1ed   : > { %5715 = vmatpush1.bf16.msra.mxu0 %v6603_v26  ;;  %v1724_v26 = vld [vmem:[#allocation10 + $0x728] sm:$0xff] }
 0x1ee   : > { %5716 = vmatprep.subr.bf16.mxu0 %v6596_v63  ;;  %v1848_v63 = vld [vmem:[#allocation10 + $0xb08] sm:$0xff]  ;;  %v6676_v32 = vcombine.high %v1720_v1, %v1724_v26  ;;  %v6675_v21 = vcombine.low %v1720_v1, %v1724_v26  ;;  %v2135_v26 = vld [vmem:[#allocation12] sm:$0xff] }
 0x1ef   : > { %5756 = vmatpush1.bf16.msra.mxu1 %v6731_v12  ;;  %v1852_v12 = vld [vmem:[#allocation10 + $0xb28] sm:$0xff] }
 0x1f0   : > { %5757 = vmatprep.subr.bf16.mxu1 %v6724_v10  ;;  %v1712_v10 = vld [vmem:[#allocation10 + $0x6c8] sm:$0xff]  ;;  %v6804_v16 = vcombine.high %v1848_v63, %v1852_v12  ;;  %v6803_v34 = vcombine.low %v1848_v63, %v1852_v12 }
 0x1f1   : > { %5717 = vmatpush1.bf16.msra.mxu0 %v6595_v15  ;;  %v1716_v15 = vld [vmem:[#allocation10 + $0x6e8] sm:$0xff] }
 0x1f2   : > { %5718 = vmatprep.subr.bf16.mxu0 %v6588_v19  ;;  %v1840_v19 = vld [vmem:[#allocation10 + $0xac8] sm:$0xff]  ;;  %v6668_v13 = vcombine.high %v1712_v10, %v1716_v15  ;;  %v6667_v54 = vcombine.low %v1712_v10, %v1716_v15 }
 0x1f3   : > { %5758 = vmatpush1.bf16.msra.mxu1 %v6723_v61  ;;  %v1844_v61 = vld [vmem:[#allocation10 + $0xae8] sm:$0xff] }
 0x1f4   : > { %5759 = vmatprep.subr.bf16.mxu1 %v6716_v55  ;;  %v1704_v55 = vld [vmem:[#allocation10 + $0x688] sm:$0xff]  ;;  %v6796_v27 = vcombine.high %v1840_v19, %v1844_v61  ;;  %v6795_v8 = vcombine.low %v1840_v19, %v1844_v61  ;;  %v2144_v19 = vrot.slane %v2135_v26, %v7613_v23 }
 0x1f5   : > { %5719 = vmatpush1.bf16.msra.mxu0 %v6587_v28  ;;  %v1708_v28 = vld [vmem:[#allocation10 + $0x6a8] sm:$0xff] }
 0x1f6   : > { %5720 = vmatprep.subr.bf16.mxu0 %v6580_v56  ;;  %v1832_v56 = vld [vmem:[#allocation10 + $0xa88] sm:$0xff]  ;;  %v6660_v30 = vcombine.high %v1704_v55, %v1708_v28  ;;  %v6659_v48 = vcombine.low %v1704_v55, %v1708_v28 }
 0x1f7   : > { %5760 = vmatpush1.bf16.msra.mxu1 %v6715_v0  ;;  %v1836_v0 = vld [vmem:[#allocation10 + $0xaa8] sm:$0xff] }
 0x1f8   : > { %5761 = vmatprep.subr.bf16.mxu1 %v6708_v20  ;;  %v1696_v20 = vld [vmem:[#allocation10 + $0x648] sm:$0xff]  ;;  %v6788_v33 = vcombine.high %v1832_v56, %v1836_v0  ;;  %v6787_v37 = vcombine.low %v1832_v56, %v1836_v0 }
 0x1f9   : > { %5721 = vmatpush1.bf16.msra.mxu0 %v6579_v7  ;;  %v1700_v7 = vld [vmem:[#allocation10 + $0x668] sm:$0xff] }
 0x1fa   : > { %5722 = vmatprep.subr.bf16.mxu0 %v6700_v41  ;;  %v1824_v41 = vld [vmem:[#allocation10 + $0xa48] sm:$0xff]  ;;  %v6652_v36 = vcombine.high %v1696_v20, %v1700_v7  ;;  %v6651_v59 = vcombine.low %v1696_v20, %v1700_v7 }
 0x1fb   : > { %5762 = vmatpush1.bf16.msra.mxu1 %v6707_v40  ;;  %v1828_v40 = vld [vmem:[#allocation10 + $0xa68] sm:$0xff] }
 0x1fc   : > { %5763 = vmatprep.subr.bf16.mxu1 %v6828_v38  ;;  %v1688_v38 = vld [vmem:[#allocation10 + $0x608] sm:$0xff]  ;;  %v6780_v50 = vcombine.high %v1824_v41, %v1828_v40  ;;  %v6779_v60 = vcombine.low %v1824_v41, %v1828_v40 }
 0x1fd   : > { %5723 = vmatpush2.bf16.msra.mxu0 %v6699_v45  ;;  %v1692_v45 = vld [vmem:[#allocation10 + $0x628] sm:$0xff] }
 0x1fe   : > { %5724 = vmatprep.subr.bf16.mxu0 %v6692_v29  ;;  %v1816_v29 = vld [vmem:[#allocation10 + $0xa08] sm:$0xff]  ;;  %v6644_v2 = vcombine.high %v1688_v38, %v1692_v45  ;;  %v6643_v6 = vcombine.low %v1688_v38, %v1692_v45 }
 0x1ff   : > { %5764 = vmatpush2.bf16.msra.mxu1 %v6827_v51  ;;  %v1820_v51 = vld [vmem:[#allocation10 + $0xa28] sm:$0xff] }
 0x200   : > { %5765 = vmatprep.subr.bf16.mxu1 %v6820_v46  ;;  %v1936_v46 = vld [vmem:[#allocation10 + $0xdc8] sm:$0xff]  ;;  %v6772_v5 = vcombine.high %v1816_v29, %v1820_v51 }
 0x201   : > { %5725 = vmatpush2.bf16.msra.mxu0 %v6691_v3  ;;  %v1940_v3 = vld [vmem:[#allocation10 + $0xde8] sm:$0xff] }
 0x202   : > { %5726 = vmatprep.subr.bf16.mxu0 %v6684_v25  ;;  %v2064_v25 = vld [vmem:[#allocation10 + $0x11c8] sm:$0xff]  ;;  %v6892_v1 = vcombine.high %v1936_v46, %v1940_v3 }
 0x203   : > { %5766 = vmatpush2.bf16.msra.mxu1 %v6819_v52  ;;  %v2068_v52 = vld [vmem:[#allocation10 + $0x11e8] sm:$0xff] }
 0x204   : > { %5767 = vmatprep.subr.bf16.mxu1 %v6812_v42  ;;  %v6771_v42 = vcombine.low %v1816_v29, %v1820_v51  ;;  %v1932_v63 = vld [vmem:[#allocation10 + $0xda8] sm:$0xff]  ;;  %v7020_v12 = vcombine.high %v2064_v25, %v2068_v52 }
 0x205   : > { %5727 = vmatpush2.bf16.msra.mxu0 %v6683_v49  ;;  %v1928_v49 = vld [vmem:[#allocation10 + $0xd88] sm:$0xff] }
 0x206   : > { %5728 = vmatprep.subr.bf16.mxu0 %v6676_v32  ;;  %v6891_v32 = vcombine.low %v1936_v46, %v1940_v3  ;;  %v2056_v10 = vld [vmem:[#allocation10 + $0x1188] sm:$0xff] }
 0x207   : > { %5768 = vmatpush2.bf16.msra.mxu1 %v6811_v9  ;;  %v2140_v9 = vrot.slane %v2135_v26, %v7601_v17  ;;  %v2060_v15 = vld [vmem:[#allocation10 + $0x11a8] sm:$0xff]  ;;  %v6883_v17 = vcombine.low %v1928_v49, %v1932_v63 }
 0x208   : > { %5769 = vmatprep.subr.bf16.mxu1 %v6804_v16  ;;  %v6884_v16 = vcombine.high %v1928_v49, %v1932_v63  ;;  %v1920_v61 = vld [vmem:[#allocation10 + $0xd48] sm:$0xff]  ;;  %v7012_v55 = vcombine.high %v2056_v10, %v2060_v15  ;;  %v7011_v20 = vcombine.low %v2056_v10, %v2060_v15 }
 0x209   : > { %5729 = vmatpush2.bf16.msra.mxu0 %v6675_v21  ;;  %v7019_v21 = vcombine.low %v2064_v25, %v2068_v52  ;;  %v1912_v7 = vld [vmem:[#allocation10 + $0xd08] sm:$0xff] }
 0x20a   : > { %5730 = vmatprep.subr.bf16.mxu0 %v6668_v13  ;;  %v1924_v13 = vld [vmem:[#allocation10 + $0xd68] sm:$0xff] }
 0x20b   : > { %5770 = vmatpush2.bf16.msra.mxu1 %v6803_v34  ;;  %v6876_v23 = vcombine.high %v1920_v61, %v1924_v13  ;;  %v2040_v38 = vld [vmem:[#allocation10 + $0x1108] sm:$0xff] }
 0x20c   : > { %5771 = vmatprep.subr.bf16.mxu1 %v6796_v27  ;;  %v2048_v27 = vld [vmem:[#allocation10 + $0x1148] sm:$0xff] }
 0x20d   : > { %5731 = vmatpush2.bf16.msra.mxu0 %v6667_v54  ;;  %v2052_v54 = vld [vmem:[#allocation10 + $0x1168] sm:$0xff] }
 0x20e   : > { %5732 = vmatprep.subr.bf16.mxu0 %v6660_v30  ;;  %v7004_v40 = vcombine.high %v2048_v27, %v2052_v54  ;;  %v2044_v45 = vld [vmem:[#allocation10 + $0x1128] sm:$0xff]  ;;  %v7003_v51 = vcombine.low %v2048_v27, %v2052_v54 }
 0x20f   : > { %5772 = vmatpush2.bf16.msra.mxu1 %v6795_v8  ;;  %v6996_v3 = vcombine.high %v2040_v38, %v2044_v45  ;;  %v2036_v25 = vld [vmem:[#allocation10 + $0x10e8] sm:$0xff] }
 0x210   : > { %5773 = vmatprep.subr.bf16.mxu1 %v6788_v33  ;;  %v1916_v33 = vld [vmem:[#allocation10 + $0xd28] sm:$0xff] }
 0x211   : > { %5733 = vmatpush2.bf16.msra.mxu0 %v6659_v48  ;;  %v6868_v29 = vcombine.high %v1912_v7, %v1916_v33  ;;  %v1896_v26 = vld [vmem:[#allocation10 + $0xc88] sm:$0xff] }
 0x212   : > { %5734 = vmatprep.subr.bf16.mxu0 %v6652_v36  ;;  %v1888_v15 = vld [vmem:[#allocation10 + $0xc48] sm:$0xff] }
 0x213   : > { %5774 = vmatpush2.bf16.msra.mxu1 %v6787_v37  ;;  %v6875_v37 = vcombine.low %v1920_v61, %v1924_v13  ;;  %v2016_v61 = vld [vmem:[#allocation10 + $0x1048] sm:$0xff] }
 0x214   : > { %5775 = vmatprep.subr.bf16.mxu1 %v6780_v50  ;;  %v2020_v13 = vld [vmem:[#allocation10 + $0x1068] sm:$0xff] }
 0x215   : > { %5735 = vmatpush2.bf16.msra.mxu0 %v6651_v59  ;;  %v6972_v27 = vcombine.high %v2016_v61, %v2020_v13 }
 0x216   : > { %5736 = vmatprep.subr.bf16.mxu0 %v6644_v2  ;;  %v1904_v2 = vld [vmem:[#allocation10 + $0xcc8] sm:$0xff] }
 0x217   : > { %5776 = vmatpush2.bf16.msra.mxu1 %v6779_v60  ;;  %v1908_v60 = vld [vmem:[#allocation10 + $0xce8] sm:$0xff] }
 0x218   : > { %5777 = vmatprep.subr.bf16.mxu1 %v6772_v5  ;;  %v6867_v5 = vcombine.low %v1912_v7, %v1916_v33  ;;  %v6860_v52 = vcombine.high %v1904_v2, %v1908_v60  ;;  %v6859_v63 = vcombine.low %v1904_v2, %v1908_v60  ;;  %v2004_v7 = vld [vmem:[#allocation10 + $0xfe8] sm:$0xff] }
 0x219   : > { %5737 = vmatpush2.bf16.msra.mxu0 %v6643_v6  ;;  %v2032_v6 = vld [vmem:[#allocation10 + $0x10c8] sm:$0xff] }
 0x21a   : > { %5788 = vmatprep.subr.bf16.mxu0 %v6892_v1  ;;  %v6995_v1 = vcombine.low %v2040_v38, %v2044_v45  ;;  %v6988_v49 = vcombine.high %v2032_v6, %v2036_v25  ;;  %v6987_v10 = vcombine.low %v2032_v6, %v2036_v25  ;;  %v1992_v45 = vld [vmem:[#allocation10 + $0xf88] sm:$0xff] }
 0x21b   : > { %5778 = vmatpush2.bf16.msra.mxu1 %v6771_v42  ;;  %v1900_v42 = vld [vmem:[#allocation10 + $0xca8] sm:$0xff] }
 0x21c   : > { %5739 = vmatmul.mubr.bf16.vlgmr.msra.gmra.mxu0 %v8252_v44  ;;  %v5494_v34 = vpop.f32.mrf.mxu0  ;;  %5829 = vmatprep.subr.bf16.mxu1 %v7020_v12  ;;  %v2024_v12 = vld [vmem:[#allocation10 + $0x1088] sm:$0xff] }
 0x21d   : > { %v5495_v28 = vadd.f32 %v5494_v34, %v2140_v9  ;;  %5789 = vmatpush1.bf16.msra.mxu0 %v6891_v32  ;;  %5820 = vmatprep.mubr.bf16.mxu0 %v8265_v47  ;;  %v2028_v32 = vld [vmem:[#allocation10 + $0x10a8] sm:$0xff]  ;;  %v6852_v9 = vcombine.high %v1896_v26, %v1900_v42 }
 0x21e   : > { %5780 = vmatmul.mubr.bf16.vlgmr.msra.gmra.mxu1 %v8286_v14  ;;  %v5496_v56 = vpop.f32.mrf.mxu0  ;;  %v5535_v0 = vpop.f32.mrf.mxu1  ;;  %5790 = vmatprep.subr.bf16.mxu0 %v6884_v16  ;;  %v1892_v16 = vld [vmem:[#allocation10 + $0xc68] sm:$0xff] }
 0x21f   : > { %v5497_v30 = vadd.f32 %v5496_v56, %v2144_v19  ;;  %v8312_v8 = vadd.f32 %v5535_v0, %v5495_v28  ;;  %5830 = vmatpush1.bf16.msra.mxu1 %v7019_v21  ;;  %5861 = vmatprep.mubr.bf16.mxu1 %v8289_v53  ;;  %v6980_v21 = vcombine.high %v2024_v12, %v2028_v32  ;;  %v1880_v28 = vld [vmem:[#allocation10 + $0xc08] sm:$0xff] }
 0x220   : > { %v5498_v48 = vpop.f32.mrf.mxu0  ;;  %v5537_v41 = vpop.f32.mrf.mxu1  ;;  %5831 = vmatprep.subr.bf16.mxu1 %v7012_v55  ;;  %v6851_v19 = vcombine.low %v1896_v26, %v1900_v42  ;;  %v6844_v34 = vcombine.high %v1888_v15, %v1892_v16  ;;  %v6979_v55 = vcombine.low %v2024_v12, %v2028_v32  ;;  %v6843_v54 = vcombine.low %v1888_v15, %v1892_v16  ;;  %v2008_v56 = vld [vmem:[#allocation10 + $0x1008] sm:$0xff] }
 0x221   : > { %v8315_v36 = vadd.f32 %v5537_v41, %v5497_v30  ;;  %5791 = vmatpush1.bf16.msra.mxu0 %v6883_v17  ;;  %v1884_v17 = vld [vmem:[#allocation10 + $0xc28] sm:$0xff]  ;;  %v6971_v30 = vcombine.low %v2016_v61, %v2020_v13 }
 0x222   : > { %v5499_v50 = vpop.f32.mrf.mxu0  ;;  %v5539_v59 = vpop.f32.mrf.mxu1  ;;  %5792 = vmatprep.subr.bf16.mxu0 %v6876_v23  ;;  %v2012_v0 = vld [vmem:[#allocation10 + $0x1028] sm:$0xff]  ;;  %v6836_v23 = vcombine.high %v1880_v28, %v1884_v17  ;;  %v6835_v48 = vcombine.low %v1880_v28, %v1884_v17 }
 0x223   : > { %5832 = vmatpush1.bf16.msra.mxu1 %v7011_v20  ;;  %v2000_v20 = vld [vmem:[#allocation10 + $0xfc8] sm:$0xff]  ;;  %v6964_v33 = vcombine.high %v2008_v56, %v2012_v0  ;;  %v6963_v38 = vcombine.low %v2008_v56, %v2012_v0 }
 0x224   : > { %v5540_v46 = vpop.f32.mrf.mxu1  ;;  %5833 = vmatprep.subr.bf16.mxu1 %v7004_v40  ;;  %v2128_v41 = vld [vmem:[#allocation10 + $0x13c8] sm:$0xff] }
 0x225   : > { %5793 = vmatpush1.bf16.msra.mxu0 %v6875_v37  ;;  %v2132_v40 = vld [vmem:[#allocation10 + $0x13e8] sm:$0xff]  ;;  %v6956_v37 = vcombine.high %v2000_v20, %v2004_v7 }
 0x226   : > { %5794 = vmatprep.subr.bf16.mxu0 %v6868_v29  ;;  %v1996_v50 = vld [vmem:[#allocation10 + $0xfa8] sm:$0xff]  ;;  %v7084_v59 = vcombine.high %v2128_v41, %v2132_v40  ;;  %v6955_v29 = vcombine.low %v2000_v20, %v2004_v7  ;;  %v7083_v46 = vcombine.low %v2128_v41, %v2132_v40 }
 0x227   : > { %5834 = vmatpush1.bf16.msra.mxu1 %v7003_v51  ;;  %v2120_v51 = vld [vmem:[#allocation10 + $0x1388] sm:$0xff]  ;;  %v6948_v60 = vcombine.high %v1992_v45, %v1996_v50  ;;  %v6947_v25 = vcombine.low %v1992_v45, %v1996_v50 }
 0x228   : > { %5835 = vmatprep.subr.bf16.mxu1 %v6996_v3  ;;  %v2124_v2 = vld [vmem:[#allocation10 + $0x13a8] sm:$0xff] }
 0x229   : > { %5795 = vmatpush1.bf16.msra.mxu0 %v6867_v5  ;;  %v1984_v3 = vld [vmem:[#allocation10 + $0xf48] sm:$0xff]  ;;  %v7076_v6 = vcombine.high %v2120_v51, %v2124_v2  ;;  %v7075_v42 = vcombine.low %v2120_v51, %v2124_v2 }
 0x22a   : > { %5796 = vmatprep.subr.bf16.mxu0 %v6860_v52  ;;  %v1988_v5 = vld [vmem:[#allocation10 + $0xf68] sm:$0xff] }
 0x22b   : > { %5836 = vmatpush1.bf16.msra.mxu1 %v6995_v1  ;;  %v2112_v52 = vld [vmem:[#allocation10 + $0x1348] sm:$0xff]  ;;  %v6940_v26 = vcombine.high %v1984_v3, %v1988_v5  ;;  %v6939_v32 = vcombine.low %v1984_v3, %v1988_v5 }
 0x22c   : > { %5837 = vmatprep.subr.bf16.mxu1 %v6988_v49  ;;  %v2116_v1 = vld [vmem:[#allocation10 + $0x1368] sm:$0xff] }
 0x22d   : > { %5797 = vmatpush1.bf16.msra.mxu0 %v6859_v63  ;;  %v1976_v49 = vld [vmem:[#allocation10 + $0xf08] sm:$0xff]  ;;  %v7068_v12 = vcombine.high %v2112_v52, %v2116_v1  ;;  %v7067_v16 = vcombine.low %v2112_v52, %v2116_v1 }
 0x22e   : > { %5798 = vmatprep.subr.bf16.mxu0 %v6852_v9  ;;  %v1980_v63 = vld [vmem:[#allocation10 + $0xf28] sm:$0xff] }
 0x22f   : > { %5838 = vmatpush1.bf16.msra.mxu1 %v6987_v10  ;;  %v2104_v9 = vld [vmem:[#allocation10 + $0x1308] sm:$0xff]  ;;  %v6932_v15 = vcombine.high %v1976_v49, %v1980_v63  ;;  %v6931_v13 = vcombine.low %v1976_v49, %v1980_v63 }
 0x230   : > { %5839 = vmatprep.subr.bf16.mxu1 %v6980_v21  ;;  %v2108_v10 = vld [vmem:[#allocation10 + $0x1328] sm:$0xff] }
 0x231   : > { %5799 = vmatpush1.bf16.msra.mxu0 %v6851_v19  ;;  %v1968_v21 = vld [vmem:[#allocation10 + $0xec8] sm:$0xff]  ;;  %v7060_v61 = vcombine.high %v2104_v9, %v2108_v10  ;;  %v7059_v17 = vcombine.low %v2104_v9, %v2108_v10 }
 0x232   : > { %5800 = vmatprep.subr.bf16.mxu0 %v6844_v34  ;;  %v1972_v19 = vld [vmem:[#allocation10 + $0xee8] sm:$0xff] }
 0x233   : > { %5840 = vmatpush1.bf16.msra.mxu1 %v6979_v55  ;;  %v2096_v34 = vld [vmem:[#allocation10 + $0x12c8] sm:$0xff]  ;;  %v6924_v28 = vcombine.high %v1968_v21, %v1972_v19  ;;  %v6923_v0 = vcombine.low %v1968_v21, %v1972_v19 }
 0x234   : > { %5841 = vmatprep.subr.bf16.mxu1 %v6972_v27  ;;  %v2100_v55 = vld [vmem:[#allocation10 + $0x12e8] sm:$0xff] }
 0x235   : > { %5801 = vmatpush1.bf16.msra.mxu0 %v6843_v54  ;;  %v1960_v27 = vld [vmem:[#allocation10 + $0xe88] sm:$0xff]  ;;  %v7052_v56 = vcombine.high %v2096_v34, %v2100_v55  ;;  %v7051_v7 = vcombine.low %v2096_v34, %v2100_v55 }
 0x236   : > { %5802 = vmatprep.subr.bf16.mxu0 %v6836_v23  ;;  %v1964_v54 = vld [vmem:[#allocation10 + $0xea8] sm:$0xff] }
 0x237   : > { %5842 = vmatpush1.bf16.msra.mxu1 %v6971_v30  ;;  %v2088_v23 = vld [vmem:[#allocation10 + $0x1288] sm:$0xff]  ;;  %v6916_v20 = vcombine.high %v1960_v27, %v1964_v54  ;;  %v6915_v40 = vcombine.low %v1960_v27, %v1964_v54  ;;  %v1665_v27 = vld [vmem:[#allocation10 + $0x550] sm:$0xff] }
 0x238   : > { %5843 = vmatprep.subr.bf16.mxu1 %v6964_v33  ;;  %v2092_v30 = vld [vmem:[#allocation10 + $0x12a8] sm:$0xff]  ;;  %v1669_v54 = vld [vmem:[#allocation10 + $0x570] sm:$0xff] }
 0x239   : > { %5803 = vmatpush1.bf16.msra.mxu0 %v6835_v48  ;;  %v1952_v33 = vld [vmem:[#allocation10 + $0xe48] sm:$0xff]  ;;  %v7044_v41 = vcombine.high %v2088_v23, %v2092_v30  ;;  %v7043_v50 = vcombine.low %v2088_v23, %v2092_v30 }
 0x23a   : > { %5804 = vmatprep.subr.bf16.mxu0 %v6956_v37  ;;  %v1956_v48 = vld [vmem:[#allocation10 + $0xe68] sm:$0xff] }
 0x23b   : > { %5844 = vmatpush1.bf16.msra.mxu1 %v6963_v38  ;;  %v2080_v37 = vld [vmem:[#allocation10 + $0x1248] sm:$0xff]  ;;  %v6908_v45 = vcombine.high %v1952_v33, %v1956_v48  ;;  %v6907_v2 = vcombine.low %v1952_v33, %v1956_v48  ;;  %v1533_v33 = vld [vmem:[#allocation10 + $0x130] sm:$0xff] }
 0x23c   : > { %5845 = vmatprep.subr.bf16.mxu1 %v7084_v59  ;;  %v2084_v38 = vld [vmem:[#allocation10 + $0x1268] sm:$0xff] }
 0x23d   : > { %5805 = vmatpush2.bf16.msra.mxu0 %v6955_v29  ;;  %v1944_v59 = vld [vmem:[#allocation10 + $0xe08] sm:$0xff]  ;;  %v7036_v51 = vcombine.high %v2080_v37, %v2084_v38  ;;  %v7035_v5 = vcombine.low %v2080_v37, %v2084_v38 }
 0x23e   : > { %5806 = vmatprep.subr.bf16.mxu0 %v6948_v60  ;;  %v1948_v29 = vld [vmem:[#allocation10 + $0xe28] sm:$0xff] }
 0x23f   : > { %5846 = vmatpush2.bf16.msra.mxu1 %v7083_v46  ;;  %v2072_v60 = vld [vmem:[#allocation10 + $0x1208] sm:$0xff]  ;;  %v6900_v3 = vcombine.high %v1944_v59, %v1948_v29  ;;  %v6899_v1 = vcombine.low %v1944_v59, %v1948_v29 }
 0x240   : > { %5847 = vmatprep.subr.bf16.mxu1 %v7076_v6  ;;  %v2076_v46 = vld [vmem:[#allocation10 + $0x1228] sm:$0xff]  ;;  %v1553_v6 = vld [vmem:[#allocation10 + $0x1d0] sm:$0xff] }
 0x241   : > { %5807 = vmatpush2.bf16.msra.mxu0 %v6947_v25  ;;  %v1557_v25 = vld [vmem:[#allocation10 + $0x1f0] sm:$0xff]  ;;  %v7028_v52 = vcombine.high %v2072_v60, %v2076_v46  ;;  %v7027_v63 = vcombine.low %v2072_v60, %v2076_v46 }
 0x242   : > { %5808 = vmatprep.subr.bf16.mxu0 %v6940_v26  ;;  %v1681_v26 = vld [vmem:[#allocation10 + $0x5d0] sm:$0xff]  ;;  %v6510_v49 = vcombine.high %v1553_v6, %v1557_v25  ;;  %v6509_v10 = vcombine.low %v1553_v6, %v1557_v25 }
 0x243   : > { %5848 = vmatpush2.bf16.msra.mxu1 %v7075_v42  ;;  %v1685_v42 = vld [vmem:[#allocation10 + $0x5f0] sm:$0xff] }
 0x244   : > { %5849 = vmatprep.subr.bf16.mxu1 %v7068_v12  ;;  %v1545_v12 = vld [vmem:[#allocation10 + $0x190] sm:$0xff]  ;;  %v6638_v9 = vcombine.high %v1681_v26, %v1685_v42  ;;  %v6637_v19 = vcombine.low %v1681_v26, %v1685_v42 }
 0x245   : > { %5809 = vmatpush2.bf16.msra.mxu0 %v6939_v32  ;;  %v1549_v32 = vld [vmem:[#allocation10 + $0x1b0] sm:$0xff] }
 0x246   : > { %5810 = vmatprep.subr.bf16.mxu0 %v6932_v15  ;;  %v1673_v15 = vld [vmem:[#allocation10 + $0x590] sm:$0xff]  ;;  %v6502_v21 = vcombine.high %v1545_v12, %v1549_v32 }
 0x247   : > { %5850 = vmatpush2.bf16.msra.mxu1 %v7067_v16  ;;  %v1677_v16 = vld [vmem:[#allocation10 + $0x5b0] sm:$0xff] }
 0x248   : > { %5851 = vmatprep.subr.bf16.mxu1 %v7060_v61  ;;  %v1537_v61 = vld [vmem:[#allocation10 + $0x150] sm:$0xff]  ;;  %v6630_v55 = vcombine.high %v1673_v15, %v1677_v16 }
 0x249   : > { %5811 = vmatpush2.bf16.msra.mxu0 %v6931_v13  ;;  %v1541_v13 = vld [vmem:[#allocation10 + $0x170] sm:$0xff] }
 0x24a   : > { %5812 = vmatprep.subr.bf16.mxu0 %v6924_v28  ;;  %v6494_v23 = vcombine.high %v1537_v61, %v1541_v13  ;;  %v6493_v38 = vcombine.low %v1537_v61, %v1541_v13  ;;  %v1525_v60 = vld [vmem:[#allocation10 + $0xf0] sm:$0xff] }
 0x24b   : > { %5852 = vmatpush2.bf16.msra.mxu1 %v7059_v17  ;;  %v6501_v17 = vcombine.low %v1545_v12, %v1549_v32  ;;  %v1649_v6 = vld [vmem:[#allocation10 + $0x4d0] sm:$0xff] }
 0x24c   : > { %5853 = vmatprep.subr.bf16.mxu1 %v7052_v56  ;;  %v1653_v25 = vld [vmem:[#allocation10 + $0x4f0] sm:$0xff] }
 0x24d   : > { %5813 = vmatpush2.bf16.msra.mxu0 %v6923_v0  ;;  %v1513_v26 = vld [vmem:[#allocation10 + $0x90] sm:$0xff] }
 0x24e   : > { %5814 = vmatprep.subr.bf16.mxu0 %v6916_v20  ;;  %v1517_v42 = vld [vmem:[#allocation10 + $0xb0] sm:$0xff] }
 0x24f   : > { %5854 = vmatpush2.bf16.msra.mxu1 %v7051_v7  ;;  %v1529_v7 = vld [vmem:[#allocation10 + $0x110] sm:$0xff] }
 0x250   : > { %5855 = vmatprep.subr.bf16.mxu1 %v7044_v41  ;;  %v6486_v29 = vcombine.high %v1529_v7, %v1533_v33  ;;  %v1641_v12 = vld [vmem:[#allocation10 + $0x490] sm:$0xff] }
 0x251   : > { %5815 = vmatpush2.bf16.msra.mxu0 %v6915_v40  ;;  %v6622_v40 = vcombine.high %v1665_v27, %v1669_v54  ;;  %v1645_v32 = vld [vmem:[#allocation10 + $0x4b0] sm:$0xff] }
 0x252   : > { %5816 = vmatprep.subr.bf16.mxu0 %v6908_v45  ;;  %v1657_v45 = vld [vmem:[#allocation10 + $0x510] sm:$0xff] }
 0x253   : > { %5856 = vmatpush2.bf16.msra.mxu1 %v7043_v50  ;;  %v1661_v50 = vld [vmem:[#allocation10 + $0x530] sm:$0xff] }
 0x254   : > { %5857 = vmatprep.subr.bf16.mxu1 %v7036_v51  ;;  %v6621_v51 = vcombine.low %v1665_v27, %v1669_v54  ;;  %v1633_v61 = vld [vmem:[#allocation10 + $0x450] sm:$0xff] }
 0x255   : > { %5817 = vmatpush2.bf16.msra.mxu0 %v6907_v2  ;;  %v1521_v2 = vld [vmem:[#allocation10 + $0xd0] sm:$0xff] }
 0x256   : > { %5818 = vmatprep.subr.bf16.mxu0 %v6900_v3  ;;  %v6614_v3 = vcombine.high %v1657_v45, %v1661_v50  ;;  %v1637_v13 = vld [vmem:[#allocation10 + $0x470] sm:$0xff] }
 0x257   : > { %5858 = vmatpush2.bf16.msra.mxu1 %v7035_v5  ;;  %v6485_v5 = vcombine.low %v1529_v7, %v1533_v33  ;;  %v6590_v27 = vcombine.high %v1633_v61, %v1637_v13  ;;  %v1621_v7 = vld [vmem:[#allocation10 + $0x3f0] sm:$0xff] }
 0x258   : > { %5859 = vmatprep.subr.bf16.mxu1 %v7028_v52  ;;  %v6478_v52 = vcombine.high %v1521_v2, %v1525_v60 }
 0x259   : > { %5819 = vmatpush2.bf16.msra.mxu0 %v6899_v1  ;;  %v6613_v1 = vcombine.low %v1657_v45, %v1661_v50  ;;  %v1609_v50 = vld [vmem:[#allocation10 + $0x390] sm:$0xff] }
 0x25a   : > { %5870 = vmatprep.subr.bf16.mxu0 %v6510_v49  ;;  %v6606_v49 = vcombine.high %v1649_v6, %v1653_v25 }
 0x25b   : > { %5860 = vmatpush2.bf16.msra.mxu1 %v7027_v63  ;;  %v6477_v63 = vcombine.low %v1521_v2, %v1525_v60  ;;  %v1741_v2 = vld [vmem:[#allocation10 + $0x7b0] sm:$0xff] }
 0x25c   : > { %v5576_v34 = vpop.f32.mrf.mxu0  ;;  %5821 = vmatmul.mubr.bf16.vlgmr.msra.gmra.mxu0 %v8294_v57  ;;  %5911 = vmatprep.subr.bf16.mxu1 %v6638_v9  ;;  %v6470_v9 = vcombine.high %v1513_v26, %v1517_v42 }
 0x25d   : > { %v5577_v28 = vadd.f32 %v5576_v34, %v8312_v8  ;;  %5871 = vmatpush1.bf16.msra.mxu0 %v6509_v10  ;;  %5902 = vmatprep.mubr.bf16.mxu0 %v8234_v58  ;;  %v6629_v8 = vcombine.low %v1673_v15, %v1677_v16  ;;  %v6605_v10 = vcombine.low %v1649_v6, %v1653_v25  ;;  %v1505_v15 = vld [vmem:[#allocation10 + $0x50] sm:$0xff] }
 0x25e   : > { %v5578_v56 = vpop.f32.mrf.mxu0  ;;  %v5617_v0 = vpop.f32.mrf.mxu1  ;;  %5862 = vmatmul.mubr.bf16.vlgmr.msra.gmra.mxu1 %v8301_v11  ;;  %5872 = vmatprep.subr.bf16.mxu0 %v6502_v21  ;;  %v1509_v16 = vld [vmem:[#allocation10 + $0x70] sm:$0xff]  ;;  %v6598_v21 = vcombine.high %v1641_v12, %v1645_v32 }
 0x25f   : > { %v5579_v30 = vadd.f32 %v5578_v56, %v8315_v36  ;;  %v8322_v20 = vadd.f32 %v5617_v0, %v5577_v28  ;;  %5912 = vmatpush1.bf16.msra.mxu1 %v6637_v19  ;;  %5943 = vmatprep.mubr.bf16.mxu1 %v8244_v4  ;;  %v6469_v19 = vcombine.low %v1513_v26, %v1517_v42  ;;  %v1497_v28 = vld [vmem:[#allocation10 + $0x10] sm:$0xff] }
 0x260   : > { %v5580_v48 = vpop.f32.mrf.mxu0  ;;  %v5619_v41 = vpop.f32.mrf.mxu1  ;;  %5913 = vmatprep.subr.bf16.mxu1 %v6630_v55  ;;  %v6462_v34 = vcombine.high %v1505_v15, %v1509_v16  ;;  %v6597_v55 = vcombine.low %v1641_v12, %v1645_v32  ;;  %v6461_v54 = vcombine.low %v1505_v15, %v1509_v16  ;;  %v1625_v56 = vld [vmem:[#allocation10 + $0x410] sm:$0xff] }
 0x261   : > { %v8325_v37 = vadd.f32 %v5619_v41, %v5579_v30  ;;  %5873 = vmatpush1.bf16.msra.mxu0 %v6501_v17  ;;  %v1501_v17 = vld [vmem:[#allocation10 + $0x30] sm:$0xff]  ;;  %v6589_v30 = vcombine.low %v1633_v61, %v1637_v13 }
 0x262   : > { %v5581_v59 = vpop.f32.mrf.mxu0  ;;  %v5621_v36 = vpop.f32.mrf.mxu1  ;;  %5874 = vmatprep.subr.bf16.mxu0 %v6494_v23  ;;  %v1629_v0 = vld [vmem:[#allocation10 + $0x430] sm:$0xff]  ;;  %v6454_v23 = vcombine.high %v1497_v28, %v1501_v17  ;;  %v6453_v48 = vcombine.low %v1497_v28, %v1501_v17 }
 0x263   : > { %5914 = vmatpush1.bf16.msra.mxu1 %v6629_v8  ;;  %v1617_v8 = vld [vmem:[#allocation10 + $0x3d0] sm:$0xff]  ;;  %v6582_v33 = vcombine.high %v1625_v56, %v1629_v0  ;;  %v6581_v45 = vcombine.low %v1625_v56, %v1629_v0 }
 0x264   : > { %v5622_v46 = vpop.f32.mrf.mxu1  ;;  %5915 = vmatprep.subr.bf16.mxu1 %v6622_v40  ;;  %v1745_v41 = vld [vmem:[#allocation10 + $0x7d0] sm:$0xff] }
 0x265   : > { %5875 = vmatpush1.bf16.msra.mxu0 %v6493_v38  ;;  %v1749_v40 = vld [vmem:[#allocation10 + $0x7f0] sm:$0xff]  ;;  %v6574_v38 = vcombine.high %v1617_v8, %v1621_v7 }
 0x266   : > { %5876 = vmatprep.subr.bf16.mxu0 %v6486_v29  ;;  %v1613_v59 = vld [vmem:[#allocation10 + $0x3b0] sm:$0xff]  ;;  %v6702_v36 = vcombine.high %v1745_v41, %v1749_v40  ;;  %v6573_v29 = vcombine.low %v1617_v8, %v1621_v7  ;;  %v6701_v46 = vcombine.low %v1745_v41, %v1749_v40 }
 0x267   : > { %5916 = vmatpush1.bf16.msra.mxu1 %v6621_v51  ;;  %v1737_v51 = vld [vmem:[#allocation10 + $0x790] sm:$0xff]  ;;  %v6566_v60 = vcombine.high %v1609_v50, %v1613_v59  ;;  %v6565_v25 = vcombine.low %v1609_v50, %v1613_v59 }
 0x268   : > { %5917 = vmatprep.subr.bf16.mxu1 %v6614_v3  ;;  %v1601_v3 = vld [vmem:[#allocation10 + $0x350] sm:$0xff]  ;;  %v6694_v6 = vcombine.high %v1737_v51, %v1741_v2  ;;  %v6693_v42 = vcombine.low %v1737_v51, %v1741_v2 }
 0x269   : > { %5877 = vmatpush1.bf16.msra.mxu0 %v6485_v5  ;;  %v1605_v5 = vld [vmem:[#allocation10 + $0x370] sm:$0xff] }
 0x26a   : > { %5878 = vmatprep.subr.bf16.mxu0 %v6478_v52  ;;  %v1729_v52 = vld [vmem:[#allocation10 + $0x750] sm:$0xff]  ;;  %v6558_v26 = vcombine.high %v1601_v3, %v1605_v5  ;;  %v6557_v32 = vcombine.low %v1601_v3, %v1605_v5 }
 0x26b   : > { %5918 = vmatpush1.bf16.msra.mxu1 %v6613_v1  ;;  %v1733_v1 = vld [vmem:[#allocation10 + $0x770] sm:$0xff] }
 0x26c   : > { %5919 = vmatprep.subr.bf16.mxu1 %v6606_v49  ;;  %v1593_v49 = vld [vmem:[#allocation10 + $0x310] sm:$0xff]  ;;  %v6686_v12 = vcombine.high %v1729_v52, %v1733_v1  ;;  %v6685_v16 = vcombine.low %v1729_v52, %v1733_v1 }
 0x26d   : > { %5879 = vmatpush1.bf16.msra.mxu0 %v6477_v63  ;;  %v1597_v63 = vld [vmem:[#allocation10 + $0x330] sm:$0xff] }
 0x26e   : > { %5880 = vmatprep.subr.bf16.mxu0 %v6470_v9  ;;  %v1721_v9 = vld [vmem:[#allocation10 + $0x710] sm:$0xff]  ;;  %v6550_v15 = vcombine.high %v1593_v49, %v1597_v63  ;;  %v6549_v13 = vcombine.low %v1593_v49, %v1597_v63 }
 0x26f   : > { %5920 = vmatpush1.bf16.msra.mxu1 %v6605_v10  ;;  %v1725_v10 = vld [vmem:[#allocation10 + $0x730] sm:$0xff] }
 0x270   : > { %5921 = vmatprep.subr.bf16.mxu1 %v6598_v21  ;;  %v1585_v21 = vld [vmem:[#allocation10 + $0x2d0] sm:$0xff]  ;;  %v6678_v61 = vcombine.high %v1721_v9, %v1725_v10  ;;  %v6677_v17 = vcombine.low %v1721_v9, %v1725_v10 }
 0x271   : > { %5881 = vmatpush1.bf16.msra.mxu0 %v6469_v19  ;;  %v1589_v19 = vld [vmem:[#allocation10 + $0x2f0] sm:$0xff] }
 0x272   : > { %5882 = vmatprep.subr.bf16.mxu0 %v6462_v34  ;;  %v1713_v34 = vld [vmem:[#allocation10 + $0x6d0] sm:$0xff]  ;;  %v6542_v28 = vcombine.high %v1585_v21, %v1589_v19  ;;  %v6541_v0 = vcombine.low %v1585_v21, %v1589_v19 }
 0x273   : > { %5922 = vmatpush1.bf16.msra.mxu1 %v6597_v55  ;;  %v1717_v55 = vld [vmem:[#allocation10 + $0x6f0] sm:$0xff] }
 0x274   : > { %5923 = vmatprep.subr.bf16.mxu1 %v6590_v27  ;;  %v1577_v27 = vld [vmem:[#allocation10 + $0x290] sm:$0xff]  ;;  %v6670_v56 = vcombine.high %v1713_v34, %v1717_v55  ;;  %v6669_v7 = vcombine.low %v1713_v34, %v1717_v55 }
 0x275   : > { %5883 = vmatpush1.bf16.msra.mxu0 %v6461_v54  ;;  %v1581_v54 = vld [vmem:[#allocation10 + $0x2b0] sm:$0xff] }
 0x276   : > { %5884 = vmatprep.subr.bf16.mxu0 %v6454_v23  ;;  %v1705_v23 = vld [vmem:[#allocation10 + $0x690] sm:$0xff]  ;;  %v6534_v8 = vcombine.high %v1577_v27, %v1581_v54  ;;  %v6533_v40 = vcombine.low %v1577_v27, %v1581_v54 }
 0x277   : > { %5924 = vmatpush1.bf16.msra.mxu1 %v6589_v30  ;;  %v1709_v30 = vld [vmem:[#allocation10 + $0x6b0] sm:$0xff] }
 0x278   : > { %5925 = vmatprep.subr.bf16.mxu1 %v6582_v33  ;;  %v1569_v33 = vld [vmem:[#allocation10 + $0x250] sm:$0xff]  ;;  %v6662_v41 = vcombine.high %v1705_v23, %v1709_v30  ;;  %v6661_v59 = vcombine.low %v1705_v23, %v1709_v30 }
 0x279   : > { %5885 = vmatpush1.bf16.msra.mxu0 %v6453_v48  ;;  %v1573_v48 = vld [vmem:[#allocation10 + $0x270] sm:$0xff] }
 0x27a   : > { %5886 = vmatprep.subr.bf16.mxu0 %v6574_v38  ;;  %v1697_v38 = vld [vmem:[#allocation10 + $0x650] sm:$0xff]  ;;  %v6526_v50 = vcombine.high %v1569_v33, %v1573_v48  ;;  %v6525_v2 = vcombine.low %v1569_v33, %v1573_v48 }
 0x27b   : > { %5926 = vmatpush1.bf16.msra.mxu1 %v6581_v45  ;;  %v1701_v45 = vld [vmem:[#allocation10 + $0x670] sm:$0xff] }
 0x27c   : > { %5927 = vmatprep.subr.bf16.mxu1 %v6702_v36  ;;  %v1561_v36 = vld [vmem:[#allocation10 + $0x210] sm:$0xff]  ;;  %v6654_v51 = vcombine.high %v1697_v38, %v1701_v45  ;;  %v6653_v5 = vcombine.low %v1697_v38, %v1701_v45 }
 0x27d   : > { %5887 = vmatpush2.bf16.msra.mxu0 %v6573_v29  ;;  %v1565_v29 = vld [vmem:[#allocation10 + $0x230] sm:$0xff] }
 0x27e   : > { %5888 = vmatprep.subr.bf16.mxu0 %v6566_v60  ;;  %v1689_v60 = vld [vmem:[#allocation10 + $0x610] sm:$0xff]  ;;  %v6518_v3 = vcombine.high %v1561_v36, %v1565_v29  ;;  %v6517_v1 = vcombine.low %v1561_v36, %v1565_v29 }
 0x27f   : > { %5928 = vmatpush2.bf16.msra.mxu1 %v6701_v46  ;;  %v1693_v46 = vld [vmem:[#allocation10 + $0x630] sm:$0xff] }
 0x280   : > { %5929 = vmatprep.subr.bf16.mxu1 %v6694_v6  ;;  %v1809_v6 = vld [vmem:[#allocation10 + $0x9d0] sm:$0xff]  ;;  %v6646_v52 = vcombine.high %v1689_v60, %v1693_v46  ;;  %v6645_v63 = vcombine.low %v1689_v60, %v1693_v46 }
 0x281   : > { %5889 = vmatpush2.bf16.msra.mxu0 %v6565_v25  ;;  %v1813_v25 = vld [vmem:[#allocation10 + $0x9f0] sm:$0xff] }
 0x282   : > { %5890 = vmatprep.subr.bf16.mxu0 %v6558_v26  ;;  %v1937_v26 = vld [vmem:[#allocation10 + $0xdd0] sm:$0xff]  ;;  %v6766_v49 = vcombine.high %v1809_v6, %v1813_v25  ;;  %v6765_v10 = vcombine.low %v1809_v6, %v1813_v25 }
 0x283   : > { %5930 = vmatpush2.bf16.msra.mxu1 %v6693_v42  ;;  %v1941_v42 = vld [vmem:[#allocation10 + $0xdf0] sm:$0xff] }
 0x284   : > { %5931 = vmatprep.subr.bf16.mxu1 %v6686_v12  ;;  %v1801_v12 = vld [vmem:[#allocation10 + $0x990] sm:$0xff]  ;;  %v6894_v9 = vcombine.high %v1937_v26, %v1941_v42  ;;  %v6893_v19 = vcombine.low %v1937_v26, %v1941_v42 }
 0x285   : > { %5891 = vmatpush2.bf16.msra.mxu0 %v6557_v32  ;;  %v1805_v32 = vld [vmem:[#allocation10 + $0x9b0] sm:$0xff] }
 0x286   : > { %5892 = vmatprep.subr.bf16.mxu0 %v6550_v15  ;;  %v1929_v15 = vld [vmem:[#allocation10 + $0xd90] sm:$0xff]  ;;  %v6758_v21 = vcombine.high %v1801_v12, %v1805_v32 }
 0x287   : > { %5932 = vmatpush2.bf16.msra.mxu1 %v6685_v16  ;;  %v1933_v16 = vld [vmem:[#allocation10 + $0xdb0] sm:$0xff] }
 0x288   : > { %5933 = vmatprep.subr.bf16.mxu1 %v6678_v61  ;;  %v1793_v61 = vld [vmem:[#allocation10 + $0x950] sm:$0xff]  ;;  %v6886_v55 = vcombine.high %v1929_v15, %v1933_v16 }
 0x289   : > { %5893 = vmatpush2.bf16.msra.mxu0 %v6549_v13  ;;  %v1797_v13 = vld [vmem:[#allocation10 + $0x970] sm:$0xff] }
 0x28a   : > { %5894 = vmatprep.subr.bf16.mxu0 %v6542_v28  ;;  %v1921_v27 = vld [vmem:[#allocation10 + $0xd50] sm:$0xff]  ;;  %v6750_v23 = vcombine.high %v1793_v61, %v1797_v13  ;;  %v6749_v38 = vcombine.low %v1793_v61, %v1797_v13 }
 0x28b   : > { %5934 = vmatpush2.bf16.msra.mxu1 %v6677_v17  ;;  %v6757_v17 = vcombine.low %v1801_v12, %v1805_v32  ;;  %v1925_v54 = vld [vmem:[#allocation10 + $0xd70] sm:$0xff] }
 0x28c   : > { %5935 = vmatprep.subr.bf16.mxu1 %v6670_v56  ;;  %v1913_v45 = vld [vmem:[#allocation10 + $0xd10] sm:$0xff]  ;;  %v6877_v29 = vcombine.low %v1921_v27, %v1925_v54 }
 0x28d   : > { %5895 = vmatpush2.bf16.msra.mxu0 %v6541_v0  ;;  %v1909_v6 = vld [vmem:[#allocation10 + $0xcf0] sm:$0xff] }
 0x28e   : > { %5896 = vmatprep.subr.bf16.mxu0 %v6534_v8  ;;  %v1785_v8 = vld [vmem:[#allocation10 + $0x910] sm:$0xff] }
 0x28f   : > { %5936 = vmatpush2.bf16.msra.mxu1 %v6669_v7  ;;  %v1789_v7 = vld [vmem:[#allocation10 + $0x930] sm:$0xff] }
 0x290   : > { %5937 = vmatprep.subr.bf16.mxu1 %v6662_v41  ;;  %v6878_v41 = vcombine.high %v1921_v27, %v1925_v54  ;;  %v6742_v36 = vcombine.high %v1785_v8, %v1789_v7  ;;  %v1773_v26 = vld [vmem:[#allocation10 + $0x8b0] sm:$0xff] }
 0x291   : > { %5897 = vmatpush2.bf16.msra.mxu0 %v6533_v40  ;;  %v1901_v12 = vld [vmem:[#allocation10 + $0xcb0] sm:$0xff] }
 0x292   : > { %5898 = vmatprep.subr.bf16.mxu0 %v6526_v50  ;;  %v1917_v50 = vld [vmem:[#allocation10 + $0xd30] sm:$0xff] }
 0x293   : > { %5938 = vmatpush2.bf16.msra.mxu1 %v6661_v59  ;;  %v6870_v46 = vcombine.high %v1913_v45, %v1917_v50  ;;  %v1893_v61 = vld [vmem:[#allocation10 + $0xc70] sm:$0xff] }
 0x294   : > { %5939 = vmatprep.subr.bf16.mxu1 %v6654_v51  ;;  %v1777_v51 = vld [vmem:[#allocation10 + $0x8d0] sm:$0xff] }
 0x295   : > { %5899 = vmatpush2.bf16.msra.mxu0 %v6525_v2  ;;  %v1781_v2 = vld [vmem:[#allocation10 + $0x8f0] sm:$0xff] }
 0x296   : > { %5900 = vmatprep.subr.bf16.mxu0 %v6518_v3  ;;  %v6741_v3 = vcombine.low %v1785_v8, %v1789_v7  ;;  %v6734_v25 = vcombine.high %v1777_v51, %v1781_v2  ;;  %v1873_v7 = vld [vmem:[#allocation10 + $0xbd0] sm:$0xff] }
 0x297   : > { %5940 = vmatpush2.bf16.msra.mxu1 %v6653_v5  ;;  %v1905_v5 = vld [vmem:[#allocation10 + $0xcd0] sm:$0xff] }
 0x298   : > { %5941 = vmatprep.subr.bf16.mxu1 %v6646_v52  ;;  %v6869_v52 = vcombine.low %v1913_v45, %v1917_v50  ;;  %v6862_v42 = vcombine.high %v1905_v5, %v1909_v6  ;;  %v2001_v45 = vld [vmem:[#allocation10 + $0xfd0] sm:$0xff] }
 0x299   : > { %5901 = vmatpush2.bf16.msra.mxu0 %v6517_v1  ;;  %v1769_v1 = vld [vmem:[#allocation10 + $0x890] sm:$0xff] }
 0x29a   : > { %5952 = vmatprep.subr.bf16.mxu0 %v6766_v49  ;;  %v6733_v49 = vcombine.low %v1777_v51, %v1781_v2  ;;  %v6726_v32 = vcombine.high %v1769_v1, %v1773_v26  ;;  %v2005_v50 = vld [vmem:[#allocation10 + $0xff0] sm:$0xff] }
 0x29b   : > { %5942 = vmatpush2.bf16.msra.mxu1 %v6645_v63  ;;  %v1897_v63 = vld [vmem:[#allocation10 + $0xc90] sm:$0xff]  ;;  %v6958_v51 = vcombine.high %v2001_v45, %v2005_v50 }
 0x29c   : > { %v5658_v34 = vpop.f32.mrf.mxu0  ;;  %5903 = vmatmul.mubr.bf16.vlgmr.msra.gmra.mxu0 %v8230_v22  ;;  %5993 = vmatprep.subr.bf16.mxu1 %v6894_v9  ;;  %v6861_v9 = vcombine.low %v1905_v5, %v1909_v6  ;;  %v6957_v5 = vcombine.low %v2001_v45, %v2005_v50  ;;  %v1857_v6 = vld [vmem:[#allocation10 + $0xb50] sm:$0xff] }
 0x29d   : > { %v8329_v28 = vadd.f32 %v5658_v34, %v8322_v20  ;;  %5953 = vmatpush1.bf16.msra.mxu0 %v6765_v10  ;;  %5984 = vmatprep.mubr.bf16.mxu0 %v8247_v62  ;;  %v6885_v20 = vcombine.low %v1929_v15, %v1933_v16  ;;  %v1761_v10 = vld [vmem:[#allocation10 + $0x850] sm:$0xff]  ;;  %v6854_v16 = vcombine.high %v1897_v63, %v1901_v12 }
 0x29e   : > { %v5660_v56 = vpop.f32.mrf.mxu0  ;;  %v8332_v0 = vpop.f32.mrf.mxu1  ;;  %5944 = vmatmul.mubr.bf16.vlgmr.msra.gmra.mxu1 %v8252_v44  ;;  %5954 = vmatprep.subr.bf16.mxu0 %v6758_v21  ;;  %v1765_v15 = vld [vmem:[#allocation10 + $0x870] sm:$0xff]  ;;  %v6725_v21 = vcombine.low %v1769_v1, %v1773_v26  ;;  %v6853_v34 = vcombine.low %v1897_v63, %v1901_v12 }
 0x29f   : > { %v8336_v30 = vadd.f32 %v5660_v56, %v8325_v37  ;;  %5994 = vmatpush1.bf16.msra.mxu1 %v6893_v19  ;;  %6025 = vmatprep.mubr.bf16.mxu1 %v8265_v47  ;;  %v1889_v19 = vld [vmem:[#allocation10 + $0xc50] sm:$0xff]  ;;  %v6718_v13 = vcombine.high %v1761_v10, %v1765_v15  ;;  %v6717_v54 = vcombine.low %v1761_v10, %v1765_v15 }
 0x2a0   : > { %v5662_v33 = vpop.f32.mrf.mxu0  ;;  %v8339_v48 = vpop.f32.mrf.mxu1  ;;  %5995 = vmatprep.subr.bf16.mxu1 %v6886_v55  ;;  %v1753_v55 = vld [vmem:[#allocation10 + $0x810] sm:$0xff]  ;;  %v6846_v27 = vcombine.high %v1889_v19, %v1893_v61  ;;  %v6845_v8 = vcombine.low %v1889_v19, %v1893_v61 }
 0x2a1   : > { %v6288_v40 = vcombine.low %v8329_v28, %v8336_v30  ;;  %5955 = vmatpush1.bf16.msra.mxu0 %v6757_v17  ;;  %v1757_v17 = vld [vmem:[#allocation10 + $0x830] sm:$0xff]  ;;  %v1770_v28 = vld [vmem:[#allocation10 + $0x898] sm:$0xff] }
 0x2a2   : > { %v5663_v37 = vpop.f32.mrf.mxu0  ;;  %v5703_v59 = vpop.f32.mrf.mxu1  ;;  %5956 = vmatprep.subr.bf16.mxu0 %v6750_v23  ;;  %v1881_v56 = vld [vmem:[#allocation10 + $0xc10] sm:$0xff]  ;;  %v1774_v30 = vld [vmem:[#allocation10 + $0x8b8] sm:$0xff] }
 0x2a3   : > { %5996 = vmatpush1.bf16.msra.mxu1 %v6885_v20  ;;  %v1885_v23 = vld [vmem:[#allocation10 + $0xc30] sm:$0xff]  ;;  %v6710_v20 = vcombine.high %v1753_v55, %v1757_v17 }
 0x2a4   : > { %v5704_v60 = vpop.f32.mrf.mxu1  ;;  %5997 = vmatprep.subr.bf16.mxu1 %v6878_v41  ;;  %v1877_v33 = vld [vmem:[#allocation10 + $0xbf0] sm:$0xff]  ;;  %v6838_v41 = vcombine.high %v1881_v56, %v1885_v23  ;;  %v6837_v59 = vcombine.low %v1881_v56, %v1885_v23 }
 0x2a5   : > { %5957 = vmatpush1.bf16.msra.mxu0 %v6749_v38  ;;  %v6709_v38 = vcombine.low %v1753_v55, %v1757_v17  ;;  %v6830_v37 = vcombine.high %v1873_v7, %v1877_v33  ;;  %v6829_v2 = vcombine.low %v1873_v7, %v1877_v33  ;;  %v1993_v60 = vld [vmem:[#allocation10 + $0xf90] sm:$0xff] }
 0x2a6   : > { %5958 = vmatprep.subr.bf16.mxu0 %v6742_v36  ;;  %v1865_v36 = vld [vmem:[#allocation10 + $0xb90] sm:$0xff] }
 0x2a7   : > { %5998 = vmatpush1.bf16.msra.mxu1 %v6877_v29  ;;  %v1869_v29 = vld [vmem:[#allocation10 + $0xbb0] sm:$0xff] }
 0x2a8   : > { %5999 = vmatprep.subr.bf16.mxu1 %v6870_v46  ;;  %v1997_v46 = vld [vmem:[#allocation10 + $0xfb0] sm:$0xff]  ;;  %v6821_v1 = vcombine.low %v1865_v36, %v1869_v29 }
 0x2a9   : > { %5959 = vmatpush1.bf16.msra.mxu0 %v6741_v3  ;;  %v6822_v3 = vcombine.high %v1865_v36, %v1869_v29  ;;  %v1985_v26 = vld [vmem:[#allocation10 + $0xf50] sm:$0xff]  ;;  %v6949_v63 = vcombine.low %v1993_v60, %v1997_v46 }
 0x2aa   : > { %5960 = vmatprep.subr.bf16.mxu0 %v6734_v25  ;;  %v1861_v25 = vld [vmem:[#allocation10 + $0xb70] sm:$0xff] }
 0x2ab   : > { %6000 = vmatpush1.bf16.msra.mxu1 %v6869_v52  ;;  %v6950_v52 = vcombine.high %v1993_v60, %v1997_v46  ;;  %v1849_v12 = vld [vmem:[#allocation10 + $0xb10] sm:$0xff]  ;;  %v6813_v10 = vcombine.low %v1857_v6, %v1861_v25 }
 0x2ac   : > { %6001 = vmatprep.subr.bf16.mxu1 %v6862_v42  ;;  %v1989_v42 = vld [vmem:[#allocation10 + $0xf70] sm:$0xff] }
 0x2ad   : > { %5961 = vmatpush1.bf16.msra.mxu0 %v6733_v49  ;;  %v6814_v49 = vcombine.high %v1857_v6, %v1861_v25  ;;  %v1977_v15 = vld [vmem:[#allocation10 + $0xf10] sm:$0xff]  ;;  %v6941_v19 = vcombine.low %v1985_v26, %v1989_v42 }
 0x2ae   : > { %5962 = vmatprep.subr.bf16.mxu0 %v6726_v32  ;;  %v1853_v32 = vld [vmem:[#allocation10 + $0xb30] sm:$0xff] }
 0x2af   : > { %6002 = vmatpush1.bf16.msra.mxu1 %v6861_v9  ;;  %v6942_v9 = vcombine.high %v1985_v26, %v1989_v42  ;;  %v1841_v61 = vld [vmem:[#allocation10 + $0xad0] sm:$0xff]  ;;  %v6805_v55 = vcombine.low %v1849_v12, %v1853_v32 }
 0x2b0   : > { %6003 = vmatprep.subr.bf16.mxu1 %v6854_v16  ;;  %v1981_v16 = vld [vmem:[#allocation10 + $0xf30] sm:$0xff] }
 0x2b1   : > { %5963 = vmatpush1.bf16.msra.mxu0 %v6725_v21  ;;  %v6806_v21 = vcombine.high %v1849_v12, %v1853_v32  ;;  %v1969_v17 = vld [vmem:[#allocation10 + $0xed0] sm:$0xff]  ;;  %v6933_v56 = vcombine.low %v1977_v15, %v1981_v16  ;;  %v1554_v32 = vld [vmem:[#allocation10 + $0x1d8] sm:$0xff] }
 0x2b2   : > { %5964 = vmatprep.subr.bf16.mxu0 %v6718_v13  ;;  %v1845_v13 = vld [vmem:[#allocation10 + $0xaf0] sm:$0xff] }
 0x2b3   : > { %6004 = vmatpush1.bf16.msra.mxu1 %v6853_v34  ;;  %v6934_v34 = vcombine.high %v1977_v15, %v1981_v16  ;;  %v1833_v23 = vld [vmem:[#allocation10 + $0xa90] sm:$0xff]  ;;  %v6797_v7 = vcombine.low %v1841_v61, %v1845_v13 }
 0x2b4   : > { %6005 = vmatprep.subr.bf16.mxu1 %v6846_v27  ;;  %v1973_v27 = vld [vmem:[#allocation10 + $0xef0] sm:$0xff] }
 0x2b5   : > { %5965 = vmatpush1.bf16.msra.mxu0 %v6717_v54  ;;  %v6798_v54 = vcombine.high %v1841_v61, %v1845_v13  ;;  %v1961_v33 = vld [vmem:[#allocation10 + $0xe90] sm:$0xff]  ;;  %v6925_v45 = vcombine.low %v1969_v17, %v1973_v27  ;;  %v1546_v13 = vld [vmem:[#allocation10 + $0x198] sm:$0xff] }
 0x2b6   : > { %5966 = vmatprep.subr.bf16.mxu0 %v6710_v20  ;;  %v1837_v20 = vld [vmem:[#allocation10 + $0xab0] sm:$0xff] }
 0x2b7   : > { %6006 = vmatpush1.bf16.msra.mxu1 %v6845_v8  ;;  %v6926_v8 = vcombine.high %v1969_v17, %v1973_v27  ;;  %v1825_v50 = vld [vmem:[#allocation10 + $0xa50] sm:$0xff]  ;;  %v6789_v36 = vcombine.low %v1833_v23, %v1837_v20 }
 0x2b8   : > { %6007 = vmatprep.subr.bf16.mxu1 %v6838_v41  ;;  %v1965_v41 = vld [vmem:[#allocation10 + $0xeb0] sm:$0xff] }
 0x2b9   : > { %5967 = vmatpush1.bf16.msra.mxu0 %v6709_v38  ;;  %v6790_v38 = vcombine.high %v1833_v23, %v1837_v20  ;;  %v1953_v29 = vld [vmem:[#allocation10 + $0xe50] sm:$0xff]  ;;  %v6917_v60 = vcombine.low %v1961_v33, %v1965_v41 }
 0x2ba   : > { %5968 = vmatprep.subr.bf16.mxu0 %v6830_v37  ;;  %v1829_v37 = vld [vmem:[#allocation10 + $0xa70] sm:$0xff] }
 0x2bb   : > { %6008 = vmatpush1.bf16.msra.mxu1 %v6837_v59  ;;  %v6918_v59 = vcombine.high %v1961_v33, %v1965_v41  ;;  %v1817_v46 = vld [vmem:[#allocation10 + $0xa10] sm:$0xff]  ;;  %v6781_v6 = vcombine.low %v1825_v50, %v1829_v37 }
 0x2bc   : > { %6009 = vmatprep.subr.bf16.mxu1 %v6958_v51  ;;  %v1957_v51 = vld [vmem:[#allocation10 + $0xe70] sm:$0xff] }
 0x2bd   : > { %5969 = vmatpush2.bf16.msra.mxu0 %v6829_v2  ;;  %v6782_v2 = vcombine.high %v1825_v50, %v1829_v37  ;;  %v1945_v25 = vld [vmem:[#allocation10 + $0xe10] sm:$0xff]  ;;  %v6909_v26 = vcombine.low %v1953_v29, %v1957_v51 }
 0x2be   : > { %5970 = vmatprep.subr.bf16.mxu0 %v6822_v3  ;;  %v1821_v3 = vld [vmem:[#allocation10 + $0xa30] sm:$0xff] }
 0x2bf   : > { %6010 = vmatpush2.bf16.msra.mxu1 %v6957_v5  ;;  %v6910_v5 = vcombine.high %v1953_v29, %v1957_v51  ;;  %v2065_v42 = vld [vmem:[#allocation10 + $0x11d0] sm:$0xff]  ;;  %v6773_v12 = vcombine.low %v1817_v46, %v1821_v3 }
 0x2c0   : > { %6011 = vmatprep.subr.bf16.mxu1 %v6950_v52  ;;  %v1949_v52 = vld [vmem:[#allocation10 + $0xe30] sm:$0xff] }
 0x2c1   : > { %5971 = vmatpush2.bf16.msra.mxu0 %v6821_v1  ;;  %v6774_v1 = vcombine.high %v1817_v46, %v1821_v3  ;;  %v6901_v15 = vcombine.low %v1945_v25, %v1949_v52  ;;  %v2057_v16 = vld [vmem:[#allocation10 + $0x1190] sm:$0xff] }
 0x2c2   : > { %5972 = vmatprep.subr.bf16.mxu0 %v6814_v49  ;;  %v2069_v49 = vld [vmem:[#allocation10 + $0x11f0] sm:$0xff] }
 0x2c3   : > { %6012 = vmatpush2.bf16.msra.mxu1 %v6949_v63  ;;  %v6902_v63 = vcombine.high %v1945_v25, %v1949_v52  ;;  %v7021_v61 = vcombine.low %v2065_v42, %v2069_v49  ;;  %v2049_v27 = vld [vmem:[#allocation10 + $0x1150] sm:$0xff] }
 0x2c4   : > { %6013 = vmatprep.subr.bf16.mxu1 %v6942_v9  ;;  %v1558_v9 = vld [vmem:[#allocation10 + $0x1f8] sm:$0xff]  ;;  %v2041_v50 = vld [vmem:[#allocation10 + $0x1110] sm:$0xff] }
 0x2c5   : > { %5973 = vmatpush2.bf16.msra.mxu0 %v6813_v10  ;;  %v7022_v10 = vcombine.high %v2065_v42, %v2069_v49  ;;  %v6511_v17 = vcombine.low %v1554_v32, %v1558_v9  ;;  %v2045_v37 = vld [vmem:[#allocation10 + $0x1130] sm:$0xff]  ;;  %v1522_v42 = vld [vmem:[#allocation10 + $0xd8] sm:$0xff] }
 0x2c6   : > { %5974 = vmatprep.subr.bf16.mxu0 %v6806_v21  ;;  %v2061_v21 = vld [vmem:[#allocation10 + $0x11b0] sm:$0xff]  ;;  %v1526_v49 = vld [vmem:[#allocation10 + $0xf8] sm:$0xff] }
 0x2c7   : > { %6014 = vmatpush2.bf16.msra.mxu1 %v6941_v19  ;;  %v6512_v19 = vcombine.high %v1554_v32, %v1558_v9  ;;  %v7013_v20 = vcombine.low %v2057_v16, %v2061_v21  ;;  %v2033_v25 = vld [vmem:[#allocation10 + $0x10d0] sm:$0xff] }
 0x2c8   : > { %6015 = vmatprep.subr.bf16.mxu1 %v6934_v34  ;;  %v1550_v34 = vld [vmem:[#allocation10 + $0x1b8] sm:$0xff]  ;;  %v2025_v32 = vld [vmem:[#allocation10 + $0x1090] sm:$0xff] }
 0x2c9   : > { %5975 = vmatpush2.bf16.msra.mxu0 %v6805_v55  ;;  %v7014_v55 = vcombine.high %v2057_v16, %v2061_v21  ;;  %v6504_v23 = vcombine.high %v1546_v13, %v1550_v34  ;;  %v2029_v9 = vld [vmem:[#allocation10 + $0x10b0] sm:$0xff]  ;;  %v1514_v16 = vld [vmem:[#allocation10 + $0x98] sm:$0xff] }
 0x2ca   : > { %5976 = vmatprep.subr.bf16.mxu0 %v6798_v54  ;;  %v2053_v54 = vld [vmem:[#allocation10 + $0x1170] sm:$0xff]  ;;  %v1518_v21 = vld [vmem:[#allocation10 + $0xb8] sm:$0xff] }
 0x2cb   : > { %6016 = vmatpush2.bf16.msra.mxu1 %v6933_v56  ;;  %v7005_v51 = vcombine.low %v2049_v27, %v2053_v54 }
 0x2cc   : > { %6017 = vmatprep.subr.bf16.mxu1 %v6926_v8  ;;  %v1538_v8 = vld [vmem:[#allocation10 + $0x158] sm:$0xff] }
 0x2cd   : > { %5977 = vmatpush2.bf16.msra.mxu0 %v6797_v7  ;;  %v1542_v7 = vld [vmem:[#allocation10 + $0x178] sm:$0xff] }
 0x2ce   : > { %5978 = vmatprep.subr.bf16.mxu0 %v6790_v38  ;;  %v7006_v38 = vcombine.high %v2049_v27, %v2053_v54  ;;  %v6496_v29 = vcombine.high %v1538_v8, %v1542_v7  ;;  %v1506_v27 = vld [vmem:[#allocation10 + $0x58] sm:$0xff] }
 0x2cf   : > { %6018 = vmatpush2.bf16.msra.mxu1 %v6925_v45  ;;  %v6503_v45 = vcombine.low %v1546_v13, %v1550_v34  ;;  %v2017_v13 = vld [vmem:[#allocation10 + $0x1050] sm:$0xff]  ;;  %v1510_v54 = vld [vmem:[#allocation10 + $0x78] sm:$0xff] }
 0x2d0   : > { %6019 = vmatprep.subr.bf16.mxu1 %v6918_v59  ;;  %v2021_v34 = vld [vmem:[#allocation10 + $0x1070] sm:$0xff] }
 0x2d1   : > { %5979 = vmatpush2.bf16.msra.mxu0 %v6789_v36 }
 0x2d2   : > { %5980 = vmatprep.subr.bf16.mxu0 %v6782_v2  ;;  %v1530_v2 = vld [vmem:[#allocation10 + $0x118] sm:$0xff] }
 0x2d3   : > { %6020 = vmatpush2.bf16.msra.mxu1 %v6917_v60  ;;  %v1534_v60 = vld [vmem:[#allocation10 + $0x138] sm:$0xff] }
 0x2d4   : > { %6021 = vmatprep.subr.bf16.mxu1 %v6910_v5  ;;  %v6998_v5 = vcombine.high %v2041_v50, %v2045_v37 }
 0x2d5   : > { %5981 = vmatpush2.bf16.msra.mxu0 %v6781_v6  ;;  %v6495_v6 = vcombine.low %v1538_v8, %v1542_v7  ;;  %v2009_v8 = vld [vmem:[#allocation10 + $0x1010] sm:$0xff] }
 0x2d6   : > { %5982 = vmatprep.subr.bf16.mxu0 %v6774_v1  ;;  %v6488_v1 = vcombine.high %v1530_v2, %v1534_v60  ;;  %v2013_v7 = vld [vmem:[#allocation10 + $0x1030] sm:$0xff] }
 0x2d7   : > { %6022 = vmatpush2.bf16.msra.mxu1 %v6909_v26  ;;  %v6997_v26 = vcombine.low %v2041_v50, %v2045_v37  ;;  %v1498_v50 = vld [vmem:[#allocation10 + $0x18] sm:$0xff] }
 0x2d8   : > { %6023 = vmatprep.subr.bf16.mxu1 %v6902_v63  ;;  %v1502_v37 = vld [vmem:[#allocation10 + $0x38] sm:$0xff] }
 0x2d9   : > { %5983 = vmatpush2.bf16.msra.mxu0 %v6773_v12  ;;  %v6487_v12 = vcombine.low %v1530_v2, %v1534_v60  ;;  %v2133_v2 = vld [vmem:[#allocation10 + $0x13f0] sm:$0xff]  ;;  %v6456_v60 = vcombine.high %v1498_v50, %v1502_v37 }
 0x2da   : > { %6034 = vmatprep.subr.bf16.mxu0 %v7022_v10  ;;  %v6480_v10 = vcombine.high %v1522_v42, %v1526_v49 }
 0x2db   : > { %6024 = vmatpush2.bf16.msra.mxu1 %v6901_v15 }
 0x2dc   : > { %v8343_v56 = vpop.f32.mrf.mxu0  ;;  %5985 = vmatmul.mubr.bf16.vlgmr.msra.gmra.mxu0 %v8286_v14  ;;  %6075 = vmatprep.subr.bf16.mxu1 %v6512_v19  ;;  %v6982_v19 = vcombine.high %v2025_v32, %v2029_v9 }
 0x2dd   : > { %6035 = vmatpush1.bf16.msra.mxu0 %v7021_v61  ;;  %6066 = vmatprep.mubr.bf16.mxu0 %v8289_v53  ;;  %v6479_v61 = vcombine.low %v1522_v42, %v1526_v49  ;;  %v1610_v42 = vld [vmem:[#allocation10 + $0x398] sm:$0xff] }
 0x2de   : > { %v8347_v33 = vpop.f32.mrf.mxu0  ;;  %v8349_v41 = vpop.f32.mrf.mxu1  ;;  %6026 = vmatmul.mubr.bf16.vlgmr.msra.gmra.mxu1 %v8294_v57  ;;  %6036 = vmatprep.subr.bf16.mxu0 %v7014_v55  ;;  %v6472_v55 = vcombine.high %v1514_v16, %v1518_v21  ;;  %v1614_v49 = vld [vmem:[#allocation10 + $0x3b8] sm:$0xff] }
 0x2df   : > { %6076 = vmatpush1.bf16.msra.mxu1 %v6511_v17  ;;  %6107 = vmatprep.mubr.bf16.mxu1 %v8234_v58  ;;  %v2037_v58 = vld [vmem:[#allocation10 + $0x10f0] sm:$0xff]  ;;  %v6981_v17 = vcombine.low %v2025_v32, %v2029_v9 }
 0x2e0   : > { %v5744_v59 = vpop.f32.mrf.mxu0  ;;  %v8353_v36 = vpop.f32.mrf.mxu1  ;;  %6077 = vmatprep.subr.bf16.mxu1 %v6504_v23  ;;  %v6990_v63 = vcombine.high %v2033_v25, %v2037_v58  ;;  %v6989_v15 = vcombine.low %v2033_v25, %v2037_v58  ;;  %v6974_v23 = vcombine.high %v2017_v13, %v2021_v34  ;;  %v6455_v25 = vcombine.low %v1498_v50, %v1502_v37  ;;  %v2121_v58 = vld [vmem:[#allocation10 + $0x1390] sm:$0xff]  ;;  %v1586_v50 = vld [vmem:[#allocation10 + $0x2d8] sm:$0xff] }
 0x2e1   : > { %6037 = vmatpush1.bf16.msra.mxu0 %v7013_v20  ;;  %v6471_v20 = vcombine.low %v1514_v16, %v1518_v21  ;;  %v6966_v59 = vcombine.high %v2009_v8, %v2013_v7  ;;  %v2113_v32 = vld [vmem:[#allocation10 + $0x1350] sm:$0xff]  ;;  %v1602_v16 = vld [vmem:[#allocation10 + $0x358] sm:$0xff] }
 0x2e2   : > { %v5745_v46 = vpop.f32.mrf.mxu0  ;;  %v5785_v3 = vpop.f32.mrf.mxu1  ;;  %6038 = vmatprep.subr.bf16.mxu0 %v7006_v38  ;;  %v6464_v38 = vcombine.high %v1506_v27, %v1510_v54  ;;  %v2117_v9 = vld [vmem:[#allocation10 + $0x1370] sm:$0xff]  ;;  %v1606_v21 = vld [vmem:[#allocation10 + $0x378] sm:$0xff] }
 0x2e3   : > { %6078 = vmatpush1.bf16.msra.mxu1 %v6503_v45  ;;  %v6973_v45 = vcombine.low %v2017_v13, %v2021_v34  ;;  %v6965_v46 = vcombine.low %v2009_v8, %v2013_v7  ;;  %v1618_v3 = vld [vmem:[#allocation10 + $0x3d8] sm:$0xff]  ;;  %v2105_v13 = vld [vmem:[#allocation10 + $0x1310] sm:$0xff] }
 0x2e4   : > { %v5786_v52 = vpop.f32.mrf.mxu1  ;;  %6079 = vmatprep.subr.bf16.mxu1 %v6496_v29  ;;  %v6463_v29 = vcombine.low %v1506_v27, %v1510_v54  ;;  %v2109_v34 = vld [vmem:[#allocation10 + $0x1330] sm:$0xff]  ;;  %v1594_v27 = vld [vmem:[#allocation10 + $0x318] sm:$0xff] }
 0x2e5   : > { %6039 = vmatpush1.bf16.msra.mxu0 %v7005_v51  ;;  %v2129_v51 = vld [vmem:[#allocation10 + $0x13d0] sm:$0xff]  ;;  %v1598_v54 = vld [vmem:[#allocation10 + $0x338] sm:$0xff] }
 0x2e6   : > { %6040 = vmatprep.subr.bf16.mxu0 %v6998_v5  ;;  %v1622_v5 = vld [vmem:[#allocation10 + $0x3f8] sm:$0xff]  ;;  %v2125_v52 = vld [vmem:[#allocation10 + $0x13b0] sm:$0xff] }
 0x2e7   : > { %6080 = vmatpush1.bf16.msra.mxu1 %v6495_v6  ;;  %v7086_v6 = vcombine.high %v2129_v51, %v2133_v2  ;;  %v2097_v8 = vld [vmem:[#allocation10 + $0x12d0] sm:$0xff]  ;;  %v1590_v37 = vld [vmem:[#allocation10 + $0x2f8] sm:$0xff] }
 0x2e8   : > { %6081 = vmatprep.subr.bf16.mxu1 %v6488_v1  ;;  %v6576_v1 = vcombine.high %v1618_v3, %v1622_v5  ;;  %v2101_v7 = vld [vmem:[#allocation10 + $0x12f0] sm:$0xff] }
 0x2e9   : > { %6041 = vmatpush1.bf16.msra.mxu0 %v6997_v26  ;;  %v7085_v26 = vcombine.low %v2129_v51, %v2133_v2  ;;  %v2089_v51 = vld [vmem:[#allocation10 + $0x1290] sm:$0xff] }
 0x2ea   : > { %6042 = vmatprep.subr.bf16.mxu0 %v6990_v63  ;;  %v7078_v63 = vcombine.high %v2121_v58, %v2125_v52  ;;  %v2093_v2 = vld [vmem:[#allocation10 + $0x12b0] sm:$0xff] }
 0x2eb   : > { %6082 = vmatpush1.bf16.msra.mxu1 %v6487_v12  ;;  %v6575_v12 = vcombine.low %v1618_v3, %v1622_v5  ;;  %v1578_v3 = vld [vmem:[#allocation10 + $0x298] sm:$0xff] }
 0x2ec   : > { %6083 = vmatprep.subr.bf16.mxu1 %v6480_v10  ;;  %v6568_v10 = vcombine.high %v1610_v42, %v1614_v49  ;;  %v1582_v5 = vld [vmem:[#allocation10 + $0x2b8] sm:$0xff] }
 0x2ed   : > { %6043 = vmatpush1.bf16.msra.mxu0 %v6989_v15  ;;  %v7077_v15 = vcombine.low %v2121_v58, %v2125_v52  ;;  %v2081_v58 = vld [vmem:[#allocation10 + $0x1250] sm:$0xff] }
 0x2ee   : > { %6044 = vmatprep.subr.bf16.mxu0 %v6982_v19  ;;  %v7070_v19 = vcombine.high %v2113_v32, %v2117_v9  ;;  %v2085_v52 = vld [vmem:[#allocation10 + $0x1270] sm:$0xff] }
 0x2ef   : > { %6084 = vmatpush1.bf16.msra.mxu1 %v6479_v61  ;;  %v6567_v61 = vcombine.low %v1610_v42, %v1614_v49  ;;  %v1570_v42 = vld [vmem:[#allocation10 + $0x258] sm:$0xff] }
 0x2f0   : > { %6085 = vmatprep.subr.bf16.mxu1 %v6472_v55  ;;  %v6560_v55 = vcombine.high %v1602_v16, %v1606_v21  ;;  %v1574_v49 = vld [vmem:[#allocation10 + $0x278] sm:$0xff] }
 0x2f1   : > { %6045 = vmatpush1.bf16.msra.mxu0 %v6981_v17  ;;  %v7069_v17 = vcombine.low %v2113_v32, %v2117_v9  ;;  %v2073_v32 = vld [vmem:[#allocation10 + $0x1210] sm:$0xff] }
 0x2f2   : > { %6046 = vmatprep.subr.bf16.mxu0 %v6974_v23  ;;  %v7062_v23 = vcombine.high %v2105_v13, %v2109_v34  ;;  %v2077_v9 = vld [vmem:[#allocation10 + $0x1230] sm:$0xff] }
 0x2f3   : > { %6086 = vmatpush1.bf16.msra.mxu1 %v6471_v20  ;;  %v6559_v20 = vcombine.low %v1602_v16, %v1606_v21  ;;  %v7037_v21 = vcombine.low %v2081_v58, %v2085_v52 }
 0x2f4   : > { %6087 = vmatprep.subr.bf16.mxu1 %v6464_v38  ;;  %v6552_v38 = vcombine.high %v1594_v27, %v1598_v54 }
 0x2f5   : > { %6047 = vmatpush1.bf16.msra.mxu0 %v6973_v45  ;;  %v7061_v45 = vcombine.low %v2105_v13, %v2109_v34  ;;  %v7030_v13 = vcombine.high %v2073_v32, %v2077_v9 }
 0x2f6   : > { %6048 = vmatprep.subr.bf16.mxu0 %v6966_v59  ;;  %v7054_v59 = vcombine.high %v2097_v8, %v2101_v7 }
 0x2f7   : > { %6088 = vmatpush1.bf16.msra.mxu1 %v6463_v29  ;;  %v6551_v29 = vcombine.low %v1594_v27, %v1598_v54  ;;  %v1686_v27 = vld [vmem:[#allocation10 + $0x5f8] sm:$0xff] }
 0x2f8   : > { %6089 = vmatprep.subr.bf16.mxu1 %v6456_v60  ;;  %v6544_v60 = vcombine.high %v1586_v50, %v1590_v37 }
 0x2f9   : > { %6049 = vmatpush1.bf16.msra.mxu0 %v6965_v46  ;;  %v7053_v46 = vcombine.low %v2097_v8, %v2101_v7  ;;  %v1814_v8 = vld [vmem:[#allocation10 + $0x9f8] sm:$0xff] }
 0x2fa   : > { %6050 = vmatprep.subr.bf16.mxu0 %v7086_v6  ;;  %v7046_v6 = vcombine.high %v2089_v51, %v2093_v2 }
 0x2fb   : > { %6090 = vmatpush1.bf16.msra.mxu1 %v6455_v25  ;;  %v6543_v25 = vcombine.low %v1586_v50, %v1590_v37  ;;  %v1674_v50 = vld [vmem:[#allocation10 + $0x598] sm:$0xff] }
 0x2fc   : > { %6091 = vmatprep.subr.bf16.mxu1 %v6576_v1  ;;  %v6536_v1 = vcombine.high %v1578_v3, %v1582_v5  ;;  %v1678_v37 = vld [vmem:[#allocation10 + $0x5b8] sm:$0xff] }
 0x2fd   : > { %6051 = vmatpush2.bf16.msra.mxu0 %v7085_v26  ;;  %v7045_v26 = vcombine.low %v2089_v51, %v2093_v2 }
 0x2fe   : > { %6052 = vmatprep.subr.bf16.mxu0 %v7078_v63  ;;  %v7038_v63 = vcombine.high %v2081_v58, %v2085_v52 }
 0x2ff   : > { %6092 = vmatpush2.bf16.msra.mxu1 %v6575_v12  ;;  %v6535_v12 = vcombine.low %v1578_v3, %v1582_v5  ;;  %v6632_v3 = vcombine.high %v1674_v50, %v1678_v37  ;;  %v1666_v5 = vld [vmem:[#allocation10 + $0x558] sm:$0xff] }
 0x300   : > { %6093 = vmatprep.subr.bf16.mxu1 %v6568_v10  ;;  %v6528_v10 = vcombine.high %v1570_v42, %v1574_v49 }
 0x301   : > { %6053 = vmatpush2.bf16.msra.mxu0 %v7077_v15  ;;  %v8355_v15 = vld [vmem:[#allocation12] sm:$0xff] }
 0x302   : > { %6054 = vmatprep.subr.bf16.mxu0 %v7070_v19  ;;  %v2148_v16 = vrot.slane %v8355_v15, %v7631_v31  ;;  %v1562_v19 = vld [vmem:[#allocation10 + $0x218] sm:$0xff]  ;;  %v2152_v34 = vrot.slane %v8355_v15, %v7650_v39 }
 0x303   : > { %6094 = vmatpush2.bf16.msra.mxu1 %v6567_v61  ;;  %v1566_v61 = vld [vmem:[#allocation10 + $0x238] sm:$0xff] }
 0x304   : > { %6095 = vmatprep.subr.bf16.mxu1 %v6560_v55  ;;  %v6527_v55 = vcombine.low %v1570_v42, %v1574_v49  ;;  %v6520_v54 = vcombine.high %v1562_v19, %v1566_v61  ;;  %v1810_v31 = vld [vmem:[#allocation10 + $0x9d8] sm:$0xff]  ;;  %v6519_v39 = vcombine.low %v1562_v19, %v1566_v61 }
 0x305   : > { %6055 = vmatpush2.bf16.msra.mxu0 %v7069_v17  ;;  %v1682_v17 = vld [vmem:[#allocation10 + $0x5d8] sm:$0xff] }
 0x306   : > { %6056 = vmatprep.subr.bf16.mxu0 %v7062_v23  ;;  %v5700_v23 = vadd.f32 %v8332_v0, %v2148_v16  ;;  %v6640_v7 = vcombine.high %v1682_v17, %v1686_v27  ;;  %v6639_v2 = vcombine.low %v1682_v17, %v1686_v27  ;;  %v1794_v42 = vld [vmem:[#allocation10 + $0x958] sm:$0xff] }
 0x307   : > { %6096 = vmatpush2.bf16.msra.mxu1 %v6559_v20  ;;  %v7029_v20 = vcombine.low %v2073_v32, %v2077_v9  ;;  %v1798_v49 = vld [vmem:[#allocation10 + $0x978] sm:$0xff] }
 0x308   : > { %6097 = vmatprep.subr.bf16.mxu1 %v6552_v38  ;;  %v5702_v38 = vadd.f32 %v8339_v48, %v2152_v34  ;;  %v8514_v19 = vld [vmem:[#allocation18_spill] sm:$0xff] }
 0x309   : > { %6057 = vmatpush2.bf16.msra.mxu0 %v7061_v45  ;;  %v5741_v45 = vadd.f32 %v8343_v56, %v5700_v23  ;;  %v6767_v56 = vcombine.low %v1810_v31, %v1814_v8  ;;  %v1790_v17 = vld [vmem:[#allocation10 + $0x938] sm:$0xff] }
 0x30a   : > { %6058 = vmatprep.subr.bf16.mxu0 %v7054_v59  ;;  %v6768_v59 = vcombine.high %v1810_v31, %v1814_v8  ;;  %v5743_v0 = vadd.f32 %v8347_v33, %v5702_v38  ;;  %v1650_v31 = vld [vmem:[#allocation10 + $0x4d8] sm:$0xff] }
 0x30b   : > { %6098 = vmatpush2.bf16.msra.mxu1 %v6551_v29  ;;  %v7399_v29 = vmov 1983009808   ;;  %v5782_v48 = vadd.f32 %v8349_v41, %v5741_v45  ;;  %v1654_v8 = vld [vmem:[#allocation10 + $0x4f8] sm:$0xff] }
 0x30c   : > { %6099 = vmatprep.subr.bf16.mxu1 %v6544_v60  ;;  %v6291_v51 = vunpack.c.l.s4 %v7399_v29  ;;  %v1802_v60 = vld [vmem:[#allocation10 + $0x998] sm:$0xff]  ;;  %v5784_v33 = vadd.f32 %v8353_v36, %v5743_v0  ;;  %v6608_v29 = vcombine.high %v1650_v31, %v1654_v8 }
 0x30d   : > { %6059 = vmatpush2.bf16.msra.mxu0 %v7053_v46  ;;  %v1806_v46 = vld [vmem:[#allocation10 + $0x9b8] sm:$0xff] }
 0x30e   : > { %6060 = vmatprep.subr.bf16.mxu0 %v7046_v6  ;;  %v1670_v6 = vld [vmem:[#allocation10 + $0x578] sm:$0xff]  ;;  %v6760_v58 = vcombine.high %v1802_v60, %v1806_v46  ;;  %v6292_v52 = vunpack.c.0.s8 %v6291_v51  ;;  %v6759_v9 = vcombine.low %v1802_v60, %v1806_v46 }
 0x30f   : > { %6100 = vmatpush2.bf16.msra.mxu1 %v6543_v25  ;;  %v1662_v36 = vld [vmem:[#allocation10 + $0x538] sm:$0xff] }
 0x310   : > { %6101 = vmatprep.subr.bf16.mxu1 %v6536_v1  ;;  %v8372_v61 = vsub.s32 %v6292_v52, %v8514_v19  ;;  %v1646_v60 = vld [vmem:[#allocation10 + $0x4b8] sm:$0xff] }
 0x311   : > { %6061 = vmatpush2.bf16.msra.mxu0 %v7045_v26  ;;  %v6631_v26 = vcombine.low %v1674_v50, %v1678_v37  ;;  %v1778_v37 = vld [vmem:[#allocation10 + $0x8d8] sm:$0xff] }
 0x312   : > { %6062 = vmatprep.subr.bf16.mxu0 %v7038_v63  ;;  %v6296_v45 = vrot.slane %v6288_v40, %v8372_v61  ;;  %v1766_v52 = vld [vmem:[#allocation10 + $0x878] sm:$0xff] }
 0x313   : > { %6102 = vmatpush2.bf16.msra.mxu1 %v6535_v12  ;;  %v6624_v12 = vcombine.high %v1666_v5, %v1670_v6  ;;  %v1878_v19 = vld [vmem:[#allocation10 + $0xbf8] sm:$0xff] }
 0x314   : > { %6103 = vmatprep.subr.bf16.mxu1 %v6528_v10  ;;  %v1658_v10 = vld [vmem:[#allocation10 + $0x518] sm:$0xff] }
 0x315   : > { %6063 = vmatpush2.bf16.msra.mxu0 %v7037_v21  ;;  %v6615_v50 = vcombine.low %v1658_v10, %v1662_v36 }
 0x316   : > { %6064 = vmatprep.subr.bf16.mxu0 %v7030_v13 }
 0x317   : > { %6104 = vmatpush2.bf16.msra.mxu1 %v6527_v55  ;;  %v1786_v55 = vld [vmem:[#allocation10 + $0x918] sm:$0xff] }
 0x318   : > { %6105 = vmatprep.subr.bf16.mxu1 %v6520_v54  ;;  %v6744_v38 = vcombine.high %v1786_v55, %v1790_v17  ;;  %v6743_v0 = vcombine.low %v1786_v55, %v1790_v17  ;;  %v1742_v55 = vld [vmem:[#allocation10 + $0x7b8] sm:$0xff] }
 0x319   : > { %6065 = vmatpush2.bf16.msra.mxu0 %v7029_v20  ;;  %v6751_v20 = vcombine.low %v1794_v42, %v1798_v49 }
 0x31a   : > { %6116 = vmatprep.subr.bf16.mxu0 %v6640_v7 }
 0x31b   : > { %6106 = vmatpush2.bf16.msra.mxu1 %v6519_v39 }
 0x31c   : > { %v5822_v25 = vpop.f32.mrf.mxu0  ;;  %6067 = vmatmul.mubr.bf16.vlgmr.msra.gmra.mxu0 %v8301_v11  ;;  %6157 = vmatprep.subr.bf16.mxu1 %v6768_v59  ;;  %v1782_v59 = vld [vmem:[#allocation10 + $0x8f8] sm:$0xff] }
 0x31d   : > { %v5823_v1 = vadd.f32 %v5822_v25, %v5782_v48  ;;  %6117 = vmatpush1.bf16.msra.mxu0 %v6639_v2  ;;  %6148 = vmatprep.mubr.bf16.mxu0 %v8244_v4  ;;  %v6752_v4 = vcombine.high %v1794_v42, %v1798_v49  ;;  %v1642_v2 = vld [vmem:[#allocation10 + $0x498] sm:$0xff]  ;;  %v6736_v46 = vcombine.high %v1778_v37, %v1782_v59 }
 0x31e   : > { %v5824_v41 = vpop.f32.mrf.mxu0  ;;  %v5863_v63 = vpop.f32.mrf.mxu1  ;;  %6108 = vmatmul.mubr.bf16.vlgmr.msra.gmra.mxu1 %v8230_v22  ;;  %6118 = vmatprep.subr.bf16.mxu0 %v6632_v3  ;;  %v6623_v22 = vcombine.low %v1666_v5, %v1670_v6  ;;  %v6607_v3 = vcombine.low %v1650_v31, %v1654_v8  ;;  %v6600_v40 = vcombine.high %v1642_v2, %v1646_v60  ;;  %v1638_v5 = vld [vmem:[#allocation10 + $0x478] sm:$0xff] }
 0x31f   : > { %v5825_v32 = vadd.f32 %v5824_v41, %v5784_v33  ;;  %6158 = vmatpush1.bf16.msra.mxu1 %v6767_v56  ;;  %6189 = vmatprep.mubr.bf16.mxu1 %v8247_v62  ;;  %v5864_v13 = vadd.f32 %v5863_v63, %v5823_v1  ;;  %v6616_v62 = vcombine.high %v1658_v10, %v1662_v36  ;;  %v1634_v56 = vld [vmem:[#allocation10 + $0x458] sm:$0xff] }
 0x320   : > { %v5826_v16 = vpop.f32.mrf.mxu0  ;;  %v5865_v21 = vpop.f32.mrf.mxu1  ;;  %6159 = vmatprep.subr.bf16.mxu1 %v6760_v58  ;;  %v6735_v48 = vcombine.low %v1778_v37, %v1782_v59  ;;  %v6728_v6 = vcombine.high %v1770_v28, %v1774_v30  ;;  %v6599_v25 = vcombine.low %v1642_v2, %v1646_v60  ;;  %v1762_v58 = vld [vmem:[#allocation10 + $0x858] sm:$0xff]  ;;  %v6592_v33 = vcombine.high %v1634_v56, %v1638_v5 }
 0x321   : > { %v5866_v34 = vadd.f32 %v5865_v21, %v5825_v32  ;;  %6119 = vmatpush1.bf16.msra.mxu0 %v6631_v26  ;;  %v6727_v1 = vcombine.low %v1770_v28, %v1774_v30  ;;  %v1626_v26 = vld [vmem:[#allocation10 + $0x418] sm:$0xff]  ;;  %v6720_v49 = vcombine.high %v1762_v58, %v1766_v52  ;;  %v6591_v41 = vcombine.low %v1634_v56, %v1638_v5 }
 0x322   : > { %v5827_v27 = vpop.f32.mrf.mxu0  ;;  %v5867_v54 = vpop.f32.mrf.mxu1  ;;  %6120 = vmatprep.subr.bf16.mxu0 %v6624_v12  ;;  %v1630_v42 = vld [vmem:[#allocation10 + $0x438] sm:$0xff] }
 0x323   : > { %v6289_v23 = vcombine.low %v5864_v13, %v5866_v34  ;;  %6160 = vmatpush1.bf16.msra.mxu1 %v6759_v9  ;;  %v1754_v63 = vld [vmem:[#allocation10 + $0x818] sm:$0xff]  ;;  %v6584_v32 = vcombine.high %v1626_v26, %v1630_v42  ;;  %v6719_v9 = vcombine.low %v1762_v58, %v1766_v52  ;;  %v6583_v21 = vcombine.low %v1626_v26, %v1630_v42 }
 0x324   : > { %v5868_v7 = vpop.f32.mrf.mxu1  ;;  %6161 = vmatprep.subr.bf16.mxu1 %v6752_v4  ;;  %v1758_v12 = vld [vmem:[#allocation10 + $0x838] sm:$0xff] }
 0x325   : > { %v6303_v39 = vrot.slane %v6289_v23, %v8372_v61  ;;  %6121 = vmatpush1.bf16.msra.mxu0 %v6623_v22  ;;  %v1746_v10 = vld [vmem:[#allocation10 + $0x7d8] sm:$0xff]  ;;  %v6712_v16 = vcombine.high %v1754_v63, %v1758_v12  ;;  %v6711_v34 = vcombine.low %v1754_v63, %v1758_v12 }
 0x326   : > { %6122 = vmatprep.subr.bf16.mxu0 %v6616_v62  ;;  %v1750_v36 = vld [vmem:[#allocation10 + $0x7f8] sm:$0xff] }
 0x327   : > { %v6304_v51 = vcombine.low %v6296_v45, %v6303_v39  ;;  %6162 = vmatpush1.bf16.msra.mxu1 %v6751_v20  ;;  %v1874_v4 = vld [vmem:[#allocation10 + $0xbd8] sm:$0xff]  ;;  %v6704_v13 = vcombine.high %v1746_v10, %v1750_v36  ;;  %v6703_v27 = vcombine.low %v1746_v10, %v1750_v36 }
 0x328   : > { %6163 = vmatprep.subr.bf16.mxu1 %v6744_v38  ;;  %v1738_v22 = vld [vmem:[#allocation10 + $0x798] sm:$0xff]  ;;  %v6832_v17 = vcombine.high %v1874_v4, %v1878_v19  ;;  %v6831_v20 = vcombine.low %v1874_v4, %v1878_v19 }
 0x329   : > { %6324 = vst [vmem:[#allocation13] sm:$0xff] %v6304_v51  ;;  %6123 = vmatpush1.bf16.msra.mxu0 %v6615_v50  ;;  %v1866_v54 = vld [vmem:[#allocation10 + $0xb98] sm:$0xff]  ;;  %v6696_v23 = vcombine.high %v1738_v22, %v1742_v55  ;;  %v6695_v38 = vcombine.low %v1738_v22, %v1742_v55 }
 0x32a   : > { %6124 = vmatprep.subr.bf16.mxu0 %v6608_v29  ;;  %v1870_v62 = vld [vmem:[#allocation10 + $0xbb8] sm:$0xff] }
 0x32b   : > { %6164 = vmatpush1.bf16.msra.mxu1 %v6743_v0  ;;  %v1730_v31 = vld [vmem:[#allocation10 + $0x758] sm:$0xff]  ;;  %v6824_v7 = vcombine.high %v1866_v54, %v1870_v62  ;;  %v6823_v37 = vcombine.low %v1866_v54, %v1870_v62 }
 0x32c   : > { %6165 = vmatprep.subr.bf16.mxu1 %v6736_v46  ;;  %v1734_v8 = vld [vmem:[#allocation10 + $0x778] sm:$0xff] }
 0x32d   : > { %6125 = vmatpush1.bf16.msra.mxu0 %v6607_v3  ;;  %v1858_v45 = vld [vmem:[#allocation10 + $0xb58] sm:$0xff]  ;;  %v6688_v50 = vcombine.high %v1730_v31, %v1734_v8  ;;  %v6687_v0 = vcombine.low %v1730_v31, %v1734_v8 }
 0x32e   : > { %6126 = vmatprep.subr.bf16.mxu0 %v6600_v40  ;;  %v1862_v39 = vld [vmem:[#allocation10 + $0xb78] sm:$0xff] }
 0x32f   : > { %6166 = vmatpush1.bf16.msra.mxu1 %v6735_v48  ;;  %v1722_v59 = vld [vmem:[#allocation10 + $0x718] sm:$0xff]  ;;  %v6816_v51 = vcombine.high %v1858_v45, %v1862_v39  ;;  %v6815_v3 = vcombine.low %v1858_v45, %v1862_v39 }
 0x330   : > { %6167 = vmatprep.subr.bf16.mxu1 %v6728_v6  ;;  %v1726_v29 = vld [vmem:[#allocation10 + $0x738] sm:$0xff] }
 0x331   : > { %6127 = vmatpush1.bf16.msra.mxu0 %v6599_v25  ;;  %v1850_v2 = vld [vmem:[#allocation10 + $0xb18] sm:$0xff]  ;;  %v6680_v46 = vcombine.high %v1722_v59, %v1726_v29  ;;  %v6679_v48 = vcombine.low %v1722_v59, %v1726_v29 }
 0x332   : > { %6128 = vmatprep.subr.bf16.mxu0 %v6592_v33  ;;  %v1854_v60 = vld [vmem:[#allocation10 + $0xb38] sm:$0xff] }
 0x333   : > { %6168 = vmatpush1.bf16.msra.mxu1 %v6727_v1  ;;  %v1714_v28 = vld [vmem:[#allocation10 + $0x6d8] sm:$0xff]  ;;  %v6808_v40 = vcombine.high %v1850_v2, %v1854_v60  ;;  %v6807_v25 = vcombine.low %v1850_v2, %v1854_v60  ;;  %v2160_v2 = vrot.slane %v8355_v15, %v7616_v24 }
 0x334   : > { %6169 = vmatprep.subr.bf16.mxu1 %v6720_v49  ;;  %v1718_v30 = vld [vmem:[#allocation10 + $0x6f8] sm:$0xff] }
 0x335   : > { %6129 = vmatpush1.bf16.msra.mxu0 %v6591_v41  ;;  %v1842_v56 = vld [vmem:[#allocation10 + $0xad8] sm:$0xff]  ;;  %v6672_v6 = vcombine.high %v1714_v28, %v1718_v30  ;;  %v6671_v1 = vcombine.low %v1714_v28, %v1718_v30 }
 0x336   : > { %6130 = vmatprep.subr.bf16.mxu0 %v6584_v32  ;;  %v1846_v5 = vld [vmem:[#allocation10 + $0xaf8] sm:$0xff] }
 0x337   : > { %6170 = vmatpush1.bf16.msra.mxu1 %v6719_v9  ;;  %v1706_v58 = vld [vmem:[#allocation10 + $0x698] sm:$0xff]  ;;  %v6800_v33 = vcombine.high %v1842_v56, %v1846_v5  ;;  %v6799_v41 = vcombine.low %v1842_v56, %v1846_v5 }
 0x338   : > { %6171 = vmatprep.subr.bf16.mxu1 %v6712_v16  ;;  %v1710_v52 = vld [vmem:[#allocation10 + $0x6b8] sm:$0xff] }
 0x339   : > { %6131 = vmatpush1.bf16.msra.mxu0 %v6583_v21  ;;  %v1834_v26 = vld [vmem:[#allocation10 + $0xa98] sm:$0xff]  ;;  %v6664_v49 = vcombine.high %v1706_v58, %v1710_v52  ;;  %v6663_v9 = vcombine.low %v1706_v58, %v1710_v52 }
 0x33a   : > { %6132 = vmatprep.subr.bf16.mxu0 %v6704_v13  ;;  %v1838_v42 = vld [vmem:[#allocation10 + $0xab8] sm:$0xff] }
 0x33b   : > { %6172 = vmatpush1.bf16.msra.mxu1 %v6711_v34  ;;  %v1698_v63 = vld [vmem:[#allocation10 + $0x658] sm:$0xff]  ;;  %v6792_v32 = vcombine.high %v1834_v26, %v1838_v42  ;;  %v6791_v21 = vcombine.low %v1834_v26, %v1838_v42 }
 0x33c   : > { %6173 = vmatprep.subr.bf16.mxu1 %v6832_v17  ;;  %v1702_v12 = vld [vmem:[#allocation10 + $0x678] sm:$0xff] }
 0x33d   : > { %6133 = vmatpush2.bf16.msra.mxu0 %v6703_v27  ;;  %v1826_v10 = vld [vmem:[#allocation10 + $0xa58] sm:$0xff]  ;;  %v6656_v16 = vcombine.high %v1698_v63, %v1702_v12  ;;  %v6655_v34 = vcombine.low %v1698_v63, %v1702_v12 }
 0x33e   : > { %6134 = vmatprep.subr.bf16.mxu0 %v6696_v23  ;;  %v1830_v36 = vld [vmem:[#allocation10 + $0xa78] sm:$0xff] }
 0x33f   : > { %6174 = vmatpush2.bf16.msra.mxu1 %v6831_v20  ;;  %v1690_v4 = vld [vmem:[#allocation10 + $0x618] sm:$0xff]  ;;  %v6784_v13 = vcombine.high %v1826_v10, %v1830_v36  ;;  %v6783_v27 = vcombine.low %v1826_v10, %v1830_v36 }
 0x340   : > { %6175 = vmatprep.subr.bf16.mxu1 %v6824_v7  ;;  %v1694_v19 = vld [vmem:[#allocation10 + $0x638] sm:$0xff] }
 0x341   : > { %6135 = vmatpush2.bf16.msra.mxu0 %v6695_v38  ;;  %v1818_v22 = vld [vmem:[#allocation10 + $0xa18] sm:$0xff]  ;;  %v6648_v17 = vcombine.high %v1690_v4, %v1694_v19  ;;  %v6647_v20 = vcombine.low %v1690_v4, %v1694_v19 }
 0x342   : > { %6136 = vmatprep.subr.bf16.mxu0 %v6688_v50  ;;  %v1822_v55 = vld [vmem:[#allocation10 + $0xa38] sm:$0xff] }
 0x343   : > { %6176 = vmatpush2.bf16.msra.mxu1 %v6823_v37  ;;  %v1938_v54 = vld [vmem:[#allocation10 + $0xdd8] sm:$0xff]  ;;  %v6776_v23 = vcombine.high %v1818_v22, %v1822_v55  ;;  %v6775_v38 = vcombine.low %v1818_v22, %v1822_v55  ;;  %v2156_v37 = vrot.slane %v8355_v15, %v7604_v18 }
 0x344   : > { %6177 = vmatprep.subr.bf16.mxu1 %v6816_v51  ;;  %v1942_v62 = vld [vmem:[#allocation10 + $0xdf8] sm:$0xff] }
 0x345   : > { %6137 = vmatpush2.bf16.msra.mxu0 %v6687_v0  ;;  %v2066_v31 = vld [vmem:[#allocation10 + $0x11d8] sm:$0xff]  ;;  %v6896_v7 = vcombine.high %v1938_v54, %v1942_v62  ;;  %v6895_v59 = vcombine.low %v1938_v54, %v1942_v62 }
 0x346   : > { %6138 = vmatprep.subr.bf16.mxu0 %v6680_v46  ;;  %v2070_v8 = vld [vmem:[#allocation10 + $0x11f8] sm:$0xff] }
 0x347   : > { %6178 = vmatpush2.bf16.msra.mxu1 %v6815_v3  ;;  %v1930_v45 = vld [vmem:[#allocation10 + $0xd98] sm:$0xff]  ;;  %v7024_v50 = vcombine.high %v2066_v31, %v2070_v8  ;;  %v7023_v60 = vcombine.low %v2066_v31, %v2070_v8 }
 0x348   : > { %6179 = vmatprep.subr.bf16.mxu1 %v6808_v40  ;;  %v1934_v39 = vld [vmem:[#allocation10 + $0xdb8] sm:$0xff] }
 0x349   : > { %6139 = vmatpush2.bf16.msra.mxu0 %v6679_v48  ;;  %v2058_v29 = vld [vmem:[#allocation10 + $0x1198] sm:$0xff]  ;;  %v6888_v0 = vcombine.high %v1930_v45, %v1934_v39  ;;  %v6887_v18 = vcombine.low %v1930_v45, %v1934_v39 }
 0x34a   : > { %6140 = vmatprep.subr.bf16.mxu0 %v6672_v6  ;;  %v2062_v51 = vld [vmem:[#allocation10 + $0x11b8] sm:$0xff] }
 0x34b   : > { %6180 = vmatpush2.bf16.msra.mxu1 %v6807_v25  ;;  %v1922_v46 = vld [vmem:[#allocation10 + $0xd58] sm:$0xff]  ;;  %v7016_v30 = vcombine.high %v2058_v29, %v2062_v51 }
 0x34c   : > { %6181 = vmatprep.subr.bf16.mxu1 %v6800_v33  ;;  %v1926_v3 = vld [vmem:[#allocation10 + $0xd78] sm:$0xff] }
 0x34d   : > { %6141 = vmatpush2.bf16.msra.mxu0 %v6671_v1  ;;  %v2050_v48 = vld [vmem:[#allocation10 + $0x1158] sm:$0xff]  ;;  %v6880_v24 = vcombine.high %v1922_v46, %v1926_v3 }
 0x34e   : > { %6142 = vmatprep.subr.bf16.mxu0 %v6664_v49  ;;  %v2054_v56 = vld [vmem:[#allocation10 + $0x1178] sm:$0xff]  ;;  %v6879_v49 = vcombine.low %v1922_v46, %v1926_v3 }
 0x34f   : > { %6182 = vmatpush2.bf16.msra.mxu1 %v6799_v41  ;;  %v1914_v52 = vld [vmem:[#allocation10 + $0xd18] sm:$0xff]  ;;  %v7008_v26 = vcombine.high %v2050_v48, %v2054_v56 }
 0x350   : > { %6183 = vmatprep.subr.bf16.mxu1 %v6792_v32  ;;  %v1918_v33 = vld [vmem:[#allocation10 + $0xd38] sm:$0xff] }
 0x351   : > { %6143 = vmatpush2.bf16.msra.mxu0 %v6663_v9  ;;  %v2046_v41 = vld [vmem:[#allocation10 + $0x1138] sm:$0xff]  ;;  %v6872_v32 = vcombine.high %v1914_v52, %v1918_v33  ;;  %v7007_v9 = vcombine.low %v2050_v48, %v2054_v56 }
 0x352   : > { %6144 = vmatprep.subr.bf16.mxu0 %v6656_v16  ;;  %v1910_v10 = vld [vmem:[#allocation10 + $0xcf8] sm:$0xff] }
 0x353   : > { %6184 = vmatpush2.bf16.msra.mxu1 %v6791_v21  ;;  %v6871_v21 = vcombine.low %v1914_v52, %v1918_v33  ;;  %v2034_v4 = vld [vmem:[#allocation10 + $0x10d8] sm:$0xff] }
 0x354   : > { %6185 = vmatprep.subr.bf16.mxu1 %v6784_v13  ;;  %v2038_v19 = vld [vmem:[#allocation10 + $0x10f8] sm:$0xff] }
 0x355   : > { %6145 = vmatpush2.bf16.msra.mxu0 %v6655_v34  ;;  %v1898_v22 = vld [vmem:[#allocation10 + $0xc98] sm:$0xff] }
 0x356   : > { %6146 = vmatprep.subr.bf16.mxu0 %v6648_v17  ;;  %v1902_v55 = vld [vmem:[#allocation10 + $0xcb8] sm:$0xff]  ;;  %v6992_v17 = vcombine.high %v2034_v4, %v2038_v19 }
 0x357   : > { %6186 = vmatpush2.bf16.msra.mxu1 %v6783_v27  ;;  %v2026_v54 = vld [vmem:[#allocation10 + $0x1098] sm:$0xff] }
 0x358   : > { %6187 = vmatprep.subr.bf16.mxu1 %v6776_v23  ;;  %v2030_v62 = vld [vmem:[#allocation10 + $0x10b8] sm:$0xff]  ;;  %v6856_v23 = vcombine.high %v1898_v22, %v1902_v55 }
 0x359   : > { %6147 = vmatpush2.bf16.msra.mxu0 %v6647_v20  ;;  %v6991_v20 = vcombine.low %v2034_v4, %v2038_v19  ;;  %v1890_v31 = vld [vmem:[#allocation10 + $0xc58] sm:$0xff] }
 0x35a   : > { %6198 = vmatprep.subr.bf16.mxu0 %v6896_v7  ;;  %v1894_v8 = vld [vmem:[#allocation10 + $0xc78] sm:$0xff]  ;;  %v6984_v7 = vcombine.high %v2026_v54, %v2030_v62 }
 0x35b   : > { %6188 = vmatpush2.bf16.msra.mxu1 %v6775_v38  ;;  %v6855_v38 = vcombine.low %v1898_v22, %v1902_v55  ;;  %v2018_v45 = vld [vmem:[#allocation10 + $0x1058] sm:$0xff] }
 0x35c   : > { %v5904_v28 = vpop.f32.mrf.mxu0  ;;  %6149 = vmatmul.mubr.bf16.vlgmr.msra.gmra.mxu0 %v8252_v44  ;;  %6239 = vmatprep.subr.bf16.mxu1 %v7024_v50  ;;  %v7015_v44 = vcombine.low %v2058_v29, %v2062_v51  ;;  %v2022_v39 = vld [vmem:[#allocation10 + $0x1078] sm:$0xff]  ;;  %v6848_v50 = vcombine.high %v1890_v31, %v1894_v8 }
 0x35d   : > { %v5905_v40 = vadd.f32 %v5904_v28, %v2156_v37  ;;  %6199 = vmatpush1.bf16.msra.mxu0 %v6895_v59  ;;  %6230 = vmatprep.mubr.bf16.mxu0 %v8265_v47  ;;  %v6983_v37 = vcombine.low %v2026_v54, %v2030_v62  ;;  %v1882_v59 = vld [vmem:[#allocation10 + $0xc18] sm:$0xff]  ;;  %v6976_v51 = vcombine.high %v2018_v45, %v2022_v39 }
 0x35e   : > { %v5906_v5 = vpop.f32.mrf.mxu0  ;;  %v5945_v6 = vpop.f32.mrf.mxu1  ;;  %6190 = vmatmul.mubr.bf16.vlgmr.msra.gmra.mxu1 %v8286_v14  ;;  %6200 = vmatprep.subr.bf16.mxu0 %v6888_v0  ;;  %v2042_v14 = vld [vmem:[#allocation10 + $0x1118] sm:$0xff]  ;;  %v6847_v0 = vcombine.low %v1890_v31, %v1894_v8  ;;  %v6975_v3 = vcombine.low %v2018_v45, %v2022_v39 }
 0x35f   : > { %v5907_v25 = vadd.f32 %v5906_v5, %v2160_v2  ;;  %v8386_v58 = vadd.f32 %v5945_v6, %v5905_v40  ;;  %6240 = vmatpush1.bf16.msra.mxu1 %v7023_v60  ;;  %6271 = vmatprep.mubr.bf16.mxu1 %v8289_v53  ;;  %v1906_v53 = vld [vmem:[#allocation10 + $0xcd8] sm:$0xff]  ;;  %v7000_v16 = vcombine.high %v2042_v14, %v2046_v41 }
 0x360   : > { %v5908_v1 = vpop.f32.mrf.mxu0  ;;  %v5947_v47 = vpop.f32.mrf.mxu1  ;;  %6241 = vmatprep.subr.bf16.mxu1 %v7016_v30  ;;  %v6864_v13 = vcombine.high %v1906_v53, %v1910_v10  ;;  %v6999_v34 = vcombine.low %v2042_v14, %v2046_v41  ;;  %v6863_v27 = vcombine.low %v1906_v53, %v1910_v10  ;;  %v1886_v29 = vld [vmem:[#allocation10 + $0xc38] sm:$0xff] }
 0x361   : > { %v8389_v42 = vadd.f32 %v5947_v47, %v5907_v25  ;;  %6201 = vmatpush1.bf16.msra.mxu0 %v6887_v18  ;;  %v2010_v2 = vld [vmem:[#allocation10 + $0x1018] sm:$0xff]  ;;  %v6840_v46 = vcombine.high %v1882_v59, %v1886_v29  ;;  %v6839_v18 = vcombine.low %v1882_v59, %v1886_v29 }
 0x362   : > { %v5909_v63 = vpop.f32.mrf.mxu0  ;;  %v5949_v12 = vpop.f32.mrf.mxu1  ;;  %6202 = vmatprep.subr.bf16.mxu0 %v6880_v24  ;;  %v2014_v60 = vld [vmem:[#allocation10 + $0x1038] sm:$0xff] }
 0x363   : > { %6242 = vmatpush1.bf16.msra.mxu1 %v7015_v44  ;;  %v2002_v28 = vld [vmem:[#allocation10 + $0xfd8] sm:$0xff]  ;;  %v6968_v40 = vcombine.high %v2010_v2, %v2014_v60  ;;  %v6967_v6 = vcombine.low %v2010_v2, %v2014_v60 }
 0x364   : > { %v5950_v36 = vpop.f32.mrf.mxu1  ;;  %6243 = vmatprep.subr.bf16.mxu1 %v7008_v26  ;;  %v2006_v30 = vld [vmem:[#allocation10 + $0xff8] sm:$0xff] }
 0x365   : > { %6203 = vmatpush1.bf16.msra.mxu0 %v6879_v49  ;;  %v2130_v48 = vld [vmem:[#allocation10 + $0x13d8] sm:$0xff]  ;;  %v6960_v5 = vcombine.high %v2002_v28, %v2006_v30  ;;  %v6959_v52 = vcombine.low %v2002_v28, %v2006_v30 }
 0x366   : > { %6204 = vmatprep.subr.bf16.mxu0 %v6872_v32  ;;  %v2134_v56 = vld [vmem:[#allocation10 + $0x13f8] sm:$0xff] }
 0x367   : > { %6244 = vmatpush1.bf16.msra.mxu1 %v7007_v9  ;;  %v1994_v24 = vld [vmem:[#allocation10 + $0xf98] sm:$0xff]  ;;  %v7088_v44 = vcombine.high %v2130_v48, %v2134_v56  ;;  %v7087_v26 = vcombine.low %v2130_v48, %v2134_v56 }
 0x368   : > { %6245 = vmatprep.subr.bf16.mxu1 %v7000_v16  ;;  %v1998_v25 = vld [vmem:[#allocation10 + $0xfb8] sm:$0xff] }
 0x369   : > { %6205 = vmatpush1.bf16.msra.mxu0 %v6871_v21  ;;  %v2122_v33 = vld [vmem:[#allocation10 + $0x1398] sm:$0xff]  ;;  %v6952_v47 = vcombine.high %v1994_v24, %v1998_v25  ;;  %v6951_v63 = vcombine.low %v1994_v24, %v1998_v25 }
 0x36a   : > { %6206 = vmatprep.subr.bf16.mxu0 %v6864_v13  ;;  %v2126_v1 = vld [vmem:[#allocation10 + $0x13b8] sm:$0xff] }
 0x36b   : > { %6246 = vmatpush1.bf16.msra.mxu1 %v6999_v34  ;;  %v1986_v49 = vld [vmem:[#allocation10 + $0xf58] sm:$0xff]  ;;  %v7080_v41 = vcombine.high %v2122_v33, %v2126_v1  ;;  %v7079_v53 = vcombine.low %v2122_v33, %v2126_v1 }
 0x36c   : > { %6247 = vmatprep.subr.bf16.mxu1 %v6992_v17  ;;  %v1990_v14 = vld [vmem:[#allocation10 + $0xf78] sm:$0xff] }
 0x36d   : > { %6207 = vmatpush1.bf16.msra.mxu0 %v6863_v27  ;;  %v2114_v12 = vld [vmem:[#allocation10 + $0x1358] sm:$0xff]  ;;  %v6944_v9 = vcombine.high %v1986_v49, %v1990_v14  ;;  %v6943_v21 = vcombine.low %v1986_v49, %v1990_v14 }
 0x36e   : > { %6208 = vmatprep.subr.bf16.mxu0 %v6856_v23  ;;  %v2118_v32 = vld [vmem:[#allocation10 + $0x1378] sm:$0xff] }
 0x36f   : > { %6248 = vmatpush1.bf16.msra.mxu1 %v6991_v20  ;;  %v1978_v10 = vld [vmem:[#allocation10 + $0xf18] sm:$0xff]  ;;  %v7072_v16 = vcombine.high %v2114_v12, %v2118_v32  ;;  %v7071_v34 = vcombine.low %v2114_v12, %v2118_v32 }
 0x370   : > { %6249 = vmatprep.subr.bf16.mxu1 %v6984_v7  ;;  %v1982_v36 = vld [vmem:[#allocation10 + $0xf38] sm:$0xff] }
 0x371   : > { %6209 = vmatpush1.bf16.msra.mxu0 %v6855_v38  ;;  %v2106_v4 = vld [vmem:[#allocation10 + $0x1318] sm:$0xff]  ;;  %v6936_v13 = vcombine.high %v1978_v10, %v1982_v36  ;;  %v6935_v27 = vcombine.low %v1978_v10, %v1982_v36 }
 0x372   : > { %6210 = vmatprep.subr.bf16.mxu0 %v6848_v50  ;;  %v2110_v19 = vld [vmem:[#allocation10 + $0x1338] sm:$0xff] }
 0x373   : > { %6250 = vmatpush1.bf16.msra.mxu1 %v6983_v37  ;;  %v1970_v22 = vld [vmem:[#allocation10 + $0xed8] sm:$0xff]  ;;  %v7064_v17 = vcombine.high %v2106_v4, %v2110_v19  ;;  %v7063_v20 = vcombine.low %v2106_v4, %v2110_v19 }
 0x374   : > { %6251 = vmatprep.subr.bf16.mxu1 %v6976_v51  ;;  %v1974_v55 = vld [vmem:[#allocation10 + $0xef8] sm:$0xff] }
 0x375   : > { %6211 = vmatpush1.bf16.msra.mxu0 %v6847_v0  ;;  %v2098_v54 = vld [vmem:[#allocation10 + $0x12d8] sm:$0xff]  ;;  %v6928_v23 = vcombine.high %v1970_v22, %v1974_v55  ;;  %v6927_v38 = vcombine.low %v1970_v22, %v1974_v55 }
 0x376   : > { %6212 = vmatprep.subr.bf16.mxu0 %v6840_v46  ;;  %v2102_v62 = vld [vmem:[#allocation10 + $0x12f8] sm:$0xff] }
 0x377   : > { %6252 = vmatpush1.bf16.msra.mxu1 %v6975_v3  ;;  %v1962_v31 = vld [vmem:[#allocation10 + $0xe98] sm:$0xff]  ;;  %v7056_v7 = vcombine.high %v2098_v54, %v2102_v62  ;;  %v7055_v37 = vcombine.low %v2098_v54, %v2102_v62 }
 0x378   : > { %6253 = vmatprep.subr.bf16.mxu1 %v6968_v40  ;;  %v1966_v8 = vld [vmem:[#allocation10 + $0xeb8] sm:$0xff] }
 0x379   : > { %6213 = vmatpush1.bf16.msra.mxu0 %v6839_v18  ;;  %v2090_v45 = vld [vmem:[#allocation10 + $0x1298] sm:$0xff]  ;;  %v6920_v50 = vcombine.high %v1962_v31, %v1966_v8  ;;  %v6919_v0 = vcombine.low %v1962_v31, %v1966_v8 }
 0x37a   : > { %6214 = vmatprep.subr.bf16.mxu0 %v6960_v5  ;;  %v2094_v39 = vld [vmem:[#allocation10 + $0x12b8] sm:$0xff] }
 0x37b   : > { %6254 = vmatpush1.bf16.msra.mxu1 %v6967_v6  ;;  %v1954_v59 = vld [vmem:[#allocation10 + $0xe58] sm:$0xff]  ;;  %v7048_v51 = vcombine.high %v2090_v45, %v2094_v39  ;;  %v7047_v3 = vcombine.low %v2090_v45, %v2094_v39 }
 0x37c   : > { %6255 = vmatprep.subr.bf16.mxu1 %v7088_v44  ;;  %v1958_v29 = vld [vmem:[#allocation10 + $0xe78] sm:$0xff] }
 0x37d   : > { %6215 = vmatpush2.bf16.msra.mxu0 %v6959_v52  ;;  %v2082_v2 = vld [vmem:[#allocation10 + $0x1258] sm:$0xff]  ;;  %v6912_v46 = vcombine.high %v1954_v59, %v1958_v29  ;;  %v6911_v18 = vcombine.low %v1954_v59, %v1958_v29 }
 0x37e   : > { %6216 = vmatprep.subr.bf16.mxu0 %v6952_v47  ;;  %v2086_v60 = vld [vmem:[#allocation10 + $0x1278] sm:$0xff] }
 0x37f   : > { %6256 = vmatpush2.bf16.msra.mxu1 %v7087_v26  ;;  %v1946_v28 = vld [vmem:[#allocation10 + $0xe18] sm:$0xff]  ;;  %v7040_v40 = vcombine.high %v2082_v2, %v2086_v60  ;;  %v7039_v6 = vcombine.low %v2082_v2, %v2086_v60 }
 0x380   : > { %6257 = vmatprep.subr.bf16.mxu1 %v7080_v41  ;;  %v1950_v30 = vld [vmem:[#allocation10 + $0xe38] sm:$0xff] }
 0x381   : > { %6217 = vmatpush2.bf16.msra.mxu0 %v6951_v63  ;;  %v2074_v48 = vld [vmem:[#allocation10 + $0x1218] sm:$0xff]  ;;  %v6904_v5 = vcombine.high %v1946_v28, %v1950_v30  ;;  %v6903_v25 = vcombine.low %v1946_v28, %v1950_v30 }
 0x382   : > { %6218 = vmatprep.subr.bf16.mxu0 %v6944_v9  ;;  %v2078_v56 = vld [vmem:[#allocation10 + $0x1238] sm:$0xff] }
 0x383   : > { %6258 = vmatpush2.bf16.msra.mxu1 %v7079_v53  ;;  %v7032_v24 = vcombine.high %v2074_v48, %v2078_v56  ;;  %v7031_v44 = vcombine.low %v2074_v48, %v2078_v56 }
 0x384   : > { %6259 = vmatprep.subr.bf16.mxu1 %v7072_v16 }
 0x385   : > { %6219 = vmatpush2.bf16.msra.mxu0 %v6943_v21 }
 0x386   : > { %6220 = vmatprep.subr.bf16.mxu0 %v6936_v13 }
 0x387   : > { %6260 = vmatpush2.bf16.msra.mxu1 %v7071_v34 }
 0x388   : > { %6261 = vmatprep.subr.bf16.mxu1 %v7064_v17 }
 0x389   : > { %6221 = vmatpush2.bf16.msra.mxu0 %v6935_v27 }
 0x38a   : > { %6222 = vmatprep.subr.bf16.mxu0 %v6928_v23  ;;  %v2164_v23 = vrot.slane %v8355_v15, %v7641_v35 }
 0x38b   : > { %6262 = vmatpush2.bf16.msra.mxu1 %v7063_v20  ;;  %v2168_v20 = vrot.slane %v8355_v15, %v7659_v43 }
 0x38c   : > { %6263 = vmatprep.subr.bf16.mxu1 %v7056_v7 }
 0x38d   : > { %6223 = vmatpush2.bf16.msra.mxu0 %v6927_v38 }
 0x38e   : > { %6224 = vmatprep.subr.bf16.mxu0 %v6920_v50 }
 0x38f   : > { %6264 = vmatpush2.bf16.msra.mxu1 %v7055_v37 }
 0x390   : > { %6265 = vmatprep.subr.bf16.mxu1 %v7048_v51 }
 0x391   : > { %6225 = vmatpush2.bf16.msra.mxu0 %v6919_v0 }
 0x392   : > { %6226 = vmatprep.subr.bf16.mxu0 %v6912_v46 }
 0x393   : > { %6266 = vmatpush2.bf16.msra.mxu1 %v7047_v3 }
 0x394   : > { %6267 = vmatprep.subr.bf16.mxu1 %v7040_v40 }
 0x395   : > { %6227 = vmatpush2.bf16.msra.mxu0 %v6911_v18 }
 0x396   : > { %6228 = vmatprep.subr.bf16.mxu0 %v6904_v5 }
 0x397   : > { %6268 = vmatpush2.bf16.msra.mxu1 %v7039_v6 }
 0x398   : > { %6269 = vmatprep.subr.bf16.mxu1 %v7032_v24 }
 0x399   : > { %6229 = vmatpush2.bf16.msra.mxu0 %v6903_v25 }
 0x39b   : > { %6270 = vmatpush2.bf16.msra.mxu1 %v7031_v44 }
 0x39c   : > { %v5986_v52 = vpop.f32.mrf.mxu0  ;;  %6231 = vmatmul.mubr.bf16.vlgmr.msra.gmra.mxu0 %v8294_v57 }
 0x39d   : > { %v5987_v33 = vadd.f32 %v5986_v52, %v8386_v58 }
 0x39e   : > { %v5988_v1 = vpop.f32.mrf.mxu0  ;;  %v6027_v47 = vpop.f32.mrf.mxu1  ;;  %6272 = vmatmul.mubr.bf16.vlgmr.msra.gmra.mxu1 %v8301_v11 }
 0x39f   : > { %v5989_v26 = vadd.f32 %v5988_v1, %v8389_v42  ;;  %v6028_v49 = vadd.f32 %v6027_v47, %v5987_v33 }
 0x3a0   : > { %v5990_v14 = vpop.f32.mrf.mxu0  ;;  %v6029_v41 = vpop.f32.mrf.mxu1 }
 0x3a1   : > { %v6030_v63 = vadd.f32 %v6029_v41, %v5989_v26 }
 0x3a2   : > { %v5991_v12 = vpop.f32.mrf.mxu0  ;;  %v6031_v32 = vpop.f32.mrf.mxu1 }
 0x3a4   : > { %v6032_v9 = vpop.f32.mrf.mxu1 }
 0x3dc   : > { %v6068_v53 = vpop.f32.mrf.mxu0 }
 0x3dd   : > { %v6069_v10 = vadd.f32 %v6068_v53, %v6028_v49 }
 0x3de   : > { %v6070_v36 = vpop.f32.mrf.mxu0  ;;  %v6109_v16 = vpop.f32.mrf.mxu1 }
 0x3df   : > { %v6071_v57 = vadd.f32 %v6070_v36, %v6030_v63  ;;  %v6110_v31 = vadd.f32 %v6109_v16, %v2164_v23 }
 0x3e0   : > { %v6072_v21 = vpop.f32.mrf.mxu0  ;;  %v6111_v58 = vpop.f32.mrf.mxu1 }
 0x3e1   : > { %v6305_v4 = vcombine.low %v6069_v10, %v6071_v57  ;;  %v6112_v8 = vadd.f32 %v6111_v58, %v2168_v20 }
 0x3e2   : > { %v6073_v19 = vpop.f32.mrf.mxu0  ;;  %v6113_v13 = vpop.f32.mrf.mxu1 }
 0x3e3   : > { %v6313_v43 = vrot.slane %v6305_v4, %v8372_v61 }
 0x3e4   : > { %v6114_v11 = vpop.f32.mrf.mxu1 }
 0x41c   : > { %v6150_v34 = vpop.f32.mrf.mxu0 }
 0x41d   : > { %v6151_v7 = vadd.f32 %v6150_v34, %v6110_v31 }
 0x41e   : > { %v6152_v42 = vpop.f32.mrf.mxu0  ;;  %v6191_v22 = vpop.f32.mrf.mxu1 }
 0x41f   : > { %v6153_v38 = vadd.f32 %v6152_v42, %v6112_v8  ;;  %v6192_v45 = vadd.f32 %v6191_v22, %v6151_v7 }
 0x420   : > { %v6154_v55 = vpop.f32.mrf.mxu0  ;;  %v6193_v17 = vpop.f32.mrf.mxu1 }
 0x421   : > { %v6194_v50 = vadd.f32 %v6193_v17, %v6153_v38 }
 0x422   : > { %v6155_v27 = vpop.f32.mrf.mxu0  ;;  %v6195_v54 = vpop.f32.mrf.mxu1 }
 0x424   : > { %v6196_v62 = vpop.f32.mrf.mxu1 }
 0x45c   : > { %v6232_v39 = vpop.f32.mrf.mxu0 }
 0x45d   : > { %v6233_v37 = vadd.f32 %v6232_v39, %v6192_v45 }
 0x45e   : > { %v6234_v59 = vpop.f32.mrf.mxu0  ;;  %v6273_v29 = vpop.f32.mrf.mxu1 }
 0x45f   : > { %v6235_v51 = vadd.f32 %v6234_v59, %v6194_v50  ;;  %v6274_v60 = vadd.f32 %v6273_v29, %v6233_v37 }
 0x460   : > { %v6236_v0 = vpop.f32.mrf.mxu0  ;;  %v6275_v2 = vpop.f32.mrf.mxu1 }
 0x461   : > { %v6276_v46 = vadd.f32 %v6275_v2, %v6235_v51 }
 0x462   : > { %v6237_v3 = vpop.f32.mrf.mxu0  ;;  %v6277_v35 = vpop.f32.mrf.mxu1 }
 0x463   : > { %v6306_v28 = vcombine.low %v6274_v60, %v6276_v46 }
 0x464   : > { %v6278_v30 = vpop.f32.mrf.mxu1 }
 0x465   : > { %v6320_v15 = vrot.slane %v6306_v28, %v8372_v61 }
 0x467   : > { %v6321_v40 = vcombine.low %v6313_v43, %v6320_v15 }
 0x469   : > { %6325 = vst [vmem:[#allocation13 + $0x8] sm:$0xff] %v6321_v40 }
 0x46a PF: > { %p7141_p10 = scmp.eq.s32.totalorder %s7452_s24, 1  ;;  %s7400_s25 = smov [#allocation13]  }
 0x46b   : > { %s6333_s7 = sshll.u32 %s7400_s25, 4  ;;  %s6334_s7 = int_to_ptr.vmem [resolvable:$true] %s6333_s7 }
 0x46c   : > { %s7318_s13 = scalar_lea.vmem %s6334_s7, 256  ;;  %p7325_p2 = scmp.lt.s32.totalorder %s6334_s7, %s6334_s7 }
 0x46d   : > { %p7319_p11 = scmp.ne.s32.totalorder %s6334_s7, %s7318_s13  ;;  %p7326_p8 = scmp.lt.s32.totalorder %s7318_s13, %s7318_s13 }
 0x46f   : > { %p7320_p12 = pnand %p7319_p11, %p7141_p10  ;;  %p7327_p7 = por %p7326_p8, %p7325_p2 }
 0x471   : > { %p7321_p13 = pneg %p7320_p12 }
 0x473   : > { %p7328_p3 = pnand %p7327_p7, %p7321_p13 }
 0x475   : > { %7331 = shalt.err (!%p7328_p3)
}
 0x476   : > { %7112 = dma.vmem_to_hbm [thread:$0]  (%p7141_p10), %s6334_s7, 256, %s8431_s5, [#allocation6]  }
 0x477   : > { %7371 = dma.done.wait (%p7141_p10), [#allocation6], 256  }
 0x478   : > { %7373 = vsyncadd (%p7141_p10), [#allocation6], 4294967040 }
 0x479 PF: > { %p18_p1 = scmp.ge.s32.totalorder %s7519_s29, 4   ;;  %s8515_s18 = smov %s7380_s19 }
 0x47a   : > { %s8516_s19 = smov %s7384_s20  ;;  %s8517_s20 = smov %s7531_s6 }
 0x47b   : > { %s8518_s21 = smov %s7519_s29  ;;  %20 = sbr.rel (!%p18_p1) target bundleno = 6 (0x6), region = 101 }
 0x480   :  { %6346 = vsyncpa [#allocation5], 1 }
 0x481   :  { %6348 = vsyncpa [#allocation5 + $0x1], 1 }
 0x482   :  { %6349 = vsyncpa [#allocation8], 1 }
 0x483   :  { %6350 = vsyncpa [#allocation11], 1 }
 0x484   :  { %6351 = vsyncpa [#allocation6], 1 }
 0x485   :  { %6353 = vsyncpa [#allocation6 + $0x1], 1 }

</bundles_post_ra>
